<compile_context>
chip_gen: v5e
topology: v5e:2x2
jax: 0.10.0
libtpu: 0.0.40
codegen_flags: <defaults>
</compile_context>

<pallas_src>
import functools
import math

import jax
import jax.numpy as jnp
import numpy as np
from jax.experimental import pallas as pl
from jax.experimental.pallas import tpu as pltpu


# ---------------------------------------------------------------------------
# Fused forward kernel (single pallas_call, activations never leave vregs)
# ---------------------------------------------------------------------------
def _fused_vgg_kernel(
    xp1_ref,                        # (B*10, 120) bf16  conv1 LHS (height taps folded into K)
    w1_ref, b1_ref,                 # (120, 256) bf16 / (1, 256) f32
    b2_ref,                         # (1, 512) f32
    fc1b_ref, fc2b_ref, fc3b_ref,   # (1,512) / (1,512) / (1,128) f32
    w2_hbm, fc1w_hbm, fc2w_hbm, fc3w_hbm,   # HBM refs (memory_space=pl.ANY)
    out_ref,                        # (B, 128) f32 (cols 10..127 are padding)
    w2_ref,                         # scratch VMEM (3, 128, 512) bf16
    fc1w_ref, fc2w_ref, fc3w_ref,   # scratch VMEM (512,512)/(512,512)/(512,128) bf16
    dma_sem,                        # DMA semaphores (4,)
    *, batch,
):
    f32 = jnp.float32
    bf16 = jnp.bfloat16

    # ---- kick off all large-weight DMAs immediately, in use order ----------
    # conv1/pool1 compute overlaps the W2 fetch; conv2/pool2 overlap the fc
    # fetches.  Each .wait() sits right before the first use of that weight.
    cp_w2 = pltpu.make_async_copy(w2_hbm, w2_ref, dma_sem.at[0])
    cp_fc1 = pltpu.make_async_copy(fc1w_hbm, fc1w_ref, dma_sem.at[1])
    cp_fc2 = pltpu.make_async_copy(fc2w_hbm, fc2w_ref, dma_sem.at[2])
    cp_fc3 = pltpu.make_async_copy(fc3w_hbm, fc3w_ref, dma_sem.at[3])
    cp_w2.start(); cp_fc1.start(); cp_fc2.start(); cp_fc3.start()

    nrows = 10 * batch

    # ---- conv1: 3x3, 3->32, pad 1, 8x8 image -> ONE MXU matmul (K = 120) ---
    # Row r = b*10 + y (y in 0..7 valid; rows 10b+8/9 are don't-care).  Output
    # columns are block-permuted "evens first": block p (<4) holds x=2p,
    # block 4+p holds x=2p+1, channel c within each 32-block.
    a1 = jnp.dot(xp1_ref[...], w1_ref[...], preferred_element_type=f32)   # (10B, 256)
    a1 = jnp.maximum(a1 + b1_ref[...], 0.0)

    # ---- maxpool1 (2x2) as whole-array maxes --------------------------------
    vm1 = jnp.maximum(a1[:-1, :], a1[1:, :])        # (10B-1, 256) valid rows b*10+2*yo
    hm1 = jnp.maximum(vm1[:, :128], vm1[:, 128:])   # (10B-1, 128): [b*10+2yo, xo*32+c]

    # Zero the per-batch garbage rows (within-block rows 8/9) so conv2's
    # vertical zero-padding taps read exact zeros (conv bias may be nonzero).
    rid = jax.lax.broadcasted_iota(jnp.int32, hm1.shape, 0)
    keep = None
    for b in range(batch):
        ok = jnp.logical_or(rid < b * 10 + 8, rid >= (b + 1) * 10)
        keep = ok if keep is None else jnp.logical_and(keep, ok)
    hm1 = jnp.where(keep, hm1, 0.0)

    # Two prepended zero rows give the top vertical padding; taps then read
    # rows at stride 2 straight out of this value (no scratch, no scatter).
    buf = jnp.concatenate([jnp.zeros((2, 128), f32), hm1], axis=0)        # (10B+1, 128)

    # ---- conv2: 3x3, 32->128, pad 1, 4x4 image -> 3 MXU matmuls, K=128 ------
    # Horizontal padding / pool decimation is folded into the block-banded W2
    # (zero weight rows); output columns are block-permuted evens-first so
    # pool2's horizontal max is a single 256-lane half-vs-half max.
    cp_w2.wait()
    rc = nrows - 3
    a2 = jnp.zeros((rc, 512), f32)
    for di in range(3):
        a2 += jnp.dot(buf[2 * di:2 * di + rc, :].astype(bf16), w2_ref[di],
                      preferred_element_type=f32)
    a2 = jnp.maximum(a2 + b2_ref[...], 0.0)         # valid rows r = b*10 + 2*yo2

    # ---- maxpool2 (2x2) + flatten (values only, no flat scratch) ------------
    vm2 = jnp.maximum(a2[:-2, :], a2[2:, :])        # (rc-2, 512) valid rows b*10+4*yp
    hm2 = jnp.maximum(vm2[:, :256], vm2[:, 256:])   # (rc-2, 256): [b*10+4yp, xp*128+c]
    rows = []
    for b in range(batch):
        r0, r1 = b * 10, b * 10 + 4
        rows.append(jnp.concatenate([hm2[r0:r0 + 1, :], hm2[r1:r1 + 1, :]], axis=1))
    flat = jnp.concatenate(rows, axis=0)            # (B, 512) f32, NHWC flatten order

    # ---- classifier ----------------------------------------------------------
    # Dropout is identity in eval mode.
    # TODO(synk): activation_quantization() is undefined in the source module;
    # treated as identity here.
    cp_fc1.wait()
    h = jnp.dot(flat.astype(bf16), fc1w_ref[...], preferred_element_type=f32) + fc1b_ref[...]
    h = jnp.maximum(h, 0.0)
    cp_fc2.wait()
    h = jnp.dot(h.astype(bf16), fc2w_ref[...], preferred_element_type=f32) + fc2b_ref[...]
    h = jnp.maximum(h, 0.0)
    cp_fc3.wait()
    h = jnp.dot(h.astype(bf16), fc3w_ref[...], preferred_element_type=f32) + fc3b_ref[...]
    out_ref[...] = h.astype(out_ref.dtype)


# ---------------------------------------------------------------------------
# Forward wrapper: tiny one-time layout prep + one pallas_call
# ---------------------------------------------------------------------------
@jax.jit
def fixed_vgg_forward(kparams, x):
    """x: (B, 3, 8, 8) NCHW f32 -> logits (B, 10) f32."""
    B = x.shape[0]

    # NCHW -> NHWC, spatial pad 1, channel pad 3->4, then fold conv1's three
    # height taps into K: LHS[b*10+y, di*40 + xpad*4 + ci] = xpad_img[b, y+di, xpad, ci].
    xh = jnp.transpose(x, (0, 2, 3, 1))                      # (B, 8, 8, 3)
    xh = jnp.pad(xh, ((0, 0), (1, 1), (1, 1), (0, 1)))       # (B, 10, 10, 4)
    xp1 = xh.reshape(B * 10, 40)
    lhs = jnp.concatenate(
        [xp1, jnp.roll(xp1, -1, axis=0), jnp.roll(xp1, -2, axis=0)], axis=1
    ).astype(jnp.bfloat16)                                   # (B*10, 120)

    out = pl.pallas_call(
        functools.partial(_fused_vgg_kernel, batch=B),
        out_shape=jax.ShapeDtypeStruct((B, 128), jnp.float32),
        in_specs=(
            [pl.BlockSpec(memory_space=pltpu.MemorySpace.VMEM)] * 7   # lhs, w1, biases
            + [pl.BlockSpec(memory_space=pl.ANY)] * 4                 # w2, fc1w, fc2w, fc3w (HBM)
        ),
        out_specs=pl.BlockSpec(memory_space=pltpu.MemorySpace.VMEM),
        scratch_shapes=[
            pltpu.VMEM((3, 128, 512), jnp.bfloat16),   # w2 landing buffer
            pltpu.VMEM((512, 512), jnp.bfloat16),      # fc1w
            pltpu.VMEM((512, 512), jnp.bfloat16),      # fc2w
            pltpu.VMEM((512, 128), jnp.bfloat16),      # fc3w
            pltpu.SemaphoreType.DMA((4,)),
        ],
        cost_estimate=pl.CostEstimate(flops=10_000_000, transcendentals=0,
                                      bytes_accessed=1_800_000),
    )(lhs,
      kparams['w1'], kparams['b1'], kparams['b2'],
      kparams['fc1b'], kparams['fc2b'], kparams['fc3b'],
      kparams['w2'], kparams['fc1w'], kparams['fc2w'], kparams['fc3w'])
    return out[:, :10]                                       # drop fc3 lane padding


# ---------------------------------------------------------------------------
# Parameter initialization (PyTorch-layout params, mirrors FixedVGG.__init__)
# ---------------------------------------------------------------------------
def init_params(key, dtype=jnp.float32):
    ks = jax.random.split(key, 8)
    params = {}

    def conv_init(k, c_out, c_in):
        std = math.sqrt(2.0 / (3 * 3 * c_out))
        w = std * jax.random.normal(k, (c_out, c_in, 3, 3), dtype)
        return w, jnp.zeros((c_out,), dtype)

    params['conv1_w'], params['conv1_b'] = conv_init(ks[0], 32, 3)
    params['conv2_w'], params['conv2_b'] = conv_init(ks[1], 128, 32)

    def linear_init(kw, kb, fan_in, fan_out):
        bound = 1.0 / math.sqrt(fan_in)
        w = jax.random.uniform(kw, (fan_in, fan_out), dtype, -bound, bound)
        b = jax.random.uniform(kb, (fan_out,), dtype, -bound, bound)
        return w, b

    params['fc1_w'], params['fc1_b'] = linear_init(ks[2], ks[3], 512, 512)
    params['fc2_w'], params['fc2_b'] = linear_init(ks[4], ks[5], 512, 512)
    params['fc3_w'], params['fc3_b'] = linear_init(ks[6], ks[7], 512, 10)
    return params


# ---------------------------------------------------------------------------
# One-time host-side conversion of PyTorch-layout params into kernel layout
# ---------------------------------------------------------------------------
def prepare_kernel_params(params):
    bf16 = jnp.bfloat16
    w1 = np.asarray(params['conv1_w'], np.float32)   # (32, 3, 3, 3)   OIHW
    w2 = np.asarray(params['conv2_w'], np.float32)   # (128, 32, 3, 3) OIHW

    # Output column block permutations ("evens first") so each 2x2 horizontal
    # pool is an aligned half-vs-half max inside the kernel.
    def ob1(xo):   # conv1 output x -> column block (8 blocks of 32)
        return xo // 2 if xo % 2 == 0 else 4 + xo // 2

    def ob2(xo2):  # conv2 output x -> column block (4 blocks of 128)
        return xo2 // 2 if xo2 % 2 == 0 else 2 + xo2 // 2

    # conv1: height taps folded into K: W1[di*40 + xi*4 + ci, ob1(xo)*32 + co]
    #        = w1[co, ci, di, xi - xo], dj = xi - xo in 0..2.
    W1 = np.zeros((120, 256), np.float32)
    for di in range(3):
        for dj in range(3):
            blk = w1[:, :, di, dj].T                 # (ci=3, co=32)
            for xo in range(8):
                xi = xo + dj
                W1[di * 40 + xi * 4: di * 40 + xi * 4 + 3,
                   ob1(xo) * 32: ob1(xo) * 32 + 32] = blk

    # conv2: block-banded weights over the COMPACT pool1 layout (K = xo*32+ci,
    # xo in 0..3).  Horizontal zero-padding taps are simply absent (zero) rows.
    W2 = np.zeros((3, 128, 512), np.float32)
    for di in range(3):
        for dxi in range(3):
            blk = w2[:, :, di, dxi].T                # (ci=32, co=128)
            for xo2 in range(4):
                xo = xo2 + dxi - 1
                if 0 <= xo <= 3:
                    W2[di, xo * 32:(xo + 1) * 32,
                       ob2(xo2) * 128:(ob2(xo2) + 1) * 128] = blk

    # Biases tiled per column block (block permutation does not matter: every
    # block carries the same bias vector).
    b1t = np.tile(np.asarray(params['conv1_b'], np.float32), 8)[None, :]   # (1, 256)
    b2t = np.tile(np.asarray(params['conv2_b'], np.float32), 4)[None, :]   # (1, 512)

    # fc1 rows permuted from PyTorch NCHW-flatten (c*4 + y*2 + x) to the
    # kernel's NHWC-flatten ((y*2 + x)*128 + c) so x.view(B, -1) semantics match.
    jk = np.arange(512)
    yo, xo, c = jk // 256, (jk % 256) // 128, jk % 128
    perm = c * 4 + yo * 2 + xo
    fc1w = np.asarray(params['fc1_w'], np.float32)[perm, :]

    # fc3 padded from 10 to 128 output lanes (sliced back in the wrapper).
    fc3w = np.zeros((512, 128), np.float32)
    fc3w[:, :10] = np.asarray(params['fc3_w'], np.float32)
    fc3b = np.zeros((1, 128), np.float32)
    fc3b[0, :10] = np.asarray(params['fc3_b'], np.float32)

    return {
        'w1': jnp.asarray(W1, bf16), 'b1': jnp.asarray(b1t),
        'w2': jnp.asarray(W2, bf16), 'b2': jnp.asarray(b2t),
        'fc1w': jnp.asarray(fc1w, bf16),
        'fc1b': jnp.asarray(params['fc1_b'], jnp.float32)[None, :],
        'fc2w': jnp.asarray(params['fc2_w'], bf16),
        'fc2b': jnp.asarray(params['fc2_b'], jnp.float32)[None, :],
        'fc3w': jnp.asarray(fc3w, bf16), 'fc3b': jnp.asarray(fc3b),
    }


# ---------------------------------------------------------------------------
# Pure-JAX reference (f32), used only to validate the fused kernel.
# ---------------------------------------------------------------------------
def _reference_forward(params, x):
    dn = ('NCHW', 'OIHW', 'NCHW')
    hp = jax.lax.Precision.HIGHEST
    y = jax.lax.conv_general_dilated(x, params['conv1_w'], (1, 1), 'SAME',
                                     dimension_numbers=dn, precision=hp)
    y = jnp.maximum(y + params['conv1_b'][None, :, None, None], 0.0)
    y = jax.lax.reduce_window(y, -jnp.inf, jax.lax.max, (1, 1, 2, 2), (1, 1, 2, 2), 'VALID')
    y = jax.lax.conv_general_dilated(y, params['conv2_w'], (1, 1), 'SAME',
                                     dimension_numbers=dn, precision=hp)
    y = jnp.maximum(y + params['conv2_b'][None, :, None, None], 0.0)
    y = jax.lax.reduce_window(y, -jnp.inf, jax.lax.max, (1, 1, 2, 2), (1, 1, 2, 2), 'VALID')
    y = y.reshape(y.shape[0], -1)                              # PyTorch NCHW view(B, -1)
    y = jnp.maximum(jnp.dot(y, params['fc1_w'], precision=hp) + params['fc1_b'], 0.0)
    y = jnp.maximum(jnp.dot(y, params['fc2_w'], precision=hp) + params['fc2_b'], 0.0)
    return jnp.dot(y, params['fc3_w'], precision=hp) + params['fc3_b']


if __name__ == "__main__":
    key = jax.random.PRNGKey(0)
    k_param, k_b1, k_b2, k_x = jax.random.split(key, 4)
    params = init_params(k_param)
    # The module zero-inits conv biases; perturb them here purely so the test
    # also exercises the bias-tiling and zero-padding-mask paths of the kernel
    # (the reference uses the same perturbed params, so the check stays exact).
    params['conv1_b'] = 0.05 * jax.random.normal(k_b1, (32,), jnp.float32)
    params['conv2_b'] = 0.05 * jax.random.normal(k_b2, (128,), jnp.float32)

    kparams = prepare_kernel_params(params)
    x = jax.random.normal(k_x, (2, 3, 8, 8), jnp.float32)     # NCHW input

    out = fixed_vgg_forward(kparams, x)
    jax.block_until_ready(out)
    assert out.shape == (2, 10)

    # Validate against the plain-JAX/XLA f32 reference (tolerance covers the
    # kernel's bf16 MXU inputs; layout bugs would be O(logit scale)).
    ref = _reference_forward(params, x)
    err = float(jnp.max(jnp.abs(out - ref)))
    assert err < 3e-2, f"kernel/reference mismatch: max |err| = {err}"

    print("KERNEL_OK")
</pallas_src>

<mosaic_0001>
module attributes {stable_mosaic.version = 11 : i64} {
  func.func @_fused_vgg_kernel(%arg0: memref<20x120xbf16, #tpu.memory_space<vmem>>, %arg1: memref<120x256xbf16, #tpu.memory_space<vmem>>, %arg2: memref<1x256xf32, #tpu.memory_space<vmem>>, %arg3: memref<1x512xf32, #tpu.memory_space<vmem>>, %arg4: memref<1x512xf32, #tpu.memory_space<vmem>>, %arg5: memref<1x512xf32, #tpu.memory_space<vmem>>, %arg6: memref<1x128xf32, #tpu.memory_space<vmem>>, %arg7: memref<3x128x512xbf16, #tpu.memory_space<any>>, %arg8: memref<512x512xbf16, #tpu.memory_space<any>>, %arg9: memref<512x512xbf16, #tpu.memory_space<any>>, %arg10: memref<512x128xbf16, #tpu.memory_space<any>>, %arg11: memref<2x128xf32, #tpu.memory_space<vmem>>, %arg12: memref<3x128x512xbf16, #tpu.memory_space<vmem>>, %arg13: memref<512x512xbf16, #tpu.memory_space<vmem>>, %arg14: memref<512x512xbf16, #tpu.memory_space<vmem>>, %arg15: memref<512x128xbf16, #tpu.memory_space<vmem>>, %arg16: memref<4x!tpu.dma_semaphore, #tpu.memory_space<semaphore_mem>>) attributes {dimension_semantics = [], scalar_prefetch = 0 : i64, scratch_operands = 5 : i64, tpu.core_type = #tpu.core_type<tc>} {
    %c0_i32 = arith.constant 0 : i32
    %0 = tpu.memref_slice %arg16[%c0_i32] : memref<4x!tpu.dma_semaphore, #tpu.memory_space<semaphore_mem>> -> memref<1x!tpu.dma_semaphore, #tpu.memory_space<semaphore_mem>>
    %1 = tpu.memref_squeeze %0 : memref<1x!tpu.dma_semaphore, #tpu.memory_space<semaphore_mem>> -> memref<!tpu.dma_semaphore, #tpu.memory_space<semaphore_mem>>
    tpu.enqueue_dma source(%arg7 : memref<3x128x512xbf16, #tpu.memory_space<any>>) target(%arg12 : memref<3x128x512xbf16, #tpu.memory_space<vmem>>) target_semaphore(%1 : memref<!tpu.dma_semaphore, #tpu.memory_space<semaphore_mem>>)
    %c1_i32 = arith.constant 1 : i32
    %2 = tpu.memref_slice %arg16[%c1_i32] : memref<4x!tpu.dma_semaphore, #tpu.memory_space<semaphore_mem>> -> memref<1x!tpu.dma_semaphore, #tpu.memory_space<semaphore_mem>>
    %3 = tpu.memref_squeeze %2 : memref<1x!tpu.dma_semaphore, #tpu.memory_space<semaphore_mem>> -> memref<!tpu.dma_semaphore, #tpu.memory_space<semaphore_mem>>
    tpu.enqueue_dma source(%arg8 : memref<512x512xbf16, #tpu.memory_space<any>>) target(%arg13 : memref<512x512xbf16, #tpu.memory_space<vmem>>) target_semaphore(%3 : memref<!tpu.dma_semaphore, #tpu.memory_space<semaphore_mem>>)
    %c2_i32 = arith.constant 2 : i32
    %4 = tpu.memref_slice %arg16[%c2_i32] : memref<4x!tpu.dma_semaphore, #tpu.memory_space<semaphore_mem>> -> memref<1x!tpu.dma_semaphore, #tpu.memory_space<semaphore_mem>>
    %5 = tpu.memref_squeeze %4 : memref<1x!tpu.dma_semaphore, #tpu.memory_space<semaphore_mem>> -> memref<!tpu.dma_semaphore, #tpu.memory_space<semaphore_mem>>
    tpu.enqueue_dma source(%arg9 : memref<512x512xbf16, #tpu.memory_space<any>>) target(%arg14 : memref<512x512xbf16, #tpu.memory_space<vmem>>) target_semaphore(%5 : memref<!tpu.dma_semaphore, #tpu.memory_space<semaphore_mem>>)
    %c3_i32 = arith.constant 3 : i32
    %6 = tpu.memref_slice %arg16[%c3_i32] : memref<4x!tpu.dma_semaphore, #tpu.memory_space<semaphore_mem>> -> memref<1x!tpu.dma_semaphore, #tpu.memory_space<semaphore_mem>>
    %7 = tpu.memref_squeeze %6 : memref<1x!tpu.dma_semaphore, #tpu.memory_space<semaphore_mem>> -> memref<!tpu.dma_semaphore, #tpu.memory_space<semaphore_mem>>
    tpu.enqueue_dma source(%arg10 : memref<512x128xbf16, #tpu.memory_space<any>>) target(%arg15 : memref<512x128xbf16, #tpu.memory_space<vmem>>) target_semaphore(%7 : memref<!tpu.dma_semaphore, #tpu.memory_space<semaphore_mem>>)
    %c0 = arith.constant 0 : index
    %c0_0 = arith.constant 0 : index
    %8 = vector.load %arg0[%c0, %c0_0] : memref<20x120xbf16, #tpu.memory_space<vmem>>, vector<20x120xbf16>
    %c0_1 = arith.constant 0 : index
    %c0_2 = arith.constant 0 : index
    %9 = vector.load %arg1[%c0_1, %c0_2] : memref<120x256xbf16, #tpu.memory_space<vmem>>, vector<120x256xbf16>
    %cst = arith.constant dense<0.000000e+00> : vector<20x256xf32>
    %10 = tpu.matmul %8, %9, %cst {dimension_numbers = #tpu.dot_dimension_numbers<[1], [0], [0], [1], [0, 0, 1, 1], [], []>} : vector<20x120xbf16>, vector<120x256xbf16>, vector<20x256xf32> -> vector<20x256xf32>
    %c0_3 = arith.constant 0 : index
    %c0_4 = arith.constant 0 : index
    %11 = vector.load %arg2[%c0_3, %c0_4] : memref<1x256xf32, #tpu.memory_space<vmem>>, vector<1x256xf32>
    %12 = vector.broadcast %11 : vector<1x256xf32> to vector<20x256xf32>
    %13 = arith.addf %10, %12 : vector<20x256xf32>
    %cst_5 = arith.constant 0.000000e+00 : f32
    %14 = vector.broadcast %cst_5 : f32 to vector<20x256xf32>
    %15 = arith.maximumf %13, %14 : vector<20x256xf32>
    %16 = vector.extract_strided_slice %15 {offsets = [0, 0], sizes = [19, 256], strides = [1, 1]} : vector<20x256xf32> to vector<19x256xf32>
    %17 = vector.extract_strided_slice %15 {offsets = [1, 0], sizes = [19, 256], strides = [1, 1]} : vector<20x256xf32> to vector<19x256xf32>
    %18 = arith.maximumf %16, %17 : vector<19x256xf32>
    %19 = vector.extract_strided_slice %18 {offsets = [0, 0], sizes = [19, 128], strides = [1, 1]} : vector<19x256xf32> to vector<19x128xf32>
    %20 = vector.extract_strided_slice %18 {offsets = [0, 128], sizes = [19, 128], strides = [1, 1]} : vector<19x256xf32> to vector<19x128xf32>
    %21 = arith.maximumf %19, %20 : vector<19x128xf32>
    %22 = tpu.iota {dimensions = array<i32: 0>} : vector<19x128xi32>
    %c8_i32 = arith.constant 8 : i32
    %23 = vector.broadcast %c8_i32 : i32 to vector<19x128xi32>
    %24 = arith.cmpi slt, %22, %23 : vector<19x128xi32>
    %c10_i32 = arith.constant 10 : i32
    %25 = vector.broadcast %c10_i32 : i32 to vector<19x128xi32>
    %26 = arith.cmpi sge, %22, %25 : vector<19x128xi32>
    %27 = arith.ori %24, %26 : vector<19x128xi1>
    %c18_i32 = arith.constant 18 : i32
    %28 = vector.broadcast %c18_i32 : i32 to vector<19x128xi32>
    %29 = arith.cmpi slt, %22, %28 : vector<19x128xi32>
    %c20_i32 = arith.constant 20 : i32
    %30 = vector.broadcast %c20_i32 : i32 to vector<19x128xi32>
    %31 = arith.cmpi sge, %22, %30 : vector<19x128xi32>
    %32 = arith.ori %29, %31 : vector<19x128xi1>
    %33 = arith.andi %27, %32 : vector<19x128xi1>
    %cst_6 = arith.constant 0.000000e+00 : f32
    %34 = vector.broadcast %cst_6 : f32 to vector<19x128xf32>
    %35 = arith.select %33, %21, %34 : vector<19x128xi1>, vector<19x128xf32>
    %cst_7 = arith.constant 0.000000e+00 : f32
    %36 = vector.broadcast %cst_7 : f32 to vector<2x128xf32>
    %37 = tpu.concatenate %36, %35 in 0 : vector<2x128xf32>, vector<19x128xf32> -> vector<21x128xf32>
    %c0_i32_8 = arith.constant 0 : i32
    %38 = tpu.memref_slice %arg16[%c0_i32_8] : memref<4x!tpu.dma_semaphore, #tpu.memory_space<semaphore_mem>> -> memref<1x!tpu.dma_semaphore, #tpu.memory_space<semaphore_mem>>
    %39 = tpu.memref_squeeze %38 : memref<1x!tpu.dma_semaphore, #tpu.memory_space<semaphore_mem>> -> memref<!tpu.dma_semaphore, #tpu.memory_space<semaphore_mem>>
    tpu.wait_dma2 semaphore(%39 : memref<!tpu.dma_semaphore, #tpu.memory_space<semaphore_mem>>) src(%arg7 : memref<3x128x512xbf16, #tpu.memory_space<any>>) dst(%arg12 : memref<3x128x512xbf16, #tpu.memory_space<vmem>>)
    %cst_9 = arith.constant 0.000000e+00 : f32
    %40 = vector.broadcast %cst_9 : f32 to vector<17x512xf32>
    %41 = vector.extract_strided_slice %37 {offsets = [0, 0], sizes = [17, 128], strides = [1, 1]} : vector<21x128xf32> to vector<17x128xf32>
    %42 = arith.truncf %41 : vector<17x128xf32> to vector<17x128xbf16>
    %c0_10 = arith.constant 0 : index
    %c0_11 = arith.constant 0 : index
    %c0_12 = arith.constant 0 : index
    %43 = vector.load %arg12[%c0_10, %c0_11, %c0_12] : memref<3x128x512xbf16, #tpu.memory_space<vmem>>, vector<1x128x512xbf16>
    %44 = vector.shape_cast %43 : vector<1x128x512xbf16> to vector<128x512xbf16>
    %cst_13 = arith.constant dense<0.000000e+00> : vector<17x512xf32>
    %45 = tpu.matmul %42, %44, %cst_13 {dimension_numbers = #tpu.dot_dimension_numbers<[1], [0], [0], [1], [0, 0, 1, 1], [], []>} : vector<17x128xbf16>, vector<128x512xbf16>, vector<17x512xf32> -> vector<17x512xf32>
    %46 = arith.addf %40, %45 : vector<17x512xf32>
    %47 = vector.extract_strided_slice %37 {offsets = [2, 0], sizes = [17, 128], strides = [1, 1]} : vector<21x128xf32> to vector<17x128xf32>
    %48 = arith.truncf %47 : vector<17x128xf32> to vector<17x128xbf16>
    %c1 = arith.constant 1 : index
    %c0_14 = arith.constant 0 : index
    %c0_15 = arith.constant 0 : index
    %49 = vector.load %arg12[%c1, %c0_14, %c0_15] : memref<3x128x512xbf16, #tpu.memory_space<vmem>>, vector<1x128x512xbf16>
    %50 = vector.shape_cast %49 : vector<1x128x512xbf16> to vector<128x512xbf16>
    %cst_16 = arith.constant dense<0.000000e+00> : vector<17x512xf32>
    %51 = tpu.matmul %48, %50, %cst_16 {dimension_numbers = #tpu.dot_dimension_numbers<[1], [0], [0], [1], [0, 0, 1, 1], [], []>} : vector<17x128xbf16>, vector<128x512xbf16>, vector<17x512xf32> -> vector<17x512xf32>
    %52 = arith.addf %46, %51 : vector<17x512xf32>
    %53 = vector.extract_strided_slice %37 {offsets = [4, 0], sizes = [17, 128], strides = [1, 1]} : vector<21x128xf32> to vector<17x128xf32>
    %54 = arith.truncf %53 : vector<17x128xf32> to vector<17x128xbf16>
    %c2 = arith.constant 2 : index
    %c0_17 = arith.constant 0 : index
    %c0_18 = arith.constant 0 : index
    %55 = vector.load %arg12[%c2, %c0_17, %c0_18] : memref<3x128x512xbf16, #tpu.memory_space<vmem>>, vector<1x128x512xbf16>
    %56 = vector.shape_cast %55 : vector<1x128x512xbf16> to vector<128x512xbf16>
    %cst_19 = arith.constant dense<0.000000e+00> : vector<17x512xf32>
    %57 = tpu.matmul %54, %56, %cst_19 {dimension_numbers = #tpu.dot_dimension_numbers<[1], [0], [0], [1], [0, 0, 1, 1], [], []>} : vector<17x128xbf16>, vector<128x512xbf16>, vector<17x512xf32> -> vector<17x512xf32>
    %58 = arith.addf %52, %57 : vector<17x512xf32>
    %c0_20 = arith.constant 0 : index
    %c0_21 = arith.constant 0 : index
    %59 = vector.load %arg3[%c0_20, %c0_21] : memref<1x512xf32, #tpu.memory_space<vmem>>, vector<1x512xf32>
    %60 = vector.broadcast %59 : vector<1x512xf32> to vector<17x512xf32>
    %61 = arith.addf %58, %60 : vector<17x512xf32>
    %cst_22 = arith.constant 0.000000e+00 : f32
    %62 = vector.broadcast %cst_22 : f32 to vector<17x512xf32>
    %63 = arith.maximumf %61, %62 : vector<17x512xf32>
    %64 = vector.extract_strided_slice %63 {offsets = [0, 0], sizes = [15, 512], strides = [1, 1]} : vector<17x512xf32> to vector<15x512xf32>
    %65 = vector.extract_strided_slice %63 {offsets = [2, 0], sizes = [15, 512], strides = [1, 1]} : vector<17x512xf32> to vector<15x512xf32>
    %66 = arith.maximumf %64, %65 : vector<15x512xf32>
    %67 = vector.extract_strided_slice %66 {offsets = [0, 0], sizes = [15, 256], strides = [1, 1]} : vector<15x512xf32> to vector<15x256xf32>
    %68 = vector.extract_strided_slice %66 {offsets = [0, 256], sizes = [15, 256], strides = [1, 1]} : vector<15x512xf32> to vector<15x256xf32>
    %69 = arith.maximumf %67, %68 : vector<15x256xf32>
    %70 = vector.extract_strided_slice %69 {offsets = [0, 0], sizes = [1, 256], strides = [1, 1]} : vector<15x256xf32> to vector<1x256xf32>
    %71 = vector.extract_strided_slice %69 {offsets = [4, 0], sizes = [1, 256], strides = [1, 1]} : vector<15x256xf32> to vector<1x256xf32>
    %72 = tpu.concatenate %70, %71 in 1 : vector<1x256xf32>, vector<1x256xf32> -> vector<1x512xf32>
    %73 = vector.extract_strided_slice %69 {offsets = [10, 0], sizes = [1, 256], strides = [1, 1]} : vector<15x256xf32> to vector<1x256xf32>
    %74 = vector.extract_strided_slice %69 {offsets = [14, 0], sizes = [1, 256], strides = [1, 1]} : vector<15x256xf32> to vector<1x256xf32>
    %75 = tpu.concatenate %73, %74 in 1 : vector<1x256xf32>, vector<1x256xf32> -> vector<1x512xf32>
    %76 = tpu.concatenate %72, %75 in 0 : vector<1x512xf32>, vector<1x512xf32> -> vector<2x512xf32>
    %c1_i32_23 = arith.constant 1 : i32
    %77 = tpu.memref_slice %arg16[%c1_i32_23] : memref<4x!tpu.dma_semaphore, #tpu.memory_space<semaphore_mem>> -> memref<1x!tpu.dma_semaphore, #tpu.memory_space<semaphore_mem>>
    %78 = tpu.memref_squeeze %77 : memref<1x!tpu.dma_semaphore, #tpu.memory_space<semaphore_mem>> -> memref<!tpu.dma_semaphore, #tpu.memory_space<semaphore_mem>>
    tpu.wait_dma2 semaphore(%78 : memref<!tpu.dma_semaphore, #tpu.memory_space<semaphore_mem>>) src(%arg8 : memref<512x512xbf16, #tpu.memory_space<any>>) dst(%arg13 : memref<512x512xbf16, #tpu.memory_space<vmem>>)
    %79 = arith.truncf %76 : vector<2x512xf32> to vector<2x512xbf16>
    %c0_24 = arith.constant 0 : index
    %c0_25 = arith.constant 0 : index
    %80 = vector.load %arg13[%c0_24, %c0_25] : memref<512x512xbf16, #tpu.memory_space<vmem>>, vector<512x512xbf16>
    %cst_26 = arith.constant dense<0.000000e+00> : vector<2x512xf32>
    %81 = tpu.matmul %79, %80, %cst_26 {dimension_numbers = #tpu.dot_dimension_numbers<[1], [0], [0], [1], [0, 0, 1, 1], [], []>} : vector<2x512xbf16>, vector<512x512xbf16>, vector<2x512xf32> -> vector<2x512xf32>
    %c0_27 = arith.constant 0 : index
    %c0_28 = arith.constant 0 : index
    %82 = vector.load %arg4[%c0_27, %c0_28] : memref<1x512xf32, #tpu.memory_space<vmem>>, vector<1x512xf32>
    %83 = vector.broadcast %82 : vector<1x512xf32> to vector<2x512xf32>
    %84 = arith.addf %81, %83 : vector<2x512xf32>
    %cst_29 = arith.constant 0.000000e+00 : f32
    %85 = vector.broadcast %cst_29 : f32 to vector<2x512xf32>
    %86 = arith.maximumf %84, %85 : vector<2x512xf32>
    %c2_i32_30 = arith.constant 2 : i32
    %87 = tpu.memref_slice %arg16[%c2_i32_30] : memref<4x!tpu.dma_semaphore, #tpu.memory_space<semaphore_mem>> -> memref<1x!tpu.dma_semaphore, #tpu.memory_space<semaphore_mem>>
    %88 = tpu.memref_squeeze %87 : memref<1x!tpu.dma_semaphore, #tpu.memory_space<semaphore_mem>> -> memref<!tpu.dma_semaphore, #tpu.memory_space<semaphore_mem>>
    tpu.wait_dma2 semaphore(%88 : memref<!tpu.dma_semaphore, #tpu.memory_space<semaphore_mem>>) src(%arg9 : memref<512x512xbf16, #tpu.memory_space<any>>) dst(%arg14 : memref<512x512xbf16, #tpu.memory_space<vmem>>)
    %89 = arith.truncf %86 : vector<2x512xf32> to vector<2x512xbf16>
    %c0_31 = arith.constant 0 : index
    %c0_32 = arith.constant 0 : index
    %90 = vector.load %arg14[%c0_31, %c0_32] : memref<512x512xbf16, #tpu.memory_space<vmem>>, vector<512x512xbf16>
    %cst_33 = arith.constant dense<0.000000e+00> : vector<2x512xf32>
    %91 = tpu.matmul %89, %90, %cst_33 {dimension_numbers = #tpu.dot_dimension_numbers<[1], [0], [0], [1], [0, 0, 1, 1], [], []>} : vector<2x512xbf16>, vector<512x512xbf16>, vector<2x512xf32> -> vector<2x512xf32>
    %c0_34 = arith.constant 0 : index
    %c0_35 = arith.constant 0 : index
    %92 = vector.load %arg5[%c0_34, %c0_35] : memref<1x512xf32, #tpu.memory_space<vmem>>, vector<1x512xf32>
    %93 = vector.broadcast %92 : vector<1x512xf32> to vector<2x512xf32>
    %94 = arith.addf %91, %93 : vector<2x512xf32>
    %cst_36 = arith.constant 0.000000e+00 : f32
    %95 = vector.broadcast %cst_36 : f32 to vector<2x512xf32>
    %96 = arith.maximumf %94, %95 : vector<2x512xf32>
    %c3_i32_37 = arith.constant 3 : i32
    %97 = tpu.memref_slice %arg16[%c3_i32_37] : memref<4x!tpu.dma_semaphore, #tpu.memory_space<semaphore_mem>> -> memref<1x!tpu.dma_semaphore, #tpu.memory_space<semaphore_mem>>
    %98 = tpu.memref_squeeze %97 : memref<1x!tpu.dma_semaphore, #tpu.memory_space<semaphore_mem>> -> memref<!tpu.dma_semaphore, #tpu.memory_space<semaphore_mem>>
    tpu.wait_dma2 semaphore(%98 : memref<!tpu.dma_semaphore, #tpu.memory_space<semaphore_mem>>) src(%arg10 : memref<512x128xbf16, #tpu.memory_space<any>>) dst(%arg15 : memref<512x128xbf16, #tpu.memory_space<vmem>>)
    %99 = arith.truncf %96 : vector<2x512xf32> to vector<2x512xbf16>
    %c0_38 = arith.constant 0 : index
    %c0_39 = arith.constant 0 : index
    %100 = vector.load %arg15[%c0_38, %c0_39] : memref<512x128xbf16, #tpu.memory_space<vmem>>, vector<512x128xbf16>
    %cst_40 = arith.constant dense<0.000000e+00> : vector<2x128xf32>
    %101 = tpu.matmul %99, %100, %cst_40 {dimension_numbers = #tpu.dot_dimension_numbers<[1], [0], [0], [1], [0, 0, 1, 1], [], []>} : vector<2x512xbf16>, vector<512x128xbf16>, vector<2x128xf32> -> vector<2x128xf32>
    %c0_41 = arith.constant 0 : index
    %c0_42 = arith.constant 0 : index
    %102 = vector.load %arg6[%c0_41, %c0_42] : memref<1x128xf32, #tpu.memory_space<vmem>>, vector<1x128xf32>
    %103 = vector.broadcast %102 : vector<1x128xf32> to vector<2x128xf32>
    %104 = arith.addf %101, %103 : vector<2x128xf32>
    %c0_43 = arith.constant 0 : index
    %c0_44 = arith.constant 0 : index
    %105 = vector.load %arg11[%c0_43, %c0_44] : memref<2x128xf32, #tpu.memory_space<vmem>>, vector<2x128xf32>
    tpu.vector_store %arg11[%c0_43, %c0_44], %104 {strides = array<i32>} : memref<2x128xf32, #tpu.memory_space<vmem>>, vector<2x128xf32>,
    return
  }
}

</mosaic_0001>

<bundles_post_ra>
// kernel: fixed_vgg_forward.1
= control target key start
LH: loop header
LB: loop body
LE: loop exit
PB: predicated region body
PF: predicated region fallthrough
CT: control target
= control target key end

     0   :  { %16 = vsyncpa [#allocation8], 0  ;;  %s5820_s24 = smov [#allocation2]   ;;  %s5821_s20 = smov [#allocation3]   ;;  %s6314_s0 = inlined_call_operand.vmem [shape: bf16[20,120], index: 0, kind: input, shape index: {}]   ;;  %s6315_s1 = inlined_call_operand.vmem [shape: bf16[120,256], index: 1, kind: input, shape index: {}]   ;;  %s6316_s2 = inlined_call_operand.vmem [shape: f32[1,256], index: 2, kind: input, shape index: {}]   ;;  %s6317_s3 = inlined_call_operand.vmem [shape: f32[1,512], index: 3, kind: input, shape index: {}]   ;;  %s6318_s4 = inlined_call_operand.vmem [shape: f32[1,512], index: 4, kind: input, shape index: {}]   ;;  %s6319_s5 = inlined_call_operand.vmem [shape: f32[1,512], index: 5, kind: input, shape index: {}]   ;;  %s6320_s6 = inlined_call_operand.vmem [shape: f32[1,128], index: 6, kind: input, shape index: {}]   ;;  %s6321_s7 = inlined_call_operand.hbm [shape: bf16[3,128,512], index: 7, kind: input, shape index: {}]   ;;  %s6322_s8 = inlined_call_operand.hbm [shape: bf16[512,512], index: 8, kind: input, shape index: {}]   ;;  %s6323_s9 = inlined_call_operand.hbm [shape: bf16[512,512], index: 9, kind: input, shape index: {}]   ;;  %s6324_s10 = inlined_call_operand.vmem [shape: bf16[512,128], index: 10, kind: input, shape index: {}]   ;;  %s6325_s11 = inlined_call_operand.hbm [shape: f32[2,128], index: 11, kind: output, shape index: {}]  }
   0x1   :  { %s38_s19 = sshll.u32 %s6321_s7, 4  ;;  %v83_v0 = vld [vmem:[%s6324_s10] sm:$0xff]  ;;  %v85_v1 = vld [vmem:[%s6324_s10 + $0x8] sm:$0xff]  ;;  %s40_s25 = sshll.u32 %s5820_s24, 4  ;;  %v87_v2 = vld [vmem:[%s6324_s10 + $0x10] sm:$0xff]  ;;  %s39_s19 = int_to_ptr.hbm [resolvable:$true] %s38_s19  ;;  %s41_s25 = int_to_ptr.vmem [resolvable:$true] %s40_s25 }
   0x2   :  { %84 = vst [vmem:[#allocation5 + $0xb0] sm:$0xff] %v83_v0  ;;  %v89_v3 = vld [vmem:[%s6324_s10 + $0x18] sm:$0xff]  ;;  %s52_s12 = sshll.u32 %s6322_s8, 4  ;;  %v91_v4 = vld [vmem:[%s6324_s10 + $0x20] sm:$0xff]  ;;  %v93_v5 = vld [vmem:[%s6324_s10 + $0x28] sm:$0xff]  ;;  %s54_s21 = sshll.u32 %s5821_s20, 4  ;;  %s53_s12 = int_to_ptr.hbm [resolvable:$true] %s52_s12  ;;  %s55_s21 = int_to_ptr.vmem [resolvable:$true] %s54_s21 }
   0x3   :  { %86 = vst [vmem:[#allocation5] sm:$0xff] %v85_v1  ;;  %43 = dma.hbm_to_vmem [thread:$0]  %s39_s19, 12288, %s41_s25, [#allocation6]  ;;  %v95_v6 = vld [vmem:[%s6324_s10 + $0x30] sm:$0xff]  ;;  %v97_v7 = vld [vmem:[%s6324_s10 + $0x38] sm:$0xff]  ;;  %v99_v8 = vld [vmem:[%s6324_s10 + $0x40] sm:$0xff] }
   0x4   :  { %88 = vst [vmem:[#allocation5 + $0xd8] sm:$0xff] %v87_v2  ;;  %s66_s23 = sshll.u32 %s6323_s9, 4  ;;  %v101_v9 = vld [vmem:[%s6324_s10 + $0x48] sm:$0xff]  ;;  %v103_v10 = vld [vmem:[%s6324_s10 + $0x50] sm:$0xff]  ;;  %s5822_s7 = smov [#allocation4]   ;;  %v105_v11 = vld [vmem:[%s6324_s10 + $0x58] sm:$0xff]  ;;  %s67_s23 = int_to_ptr.hbm [resolvable:$true] %s66_s23 }
   0x5   :  { %90 = vst [vmem:[#allocation5 + $0x18] sm:$0xff] %v89_v3  ;;  %57 = dma.hbm_to_vmem [thread:$0]  %s53_s12, 16384, %s55_s21, [#allocation6 + $0x1]  ;;  %v107_v12 = vld [vmem:[%s6324_s10 + $0x60] sm:$0xff]  ;;  %v109_v13 = vld [vmem:[%s6324_s10 + $0x68] sm:$0xff]  ;;  %v111_v14 = vld [vmem:[%s6324_s10 + $0x70] sm:$0xff] }
   0x6   :  { %92 = vst [vmem:[#allocation5 + $0x50] sm:$0xff] %v91_v4  ;;  %s68_s30 = sshll.u32 %s5822_s7, 4  ;;  %v113_v15 = vld [vmem:[%s6324_s10 + $0x78] sm:$0xff]  ;;  %v115_v16 = vld [vmem:[%s6324_s10 + $0x80] sm:$0xff]  ;;  %v117_v17 = vld [vmem:[%s6324_s10 + $0x88] sm:$0xff]  ;;  %s69_s30 = int_to_ptr.vmem [resolvable:$true] %s68_s30 }
   0x7   :  { %94 = vst [vmem:[#allocation5 + $0x68] sm:$0xff] %v93_v5  ;;  %71 = dma.hbm_to_vmem [thread:$0]  %s67_s23, 16384, %s69_s30, [#allocation6 + $0x2]  ;;  %v119_v18 = vld [vmem:[%s6324_s10 + $0x90] sm:$0xff]  ;;  %v121_v19 = vld [vmem:[%s6324_s10 + $0x98] sm:$0xff]  ;;  %v123_v20 = vld [vmem:[%s6324_s10 + $0xa0] sm:$0xff] }
   0x8   :  { %96 = vst [vmem:[#allocation5 + $0x30] sm:$0xff] %v95_v6  ;;  %v125_v21 = vld [vmem:[%s6324_s10 + $0xa8] sm:$0xff]  ;;  %v127_v22 = vld [vmem:[%s6324_s10 + $0xb0] sm:$0xff]  ;;  %v129_v23 = vld [vmem:[%s6324_s10 + $0xb8] sm:$0xff] }
   0x9   :  { %98 = vst [vmem:[#allocation5 + $0x48] sm:$0xff] %v97_v7  ;;  %v131_v24 = vld [vmem:[%s6324_s10 + $0xc0] sm:$0xff]  ;;  %v133_v25 = vld [vmem:[%s6324_s10 + $0xc8] sm:$0xff]  ;;  %v135_v26 = vld [vmem:[%s6324_s10 + $0xd0] sm:$0xff] }
   0xa   :  { %100 = vst [vmem:[#allocation5 + $0x80] sm:$0xff] %v99_v8  ;;  %v137_v27 = vld [vmem:[%s6324_s10 + $0xd8] sm:$0xff]  ;;  %v139_v28 = vld [vmem:[%s6324_s10 + $0xe0] sm:$0xff]  ;;  %v141_v29 = vld [vmem:[%s6324_s10 + $0xe8] sm:$0xff] }
   0xb   :  { %102 = vst [vmem:[#allocation5 + $0x88] sm:$0xff] %v101_v9  ;;  %v143_v30 = vld [vmem:[%s6324_s10 + $0xf0] sm:$0xff]  ;;  %v145_v31 = vld [vmem:[%s6324_s10 + $0xf8] sm:$0xff] }
   0xc   :  { %104 = vst [vmem:[#allocation5 + $0xe8] sm:$0xff] %v103_v10 }
   0xd   :  { %106 = vst [vmem:[#allocation5 + $0xb8] sm:$0xff] %v105_v11 }
   0xe   :  { %108 = vst [vmem:[#allocation5 + $0x60] sm:$0xff] %v107_v12 }
   0xf   :  { %110 = vst [vmem:[#allocation5 + $0xf0] sm:$0xff] %v109_v13 }
  0x10   :  { %112 = vst [vmem:[#allocation5 + $0x8] sm:$0xff] %v111_v14 }
  0x11   :  { %114 = vst [vmem:[#allocation5 + $0x78] sm:$0xff] %v113_v15 }
  0x12   :  { %116 = vst [vmem:[#allocation5 + $0x38] sm:$0xff] %v115_v16 }
  0x13   :  { %118 = vst [vmem:[#allocation5 + $0x58] sm:$0xff] %v117_v17 }
  0x14   :  { %120 = vst [vmem:[#allocation5 + $0x40] sm:$0xff] %v119_v18 }
  0x15   :  { %122 = vst [vmem:[#allocation5 + $0xc8] sm:$0xff] %v121_v19 }
  0x16   :  { %124 = vst [vmem:[#allocation5 + $0xe0] sm:$0xff] %v123_v20 }
  0x17   :  { %126 = vst [vmem:[#allocation5 + $0x90] sm:$0xff] %v125_v21 }
  0x18   :  { %128 = vst [vmem:[#allocation5 + $0x70] sm:$0xff] %v127_v22 }
  0x19   :  { %130 = vst [vmem:[#allocation5 + $0xc0] sm:$0xff] %v129_v23 }
  0x1a   :  { %132 = vst [vmem:[#allocation5 + $0xa8] sm:$0xff] %v131_v24 }
  0x1b   :  { %134 = vst [vmem:[#allocation5 + $0xd0] sm:$0xff] %v133_v25 }
  0x1c   :  { %136 = vst [vmem:[#allocation5 + $0x10] sm:$0xff] %v135_v26 }
  0x1d   :  { %138 = vst [vmem:[#allocation5 + $0x28] sm:$0xff] %v137_v27 }
  0x1e   :  { %140 = vst [vmem:[#allocation5 + $0xa0] sm:$0xff] %v139_v28 }
  0x1f   :  { %142 = vst [vmem:[#allocation5 + $0xf8] sm:$0xff] %v141_v29 }
  0x20   :  { %144 = vst [vmem:[#allocation5 + $0x20] sm:$0xff] %v143_v30 }
  0x21   :  { %146 = vst [vmem:[#allocation5 + $0x98] sm:$0xff] %v145_v31 }
  0x22   :  { %152 = vsyncadd [#allocation6 + $0x3], 4096  ;;  %v170_v32 = vld [vmem:[%s6315_s1 + $0x70] sm:$0xff]  ;;  %vm267_vm0 = vcmask 1043456   ;;  %v3741_v35 = vld [vmem:[%s6315_s1 + $0x60] sm:$0xf]  ;;  %v348_v30 = vlaneseq }
  0x23   :  { %v228_v33 = vunpack.c.l.b16 %v170_v32  ;;  %v229_v34 = vunpack.c.h.b16 %v170_v32  ;;  %v5323_v38 = vld [vmem:[%s6315_s1 + $0x64] sm:$0xf0]  ;;  %v5322_v39 = vld [vmem:[%s6315_s1 + $0x64] sm:$0xf]  ;;  %v3743_v40 = vld [vmem:[%s6315_s1 + $0x68] sm:$0xf0] }
  0x24   :  { %v3742_v43 = vor.u32 %v5323_v38, %v3741_v35  ;;  %v3746_v44 = vor.u32 %v5322_v39, %v3743_v40  ;;  %v3733_v45 = vld [vmem:[%s6315_s1 + $0x50] sm:$0xf]  ;;  %v5321_v46 = vld [vmem:[%s6315_s1 + $0x54] sm:$0xf0]  ;;  %v5320_v47 = vld [vmem:[%s6315_s1 + $0x54] sm:$0xf] }
  0x25   :  { %v244_v36 = vpack.c.b16 %v228_v33, %v228_v33  ;;  %v245_v37 = vpack.c.b16 %v229_v34, %v229_v34  ;;  %v3735_v48 = vld [vmem:[%s6315_s1 + $0x58] sm:$0xf0]  ;;  %v3734_v49 = vor.u32 %v5321_v46, %v3733_v45  ;;  %v3725_v51 = vld [vmem:[%s6315_s1 + $0x40] sm:$0xf]  ;;  %v5319_v52 = vld [vmem:[%s6315_s1 + $0x44] sm:$0xf0] }
  0x26   :  { %v3738_v50 = vor.u32 %v5320_v47, %v3735_v48  ;;  %v5318_v53 = vld [vmem:[%s6315_s1 + $0x44] sm:$0xf]  ;;  %v3727_v54 = vld [vmem:[%s6315_s1 + $0x48] sm:$0xf0]  ;;  %v3726_v55 = vor.u32 %v5319_v52, %v3725_v51  ;;  %v3717_v57 = vld [vmem:[%s6315_s1 + $0x30] sm:$0xf] }
  0x27   :  { %v269_v41 = vsel %vm267_vm0, %v244_v36, 0  ;;  %v272_v42 = vsel %vm267_vm0, %v245_v37, 0  ;;  %v3730_v56 = vor.u32 %v5318_v53, %v3727_v54  ;;  %v5317_v58 = vld [vmem:[%s6315_s1 + $0x34] sm:$0xf0]  ;;  %v5316_v59 = vld [vmem:[%s6315_s1 + $0x34] sm:$0xf] }
  0x28   :  { %274 = vmatpush.bf16.msra.mxu0 %v269_v41  ;;  %292 = vmatpush.bf16.msra.mxu1 %v272_v42  ;;  %v3719_v60 = vld [vmem:[%s6315_s1 + $0x38] sm:$0xf0]  ;;  %v3718_v61 = vor.u32 %v5317_v58, %v3717_v57  ;;  %v3709_v63 = vld [vmem:[%s6315_s1 + $0x20] sm:$0xf]  ;;  %v5315_v0 = vld [vmem:[%s6315_s1 + $0x24] sm:$0xf0] }
  0x29   :  { %v3722_v62 = vor.u32 %v5316_v59, %v3719_v60  ;;  %v5314_v1 = vld [vmem:[%s6315_s1 + $0x24] sm:$0xf]  ;;  %v3711_v2 = vld [vmem:[%s6315_s1 + $0x28] sm:$0xf0]  ;;  %v3710_v3 = vor.u32 %v5315_v0, %v3709_v63  ;;  %v3701_v5 = vld [vmem:[%s6315_s1 + $0x10] sm:$0xf] }
  0x2a   :  { %v3714_v4 = vor.u32 %v5314_v1, %v3711_v2  ;;  %v5313_v6 = vld [vmem:[%s6315_s1 + $0x14] sm:$0xf0]  ;;  %v5312_v7 = vld [vmem:[%s6315_s1 + $0x14] sm:$0xf]  ;;  %v3703_v8 = vld [vmem:[%s6315_s1 + $0x18] sm:$0xf0] }
  0x2b   :  { %v3702_v9 = vor.u32 %v5313_v6, %v3701_v5  ;;  %v3706_v10 = vor.u32 %v5312_v7, %v3703_v8  ;;  %v3693_v11 = vld [vmem:[%s6315_s1] sm:$0xf]  ;;  %v5311_v12 = vld [vmem:[%s6315_s1 + $0x4] sm:$0xf0]  ;;  %v5310_v13 = vld [vmem:[%s6315_s1 + $0x4] sm:$0xf] }
  0x2c   :  { %275 = vmatpush.bf16.msra.mxu0 %v3742_v43  ;;  %293 = vmatpush.bf16.msra.mxu1 %v3746_v44  ;;  %v3695_v14 = vld [vmem:[%s6315_s1 + $0x8] sm:$0xf0]  ;;  %v3694_v15 = vor.u32 %v5311_v12, %v3693_v11  ;;  %v5309_v17 = vld [vmem:[%s6314_s0] sm:$0xff]  ;;  %vm260_vm1 = vcmask 982016   ;;  %v155_v18 = vld [vmem:[%s6314_s0 + $0x8] sm:$0x3] }
  0x2d   :  { %v3698_v16 = vor.u32 %v5310_v13, %v3695_v14  ;;  %v182_v19 = vunpack.c.l.b16 %v155_v18  ;;  %v171_v21 = vld [vmem:[%s6316_s2] sm:$0x3]  ;;  %vm322_vm2 = vcmask 1046528   ;;  %v349_v37 = vshrl.u32 %v348_v30, 7 }
  0x2e   :  { %v173_v24 = vperm.slane %v171_v21, 0  ;;  %v174_v25 = vperm.slane %v171_v21, 1  ;;  %vm379_vm3 = vcmask 1041408  }
  0x2f   :  { %v184_v20 = vpack.c.b16 %v182_v19, %v182_v19 }
  0x30   :  { %276 = vmatpush.bf16.msra.mxu0 %v3734_v49  ;;  %294 = vmatpush.bf16.msra.mxu1 %v3738_v50  ;;  %v351_v50 = vadd.s32 16, %v349_v37 }
  0x32   :  { %vm363_vm4 = vcmp.lt.s32.totalorder %v351_v50, 18  ;;  %vm366_vm5 = vcmp.ge.s32.totalorder %v351_v50, 20 }
  0x33   :  { %vm369_vm6 = vmor %vm363_vm4, %vm366_vm5 }
  0x34   :  { %277 = vmatpush.bf16.msra.mxu0 %v3726_v55  ;;  %295 = vmatpush.bf16.msra.mxu1 %v3730_v56  ;;  %v350_v55 = vadd.s32 8, %v349_v37 }
  0x36   :  { %vm356_vm7 = vcmp.ge.s32.totalorder %v350_v55, 10 }
  0x38   :  { %278 = vmatpush.bf16.msra.mxu0 %v3718_v61  ;;  %296 = vmatpush.bf16.msra.mxu1 %v3722_v62 }
  0x3c   :  { %279 = vmatpush.bf16.msra.mxu0 %v3710_v3  ;;  %297 = vmatpush.bf16.msra.mxu1 %v3714_v4 }
  0x40   :  { %280 = vmatpush.bf16.msra.mxu0 %v3702_v9  ;;  %298 = vmatpush.bf16.msra.mxu1 %v3706_v10 }
  0x44   :  { %281 = vmatpush.bf16.msra.mxu0 %v3694_v15  ;;  %299 = vmatpush.bf16.msra.mxu1 %v3698_v16 }
  0x47   :  { %3747 = vmatmul.msk.bf16.vlgmr.msra.gmra.mxu0 %vm260_vm1, %v5309_v17  ;;  %3749 = vmatmul.msk.bf16.vlgmr.msra.gmra.mxu1 %vm260_vm1, %v5309_v17 }
  0x57   :  { %3748 = vmatmul.msk.bf16.gmra.mxu0 %vm260_vm1, %v184_v20  ;;  %3750 = vmatmul.msk.bf16.gmra.mxu1 %vm260_vm1, %v184_v20 }
  0xc4   :  { %v283_v22 = vpop.f32.mrf.mxu0  ;;  %v301_v23 = vpop.f32.mrf.mxu1 }
  0xc5   :  { %v284_v26 = vadd.f32 %v283_v22, %v173_v24  ;;  %v302_v27 = vadd.f32 %v301_v23, %v174_v25 }
  0xc7   :  { %v310_v31 = vmax.f32 %v284_v26, 0.0  ;;  %v311_v32 = vmax.f32 %v302_v27, 0.0 }
  0xc9   :  { %v323_v38 = vrot.slane %v310_v31, 1  ;;  %v326_v39 = vrot.slane %v311_v32, 1 }
  0xcc   :  { %v285_v28 = vpop.f32.mrf.mxu0  ;;  %v303_v29 = vpop.f32.mrf.mxu1 }
  0xcd   :  { %v286_v33 = vadd.f32 %v285_v28, %v173_v24  ;;  %v304_v34 = vadd.f32 %v303_v29, %v174_v25 }
  0xcf   :  { %v312_v35 = vmax.f32 %v286_v33, 0.0  ;;  %v313_v36 = vmax.f32 %v304_v34, 0.0 }
  0xd1   :  { %v324_v40 = vrot.slane %v312_v35, 1  ;;  %v327_v41 = vrot.slane %v313_v36, 1 }
  0xd3   :  { %v325_v42 = vsel %vm322_vm2, %v323_v38, %v324_v40  ;;  %v328_v43 = vsel %vm322_vm2, %v326_v39, %v327_v41 }
  0xd4   :  { %v339_v44 = vmax.f32 %v310_v31, %v325_v42  ;;  %v340_v45 = vmax.f32 %v311_v32, %v328_v43  ;;  %v288_v46 = vpop.f32.mrf.mxu0  ;;  %v306_v47 = vpop.f32.mrf.mxu1 }
  0xd5   :  { %v289_v48 = vadd.f32 %v288_v46, %v173_v24  ;;  %v307_v49 = vadd.f32 %v306_v47, %v174_v25 }
  0xd6   :  { %v345_v51 = vmax.f32 %v339_v44, %v340_v45 }
  0xd7   :  { %v314_v52 = vmax.f32 %v289_v48, 0.0  ;;  %v315_v53 = vmax.f32 %v307_v49, 0.0 }
  0xd8   :  { %v6088_v54 = vrot.slane %v345_v51, 6 }
  0xd9   :  { %v329_v56 = vrot.slane %v314_v52, 1  ;;  %v331_v57 = vrot.slane %v315_v53, 1 }
  0xda   :  { %v6092_v58 = vsel %vm379_vm3, 0.0, %v6088_v54 }
  0xdb   :  { %v330_v59 = vsel %vm322_vm2, %v324_v40, %v329_v56  ;;  %v343_v60 = vmax.f32 %v314_v52, %v329_v56  ;;  %v332_v61 = vsel %vm322_vm2, %v327_v41, %v331_v57  ;;  %v344_v62 = vmax.f32 %v315_v53, %v331_v57 }
  0xdc   :  { %v341_v63 = vmax.f32 %v312_v35, %v330_v59  ;;  %v342_v0 = vmax.f32 %v313_v36, %v332_v61  ;;  %v290_v1 = vpop.f32.mrf.mxu0  ;;  %v308_v2 = vpop.f32.mrf.mxu1 }
  0xdd   :  { %v347_v3 = vmax.f32 %v343_v60, %v344_v62 }
  0xde   :  { %v346_v4 = vmax.f32 %v341_v63, %v342_v0 }
  0xdf   :  { %v375_v5 = vsel %vm369_vm6, %v347_v3, 0.0 }
  0xe0   :  { %v374_v6 = vsel %vm356_vm7, %v346_v4, 0.0  ;;  %v383_v7 = vrot.slane %v375_v5, 6 }
  0xe1   :  { %v381_v8 = vrot.slane %v374_v6, 6 }
  0xe3   :  { %v6098_v9 = vsel %vm379_vm3, %v6088_v54, %v381_v8  ;;  %v6101_v10 = vsel %vm379_vm3, %v381_v8, %v383_v7 }
  0xe4   :  { %5810 = dma.done.wait [#allocation6], 12288 }
  0xe5   :  { %5811 = vsyncadd [#allocation6], 4294955008  ;;  %v3865_v11 = vld [vmem:[#allocation2 + $0x1e0] sm:$0xf]  ;;  %v5386_v12 = vld [vmem:[#allocation2 + $0x1ec] sm:$0xf0] }
  0xe6   :  { %v5384_v13 = vld [vmem:[#allocation2 + $0x1e4] sm:$0xf]  ;;  %v3866_v14 = vor.u32 %v5386_v12, %v3865_v11  ;;  %v3867_v15 = vld [vmem:[#allocation2 + $0x1f0] sm:$0xf0]  ;;  %v3873_v16 = vld [vmem:[#allocation2 + $0x1e8] sm:$0xf] }
  0xe7   :  { %v5387_v17 = vld [vmem:[#allocation2 + $0x1f4] sm:$0xf0]  ;;  %v3870_v18 = vor.u32 %v5384_v13, %v3867_v15  ;;  %v5385_v20 = vld [vmem:[#allocation2 + $0x1ec] sm:$0xf]  ;;  %v3875_v21 = vld [vmem:[#allocation2 + $0x1f8] sm:$0xf0] }
  0xe8   :  { %v3874_v19 = vor.u32 %v5387_v17, %v3873_v16  ;;  %v3849_v22 = vld [vmem:[#allocation2 + $0x1c0] sm:$0xf]  ;;  %629 = vmatpush.bf16.msra.mxu2 %v3866_v14  ;;  %v3878_v23 = vor.u32 %v5385_v20, %v3875_v21  ;;  %v5382_v24 = vld [vmem:[#allocation2 + $0x1cc] sm:$0xf0]  ;;  %v5380_v25 = vld [vmem:[#allocation2 + $0x1c4] sm:$0xf] }
  0xe9   :  { %v3851_v26 = vld [vmem:[#allocation2 + $0x1d0] sm:$0xf0]  ;;  %647 = vmatpush.bf16.msra.mxu3 %v3870_v18  ;;  %v3850_v27 = vor.u32 %v5382_v24, %v3849_v22  ;;  %v3857_v29 = vld [vmem:[#allocation2 + $0x1c8] sm:$0xf]  ;;  %v5383_v30 = vld [vmem:[#allocation2 + $0x1d4] sm:$0xf0] }
  0xea   :  { %665 = vmatpush.bf16.msrb.mxu0 %v3874_v19  ;;  %v3854_v28 = vor.u32 %v5380_v25, %v3851_v26  ;;  %v5381_v31 = vld [vmem:[#allocation2 + $0x1cc] sm:$0xf]  ;;  %683 = vmatpush.bf16.msrb.mxu1 %v3878_v23  ;;  %v3858_v32 = vor.u32 %v5383_v30, %v3857_v29  ;;  %v3859_v33 = vld [vmem:[#allocation2 + $0x1d8] sm:$0xf0]  ;;  %v3833_v34 = vld [vmem:[#allocation2 + $0x1a0] sm:$0xf] }
  0xeb   :  { %v5378_v35 = vld [vmem:[#allocation2 + $0x1ac] sm:$0xf0]  ;;  %v3862_v36 = vor.u32 %v5381_v31, %v3859_v33  ;;  %v5376_v37 = vld [vmem:[#allocation2 + $0x1a4] sm:$0xf]  ;;  %v3835_v38 = vld [vmem:[#allocation2 + $0x1b0] sm:$0xf0]  ;;  %v6105_v33 = vpack.c.bf16 %v6098_v9, %v6092_v58 }
  0xec   :  { %v3841_v39 = vld [vmem:[#allocation2 + $0x1a8] sm:$0xf]  ;;  %630 = vmatpush.bf16.msra.mxu2 %v3850_v27  ;;  %v3834_v40 = vor.u32 %v5378_v35, %v3833_v34  ;;  %v5379_v41 = vld [vmem:[#allocation2 + $0x1b4] sm:$0xf0]  ;;  %v5377_v42 = vld [vmem:[#allocation2 + $0x1ac] sm:$0xf]  ;;  %v3838_v44 = vor.u32 %v5376_v37, %v3835_v38  ;;  %v6109_v34 = vpack.c.bf16 %v6101_v10, %v6101_v10 }
  0xed   :  { %v3843_v43 = vld [vmem:[#allocation2 + $0x1b8] sm:$0xf0]  ;;  %648 = vmatpush.bf16.msra.mxu3 %v3854_v28  ;;  %v3842_v45 = vor.u32 %v5379_v41, %v3841_v39  ;;  %v3817_v46 = vld [vmem:[#allocation2 + $0x180] sm:$0xf]  ;;  %v5374_v47 = vld [vmem:[#allocation2 + $0x18c] sm:$0xf0] }
  0xee   :  { %666 = vmatpush.bf16.msrb.mxu0 %v3858_v32  ;;  %v5372_v48 = vld [vmem:[#allocation2 + $0x184] sm:$0xf]  ;;  %684 = vmatpush.bf16.msrb.mxu1 %v3862_v36  ;;  %v3846_v49 = vor.u32 %v5377_v42, %v3843_v43  ;;  %v3819_v50 = vld [vmem:[#allocation2 + $0x190] sm:$0xf0]  ;;  %v3825_v51 = vld [vmem:[#allocation2 + $0x188] sm:$0xf]  ;;  %v3818_v56 = vor.u32 %v5374_v47, %v3817_v46 }
  0xef   :  { %v5375_v52 = vld [vmem:[#allocation2 + $0x194] sm:$0xf0]  ;;  %v5373_v53 = vld [vmem:[#allocation2 + $0x18c] sm:$0xf]  ;;  %v3827_v55 = vld [vmem:[#allocation2 + $0x198] sm:$0xf0]  ;;  %v3822_v57 = vor.u32 %v5372_v48, %v3819_v50 }
  0xf0   :  { %631 = vmatpush.bf16.msra.mxu2 %v3834_v40  ;;  %v3826_v59 = vor.u32 %v5375_v52, %v3825_v51  ;;  %v3801_v60 = vld [vmem:[#allocation2 + $0x160] sm:$0xf]  ;;  %v5370_v61 = vld [vmem:[#allocation2 + $0x16c] sm:$0xf0]  ;;  %v5368_v62 = vld [vmem:[#allocation2 + $0x164] sm:$0xf]  ;;  %v3830_v63 = vor.u32 %v5373_v53, %v3827_v55 }
  0xf1   :  { %649 = vmatpush.bf16.msra.mxu3 %v3838_v44  ;;  %v3803_v0 = vld [vmem:[#allocation2 + $0x170] sm:$0xf0]  ;;  %v3809_v1 = vld [vmem:[#allocation2 + $0x168] sm:$0xf]  ;;  %v5371_v2 = vld [vmem:[#allocation2 + $0x174] sm:$0xf0]  ;;  %v3802_v5 = vor.u32 %v5370_v61, %v3801_v60 }
  0xf2   :  { %667 = vmatpush.bf16.msrb.mxu0 %v3842_v45  ;;  %685 = vmatpush.bf16.msrb.mxu1 %v3846_v49  ;;  %v5369_v3 = vld [vmem:[#allocation2 + $0x16c] sm:$0xf]  ;;  %v3811_v4 = vld [vmem:[#allocation2 + $0x178] sm:$0xf0]  ;;  %v3806_v6 = vor.u32 %v5368_v62, %v3803_v0  ;;  %v3810_v7 = vor.u32 %v5371_v2, %v3809_v1  ;;  %v3785_v8 = vld [vmem:[#allocation2 + $0x140] sm:$0xf] }
  0xf3   :  { %v5366_v11 = vld [vmem:[#allocation2 + $0x14c] sm:$0xf0]  ;;  %v5364_v12 = vld [vmem:[#allocation2 + $0x144] sm:$0xf]  ;;  %v3814_v13 = vor.u32 %v5369_v3, %v3811_v4  ;;  %v3787_v14 = vld [vmem:[#allocation2 + $0x150] sm:$0xf0] }
  0xf4   :  { %632 = vmatpush.bf16.msra.mxu2 %v3818_v56  ;;  %v3793_v15 = vld [vmem:[#allocation2 + $0x148] sm:$0xf]  ;;  %v5367_v16 = vld [vmem:[#allocation2 + $0x154] sm:$0xf0]  ;;  %v5365_v17 = vld [vmem:[#allocation2 + $0x14c] sm:$0xf]  ;;  %v3786_v19 = vor.u32 %v5366_v11, %v3785_v8  ;;  %v3790_v20 = vor.u32 %v5364_v12, %v3787_v14 }
  0xf5   :  { %650 = vmatpush.bf16.msra.mxu3 %v3822_v57  ;;  %v3795_v18 = vld [vmem:[#allocation2 + $0x158] sm:$0xf0]  ;;  %v3794_v21 = vor.u32 %v5367_v16, %v3793_v15  ;;  %v3769_v22 = vld [vmem:[#allocation2 + $0x120] sm:$0xf]  ;;  %v5362_v23 = vld [vmem:[#allocation2 + $0x12c] sm:$0xf0] }
  0xf6   :  { %668 = vmatpush.bf16.msrb.mxu0 %v3826_v59  ;;  %686 = vmatpush.bf16.msrb.mxu1 %v3830_v63  ;;  %v5360_v24 = vld [vmem:[#allocation2 + $0x124] sm:$0xf]  ;;  %v3798_v25 = vor.u32 %v5365_v17, %v3795_v18  ;;  %v3771_v26 = vld [vmem:[#allocation2 + $0x130] sm:$0xf0]  ;;  %v3777_v27 = vld [vmem:[#allocation2 + $0x128] sm:$0xf]  ;;  %v3770_v31 = vor.u32 %v5362_v23, %v3769_v22 }
  0xf7   :  { %v5363_v28 = vld [vmem:[#allocation2 + $0x134] sm:$0xf0]  ;;  %v5361_v29 = vld [vmem:[#allocation2 + $0x12c] sm:$0xf]  ;;  %v3779_v30 = vld [vmem:[#allocation2 + $0x138] sm:$0xf0]  ;;  %v3774_v35 = vor.u32 %v5360_v24, %v3771_v26 }
  0xf8   :  { %633 = vmatpush.bf16.msra.mxu2 %v3802_v5  ;;  %v3753_v32 = vld [vmem:[#allocation2 + $0x100] sm:$0xf]  ;;  %v3778_v36 = vor.u32 %v5363_v28, %v3777_v27  ;;  %v5358_v37 = vld [vmem:[#allocation2 + $0x10c] sm:$0xf0]  ;;  %v5356_v38 = vld [vmem:[#allocation2 + $0x104] sm:$0xf]  ;;  %v3782_v40 = vor.u32 %v5361_v29, %v3779_v30 }
  0xf9   :  { %651 = vmatpush.bf16.msra.mxu3 %v3806_v6  ;;  %v3755_v39 = vld [vmem:[#allocation2 + $0x110] sm:$0xf0]  ;;  %v3761_v41 = vld [vmem:[#allocation2 + $0x108] sm:$0xf]  ;;  %v5359_v42 = vld [vmem:[#allocation2 + $0x114] sm:$0xf0]  ;;  %v3754_v46 = vor.u32 %v5358_v37, %v3753_v32 }
  0xfa   :  { %669 = vmatpush.bf16.msrb.mxu0 %v3810_v7  ;;  %687 = vmatpush.bf16.msrb.mxu1 %v3814_v13  ;;  %v5357_v43 = vld [vmem:[#allocation2 + $0x10c] sm:$0xf]  ;;  %v3763_v44 = vld [vmem:[#allocation2 + $0x118] sm:$0xf0]  ;;  %v3993_v45 = vld [vmem:[#allocation2 + $0xe0] sm:$0xf]  ;;  %v3758_v50 = vor.u32 %v5356_v38, %v3755_v39  ;;  %v3762_v51 = vor.u32 %v5359_v42, %v3761_v41 }
  0xfb   :  { %v5354_v58 = vld [vmem:[#allocation2 + $0xec] sm:$0xf0]  ;;  %v464_v10 = vrot.slane %v6105_v33, 1  ;;  %v6113_v47 = vrot.slane %v6109_v34, 1  ;;  %v5352_v48 = vld [vmem:[#allocation2 + $0xe4] sm:$0xf]  ;;  %v3766_v52 = vor.u32 %v5357_v43, %v3763_v44  ;;  %vm6122_vm8 = vmneg %vm379_vm3 }
  0xfc   :  { %634 = vmatpush.bf16.msra.mxu2 %v3786_v19  ;;  %v3995_v49 = vld [vmem:[#allocation2 + $0xf0] sm:$0xf0]  ;;  %v3994_v53 = vor.u32 %v5354_v58, %v3993_v45  ;;  %v4001_v55 = vld [vmem:[#allocation2 + $0xe8] sm:$0xf]  ;;  %v5355_v56 = vld [vmem:[#allocation2 + $0xf4] sm:$0xf0] }
  0xfd   :  { %652 = vmatpush.bf16.msra.mxu3 %v3790_v20  ;;  %v5353_v57 = vld [vmem:[#allocation2 + $0xec] sm:$0xf]  ;;  %v3998_v59 = vor.u32 %v5352_v48, %v3995_v49  ;;  %v4003_v60 = vld [vmem:[#allocation2 + $0xf8] sm:$0xf0]  ;;  %v3977_v61 = vld [vmem:[#allocation2 + $0xc0] sm:$0xf]  ;;  %v466_v63 = vsel %vm322_vm2, %v464_v10, %v6113_v47  ;;  %v4002_v2 = vor.u32 %v5355_v56, %v4001_v55 }
  0xfe   :  { %670 = vmatpush.bf16.msrb.mxu0 %v3794_v21  ;;  %688 = vmatpush.bf16.msrb.mxu1 %v3798_v25  ;;  %v5350_v62 = vld [vmem:[#allocation2 + $0xcc] sm:$0xf0]  ;;  %v5348_v0 = vld [vmem:[#allocation2 + $0xc4] sm:$0xf]  ;;  %v3979_v1 = vld [vmem:[#allocation2 + $0xd0] sm:$0xf0]  ;;  %v4006_v3 = vor.u32 %v5353_v57, %v4003_v60 }
  0xff   :  { %v3978_v4 = vor.u32 %v5350_v62, %v3977_v61  ;;  %v3985_v5 = vld [vmem:[#allocation2 + $0xc8] sm:$0xf]  ;;  %v5351_v6 = vld [vmem:[#allocation2 + $0xd4] sm:$0xf0]  ;;  %v5349_v7 = vld [vmem:[#allocation2 + $0xcc] sm:$0xf]  ;;  %v3982_v8 = vor.u32 %v5348_v0, %v3979_v1 }
 0x100   :  { %635 = vmatpush.bf16.msra.mxu2 %v3770_v31  ;;  %v3987_v11 = vld [vmem:[#allocation2 + $0xd8] sm:$0xf0]  ;;  %v3961_v12 = vld [vmem:[#allocation2 + $0xa0] sm:$0xf]  ;;  %v5346_v13 = vld [vmem:[#allocation2 + $0xac] sm:$0xf0]  ;;  %v3986_v16 = vor.u32 %v5351_v6, %v3985_v5 }
 0x101   :  { %653 = vmatpush.bf16.msra.mxu3 %v3774_v35  ;;  %v5344_v14 = vld [vmem:[#allocation2 + $0xa4] sm:$0xf]  ;;  %v3963_v15 = vld [vmem:[#allocation2 + $0xb0] sm:$0xf0]  ;;  %v3990_v17 = vor.u32 %v5349_v7, %v3987_v11  ;;  %v3962_v18 = vor.u32 %v5346_v13, %v3961_v12  ;;  %v3969_v19 = vld [vmem:[#allocation2 + $0xa8] sm:$0xf] }
 0x102   :  { %671 = vmatpush.bf16.msrb.mxu0 %v3778_v36  ;;  %689 = vmatpush.bf16.msrb.mxu1 %v3782_v40  ;;  %v5347_v20 = vld [vmem:[#allocation2 + $0xb4] sm:$0xf0]  ;;  %v5345_v21 = vld [vmem:[#allocation2 + $0xac] sm:$0xf]  ;;  %v3966_v22 = vor.u32 %v5344_v14, %v3963_v15  ;;  %v3971_v23 = vld [vmem:[#allocation2 + $0xb8] sm:$0xf0] }
 0x103   :  { %v3945_v24 = vld [vmem:[#allocation2 + $0x80] sm:$0xf]  ;;  %v5342_v25 = vld [vmem:[#allocation2 + $0x8c] sm:$0xf0]  ;;  %v5340_v26 = vld [vmem:[#allocation2 + $0x84] sm:$0xf]  ;;  %v3970_v28 = vor.u32 %v5347_v20, %v3969_v19  ;;  %v3974_v29 = vor.u32 %v5345_v21, %v3971_v23 }
 0x104   :  { %636 = vmatpush.bf16.msra.mxu2 %v3754_v46  ;;  %v3947_v27 = vld [vmem:[#allocation2 + $0x90] sm:$0xf0]  ;;  %v3946_v30 = vor.u32 %v5342_v25, %v3945_v24  ;;  %v3953_v31 = vld [vmem:[#allocation2 + $0x88] sm:$0xf]  ;;  %v5343_v32 = vld [vmem:[#allocation2 + $0x94] sm:$0xf0] }
 0x105   :  { %654 = vmatpush.bf16.msra.mxu3 %v3758_v50  ;;  %v5341_v35 = vld [vmem:[#allocation2 + $0x8c] sm:$0xf]  ;;  %v3950_v36 = vor.u32 %v5340_v26, %v3947_v27  ;;  %v3955_v37 = vld [vmem:[#allocation2 + $0x98] sm:$0xf0]  ;;  %v3929_v38 = vld [vmem:[#allocation2 + $0x60] sm:$0xf]  ;;  %v3954_v42 = vor.u32 %v5343_v32, %v3953_v31 }
 0x106   :  { %672 = vmatpush.bf16.msrb.mxu0 %v3762_v51  ;;  %690 = vmatpush.bf16.msrb.mxu1 %v3766_v52  ;;  %v5338_v39 = vld [vmem:[#allocation2 + $0x6c] sm:$0xf0]  ;;  %v5336_v40 = vld [vmem:[#allocation2 + $0x64] sm:$0xf]  ;;  %v3931_v41 = vld [vmem:[#allocation2 + $0x70] sm:$0xf0]  ;;  %v3958_v43 = vor.u32 %v5341_v35, %v3955_v37 }
 0x107   :  { %637 = vmatmul.bf16.vlgmr.msra.gmra.mxu2 %v466_v63  ;;  %v3930_v44 = vor.u32 %v5338_v39, %v3929_v38  ;;  %v3937_v45 = vld [vmem:[#allocation2 + $0x68] sm:$0xf]  ;;  %v5339_v58 = vld [vmem:[#allocation2 + $0x74] sm:$0xf0]  ;;  %v5337_v46 = vld [vmem:[#allocation2 + $0x6c] sm:$0xf]  ;;  %v3934_v10 = vor.u32 %v5336_v40, %v3931_v41 }
 0x108   :  { %861 = vmatpush.bf16.msrb.mxu2 %v3994_v53  ;;  %655 = vmatmul.bf16.vlgmr.msra.gmra.mxu3 %v466_v63  ;;  %v3939_v48 = vld [vmem:[#allocation2 + $0x78] sm:$0xf0]  ;;  %v3913_v49 = vld [vmem:[#allocation2 + $0x40] sm:$0xf]  ;;  %v5334_v50 = vld [vmem:[#allocation2 + $0x4c] sm:$0xf0]  ;;  %v3938_v53 = vor.u32 %v5339_v58, %v3937_v45 }
 0x109   :  { %879 = vmatpush.bf16.msrb.mxu3 %v3998_v59  ;;  %673 = vmatmul.bf16.vlgmr.msrb.gmra.mxu0 %v466_v63  ;;  %v5332_v51 = vld [vmem:[#allocation2 + $0x44] sm:$0xf]  ;;  %v3915_v52 = vld [vmem:[#allocation2 + $0x50] sm:$0xf0]  ;;  %v3942_v55 = vor.u32 %v5337_v46, %v3939_v48  ;;  %v3914_v56 = vor.u32 %v5334_v50, %v3913_v49  ;;  %v3921_v57 = vld [vmem:[#allocation2 + $0x48] sm:$0xf] }
 0x10a   :  { %691 = vmatmul.bf16.vlgmr.msrb.gmra.mxu1 %v466_v63  ;;  %897 = vmatpush.bf16.msra.mxu0 %v4002_v2  ;;  %v5335_v59 = vld [vmem:[#allocation2 + $0x54] sm:$0xf0]  ;;  %v5333_v60 = vld [vmem:[#allocation2 + $0x4c] sm:$0xf]  ;;  %v3918_v61 = vor.u32 %v5332_v51, %v3915_v52  ;;  %v3923_v62 = vld [vmem:[#allocation2 + $0x58] sm:$0xf0] }
 0x10b   :  { %915 = vmatpush.bf16.msra.mxu1 %v4006_v3  ;;  %v3897_v63 = vld [vmem:[#allocation2 + $0x20] sm:$0xf]  ;;  %v5330_v0 = vld [vmem:[#allocation2 + $0x2c] sm:$0xf0]  ;;  %v5328_v1 = vld [vmem:[#allocation2 + $0x24] sm:$0xf]  ;;  %v3922_v3 = vor.u32 %v5335_v59, %v3921_v57  ;;  %v3926_v5 = vor.u32 %v5333_v60, %v3923_v62 }
 0x10c   :  { %862 = vmatpush.bf16.msrb.mxu2 %v3978_v4  ;;  %v3899_v2 = vld [vmem:[#allocation2 + $0x30] sm:$0xf0]  ;;  %v3905_v4 = vld [vmem:[#allocation2 + $0x28] sm:$0xf]  ;;  %v3898_v6 = vor.u32 %v5330_v0, %v3897_v63  ;;  %v5331_v7 = vld [vmem:[#allocation2 + $0x34] sm:$0xf0] }
 0x10d   :  { %880 = vmatpush.bf16.msrb.mxu3 %v3982_v8  ;;  %v5329_v8 = vld [vmem:[#allocation2 + $0x2c] sm:$0xf]  ;;  %v3907_v11 = vld [vmem:[#allocation2 + $0x38] sm:$0xf0]  ;;  %v3902_v12 = vor.u32 %v5328_v1, %v3899_v2  ;;  %v3881_v13 = vld [vmem:[#allocation2] sm:$0xf] }
 0x10e   :  { %898 = vmatpush.bf16.msra.mxu0 %v3986_v16  ;;  %v5326_v14 = vld [vmem:[#allocation2 + $0xc] sm:$0xf0]  ;;  %v5324_v15 = vld [vmem:[#allocation2 + $0x4] sm:$0xf]  ;;  %v3883_v16 = vld [vmem:[#allocation2 + $0x10] sm:$0xf0]  ;;  %v3910_v21 = vor.u32 %v5329_v8, %v3907_v11 }
 0x10f   :  { %916 = vmatpush.bf16.msra.mxu1 %v3990_v17  ;;  %v4137_v17 = vld [vmem:[#allocation2 + $0x2e0] sm:$0xf]  ;;  %v5416_v19 = vld [vmem:[#allocation2 + $0x2e4] sm:$0xf]  ;;  %v4139_v20 = vld [vmem:[#allocation2 + $0x2f0] sm:$0xf0]  ;;  %v3886_v26 = vor.u32 %v5324_v15, %v3883_v16 }
 0x110   :  { %863 = vmatpush.bf16.msrb.mxu2 %v3962_v18  ;;  %v5418_v18 = vld [vmem:[#allocation2 + $0x2ec] sm:$0xf0]  ;;  %v3889_v23 = vld [vmem:[#allocation2 + $0x8] sm:$0xf]  ;;  %v5327_v24 = vld [vmem:[#allocation2 + $0x14] sm:$0xf0]  ;;  %v4142_v31 = vor.u32 %v5416_v19, %v4139_v20 }
 0x111   :  { %881 = vmatpush.bf16.msrb.mxu3 %v3966_v22  ;;  %v3882_v22 = vor.u32 %v5326_v14, %v3881_v13  ;;  %v5325_v25 = vld [vmem:[#allocation2 + $0xc] sm:$0xf]  ;;  %v3891_v27 = vld [vmem:[#allocation2 + $0x18] sm:$0xf0]  ;;  %v4121_v40 = vld [vmem:[#allocation2 + $0x2c0] sm:$0xf] }
 0x112   :  { %899 = vmatpush.bf16.msra.mxu0 %v3970_v28  ;;  %v4138_v28 = vor.u32 %v5418_v18, %v4137_v17  ;;  %v5417_v32 = vld [vmem:[#allocation2 + $0x2ec] sm:$0xf]  ;;  %v4147_v35 = vld [vmem:[#allocation2 + $0x2f8] sm:$0xf0]  ;;  %v3894_v38 = vor.u32 %v5325_v25, %v3891_v27  ;;  %v5414_v41 = vld [vmem:[#allocation2 + $0x2cc] sm:$0xf0] }
 0x113   :  { %917 = vmatpush.bf16.msra.mxu1 %v3974_v29  ;;  %v4145_v29 = vld [vmem:[#allocation2 + $0x2e8] sm:$0xf]  ;;  %v4123_v45 = vld [vmem:[#allocation2 + $0x2d0] sm:$0xf0]  ;;  %v5415_v46 = vld [vmem:[#allocation2 + $0x2d4] sm:$0xf0]  ;;  %v4122_v50 = vor.u32 %v5414_v41, %v4121_v40 }
 0x114   :  { %864 = vmatpush.bf16.msrb.mxu2 %v3946_v30  ;;  %v5419_v30 = vld [vmem:[#allocation2 + $0x2f4] sm:$0xf0]  ;;  %v4129_v58 = vld [vmem:[#allocation2 + $0x2c8] sm:$0xf]  ;;  %vm5823_vm9 = vmmov 1   ;;  %vm966_vm11 = vcmask 1045504  }
 0x115   :  { %882 = vmatpush.bf16.msrb.mxu3 %v3950_v36  ;;  %v3890_v36 = vor.u32 %v5327_v24, %v3889_v23  ;;  %v4146_v39 = vor.u32 %v5419_v30, %v4145_v29  ;;  %vm6130_vm10 = vmpackc.low %vm5823_vm9, %vm6122_vm8  ;;  %v5413_v48 = vld [vmem:[#allocation2 + $0x2cc] sm:$0xf]  ;;  %v4131_v49 = vld [vmem:[#allocation2 + $0x2d8] sm:$0xf0]  ;;  %vm1321_vm12 = vcmask 1040384  }
 0x116   :  { %900 = vmatpush.bf16.msra.mxu0 %v3954_v42  ;;  %v5412_v42 = vld [vmem:[#allocation2 + $0x2c4] sm:$0xf]  ;;  %v4105_v51 = vld [vmem:[#allocation2 + $0x2a0] sm:$0xf]  ;;  %v5410_v52 = vld [vmem:[#allocation2 + $0x2ac] sm:$0xf0]  ;;  %v4134_v57 = vor.u32 %v5413_v48, %v4131_v49 }
 0x117   :  { %918 = vmatpush.bf16.msra.mxu1 %v3958_v43  ;;  %642 = vmatmul.bf16.gmra.mxu2 %v6113_v47  ;;  %v4009_v43 = vpack.c.bf16 %v6098_v9, %v6088_v54  ;;  %v4126_v54 = vor.u32 %v5412_v42, %v4123_v45  ;;  %v4130_v9 = vor.u32 %v5415_v46, %v4129_v58  ;;  %v4113_v59 = vld [vmem:[#allocation2 + $0x2a8] sm:$0xf]  ;;  %v5411_v60 = vld [vmem:[#allocation2 + $0x2b4] sm:$0xf0]  ;;  %v5409_v62 = vld [vmem:[#allocation2 + $0x2ac] sm:$0xf] }
 0x118   :  { %865 = vmatpush.bf16.msrb.mxu2 %v3930_v44  ;;  %660 = vmatmul.bf16.gmra.mxu3 %v6113_v47  ;;  %v4150_v44 = vor.u32 %v5417_v32, %v4147_v35  ;;  %v4115_v63 = vld [vmem:[#allocation2 + $0x2b8] sm:$0xf0]  ;;  %v4114_v2 = vor.u32 %v5411_v60, %v4113_v59  ;;  %v4097_v8 = vld [vmem:[#allocation2 + $0x288] sm:$0xf]  ;;  %v5407_v11 = vld [vmem:[#allocation2 + $0x294] sm:$0xf0] }
 0x119   :  { %883 = vmatpush.bf16.msrb.mxu3 %v3934_v10  ;;  %678 = vmatmul.bf16.gmra.mxu0 %v6113_v47  ;;  %v4099_v13 = vld [vmem:[#allocation2 + $0x298] sm:$0xf0]  ;;  %v4098_v16 = vor.u32 %v5407_v11, %v4097_v8  ;;  %v4073_v17 = vld [vmem:[#allocation2 + $0x260] sm:$0xf]  ;;  %v5402_v18 = vld [vmem:[#allocation2 + $0x26c] sm:$0xf0] }
 0x11a   :  { %696 = vmatmul.bf16.gmra.mxu1 %v6113_v47  ;;  %901 = vmatpush.bf16.msra.mxu0 %v3938_v53  ;;  %v3906_v47 = vor.u32 %v5331_v7, %v3905_v4  ;;  %v5408_v53 = vld [vmem:[#allocation2 + $0x2a4] sm:$0xf]  ;;  %v5406_v4 = vld [vmem:[#allocation2 + $0x28c] sm:$0xf0]  ;;  %v4091_v7 = vld [vmem:[#allocation2 + $0x290] sm:$0xf0]  ;;  %v4074_v25 = vor.u32 %v5402_v18, %v4073_v17 }
 0x11b   :  { %919 = vmatpush.bf16.msra.mxu1 %v3942_v55  ;;  %v4107_v55 = vld [vmem:[#allocation2 + $0x2b0] sm:$0xf0]  ;;  %v5401_v23 = vld [vmem:[#allocation2 + $0x26c] sm:$0xf]  ;;  %v4083_v24 = vld [vmem:[#allocation2 + $0x278] sm:$0xf0] }
 0x11c   :  { %866 = vmatpush.bf16.msrb.mxu2 %v3914_v56  ;;  %v967_v56 = vrot.slane %v6105_v33, 2  ;;  %v4106_v33 = vor.u32 %v5410_v52, %v4105_v51  ;;  %v4110_v1 = vor.u32 %v5408_v53, %v4107_v55  ;;  %v4075_v20 = vld [vmem:[#allocation2 + $0x270] sm:$0xf0]  ;;  %v5398_v29 = vld [vmem:[#allocation2 + $0x24c] sm:$0xf0] }
 0x11d   :  { %884 = vmatpush.bf16.msrb.mxu3 %v3918_v61  ;;  %v6138_v61 = vrot.slane %v6109_v34, 2  ;;  %v5396_v30 = vld [vmem:[#allocation2 + $0x244] sm:$0xf]  ;;  %v4059_v32 = vld [vmem:[#allocation2 + $0x250] sm:$0xf0] }
 0x11e   :  { %902 = vmatpush.bf16.msra.mxu0 %v3922_v3  ;;  %v4089_v3 = vld [vmem:[#allocation2 + $0x280] sm:$0xf]  ;;  %v4065_v35 = vld [vmem:[#allocation2 + $0x248] sm:$0xf]  ;;  %v5397_v37 = vld [vmem:[#allocation2 + $0x24c] sm:$0xf]  ;;  %v4062_v40 = vor.u32 %v5396_v30, %v4059_v32 }
 0x11f   :  { %920 = vmatpush.bf16.msra.mxu1 %v3926_v5  ;;  %v6148_v0 = vsel %vm966_vm11, %v967_v56, %v6138_v61  ;;  %v5404_v5 = vld [vmem:[#allocation2 + $0x284] sm:$0xf]  ;;  %v4090_v14 = vor.u32 %v5406_v4, %v4089_v3  ;;  %v4041_v42 = vld [vmem:[#allocation2 + $0x220] sm:$0xf]  ;;  %v4043_v58 = vld [vmem:[#allocation2 + $0x230] sm:$0xf0] }
 0x120   :  { %867 = vmatpush.bf16.msrb.mxu2 %v3898_v6  ;;  %v4118_v6 = vor.u32 %v5409_v62, %v4115_v63  ;;  %v4094_v15 = vor.u32 %v5404_v5, %v4091_v7  ;;  %v4049_v46 = vld [vmem:[#allocation2 + $0x228] sm:$0xf]  ;;  %v5395_v10 = vld [vmem:[#allocation2 + $0x234] sm:$0xf0]  ;;  %v5393_v48 = vld [vmem:[#allocation2 + $0x22c] sm:$0xf] }
 0x121   :  { %885 = vmatpush.bf16.msrb.mxu3 %v3902_v12  ;;  %v5405_v12 = vld [vmem:[#allocation2 + $0x28c] sm:$0xf]  ;;  %v4051_v49 = vld [vmem:[#allocation2 + $0x238] sm:$0xf0]  ;;  %v4050_v52 = vor.u32 %v5395_v10, %v4049_v46  ;;  %v5388_v53 = vld [vmem:[#allocation2 + $0x204] sm:$0xf] }
 0x122   :  { %903 = vmatpush.bf16.msra.mxu0 %v3906_v47  ;;  %v5400_v47 = vld [vmem:[#allocation2 + $0x264] sm:$0xf]  ;;  %v4102_v19 = vor.u32 %v5405_v12, %v4099_v13  ;;  %v4054_v55 = vor.u32 %v5393_v48, %v4051_v49  ;;  %v4027_v56 = vld [vmem:[#allocation2 + $0x210] sm:$0xf0]  ;;  %v5391_v59 = vld [vmem:[#allocation2 + $0x214] sm:$0xf0] }
 0x123   :  { %921 = vmatpush.bf16.msra.mxu1 %v3910_v21  ;;  %v4081_v21 = vld [vmem:[#allocation2 + $0x268] sm:$0xf]  ;;  %v5389_v60 = vld [vmem:[#allocation2 + $0x20c] sm:$0xf]  ;;  %v4035_v62 = vld [vmem:[#allocation2 + $0x218] sm:$0xf0] }
 0x124   :  { %868 = vmatpush.bf16.msrb.mxu2 %v3882_v22  ;;  %v5403_v22 = vld [vmem:[#allocation2 + $0x274] sm:$0xf0] }
 0x125   :  { %886 = vmatpush.bf16.msrb.mxu3 %v3886_v26  ;;  %v4078_v26 = vor.u32 %v5400_v47, %v4075_v20  ;;  %v4082_v27 = vor.u32 %v5403_v22, %v4081_v21 }
 0x126   :  { %904 = vmatpush.bf16.msra.mxu0 %v3890_v36  ;;  %v5399_v36 = vld [vmem:[#allocation2 + $0x254] sm:$0xf0] }
 0x127   :  { %922 = vmatpush.bf16.msra.mxu1 %v3894_v38  ;;  %4010 = vmatmul.msk.bf16.vlgmr.msrb.gmra.mxu2 %vm6130_vm10, %v4009_v43  ;;  %v4067_v38 = vld [vmem:[#allocation2 + $0x258] sm:$0xf0]  ;;  %v4066_v41 = vor.u32 %v5399_v36, %v4065_v35  ;;  %v1216_v36 = vld [vmem:[%s6317_s3] sm:$0xf] }
 0x128   :  { %1132 = vmatpush.bf16.msra.mxu2 %v4138_v28  ;;  %4014 = vmatmul.msk.bf16.vlgmr.msrb.gmra.mxu3 %vm6130_vm10, %v4009_v43  ;;  %v4057_v28 = vld [vmem:[#allocation2 + $0x240] sm:$0xf]  ;;  %v4070_v45 = vor.u32 %v5397_v37, %v4067_v38 }
 0x129   :  { %1150 = vmatpush.bf16.msra.mxu3 %v4142_v31  ;;  %4018 = vmatmul.msk.bf16.vlgmr.msra.gmra.mxu0 %vm6130_vm10, %v4009_v43  ;;  %v4086_v31 = vor.u32 %v5401_v23, %v4083_v24 }
 0x12a   :  { %1168 = vmatpush.bf16.msrb.mxu0 %v4146_v39  ;;  %4022 = vmatmul.msk.bf16.vlgmr.msra.gmra.mxu1 %vm6130_vm10, %v4009_v43  ;;  %v4058_v39 = vor.u32 %v5398_v29, %v4057_v28  ;;  %v5394_v43 = vld [vmem:[#allocation2 + $0x22c] sm:$0xf0] }
 0x12b   :  { %1186 = vmatpush.bf16.msrb.mxu1 %v4150_v44  ;;  %v5392_v44 = vld [vmem:[#allocation2 + $0x224] sm:$0xf] }
 0x12c   :  { %1133 = vmatpush.bf16.msra.mxu2 %v4122_v50  ;;  %v4042_v50 = vor.u32 %v5394_v43, %v4041_v42  ;;  %v4046_v51 = vor.u32 %v5392_v44, %v4043_v58  ;;  %v1221_v43 = vperm.slane %v1216_v36, 3 }
 0x12d   :  { %1151 = vmatpush.bf16.msra.mxu3 %v4126_v54  ;;  %v4025_v54 = vld [vmem:[#allocation2 + $0x200] sm:$0xf] }
 0x12e   :  { %1169 = vmatpush.bf16.msrb.mxu0 %v4130_v9  ;;  %v5390_v9 = vld [vmem:[#allocation2 + $0x20c] sm:$0xf0] }
 0x12f   :  { %1187 = vmatpush.bf16.msrb.mxu1 %v4134_v57  ;;  %v4033_v57 = vld [vmem:[#allocation2 + $0x208] sm:$0xf]  ;;  %v4026_v63 = vor.u32 %v5390_v9, %v4025_v54 }
 0x130   :  { %1134 = vmatpush.bf16.msra.mxu2 %v4106_v33  ;;  %v4034_v33 = vor.u32 %v5391_v59, %v4033_v57 }
 0x131   :  { %1152 = vmatpush.bf16.msra.mxu3 %v4110_v1  ;;  %v4038_v1 = vor.u32 %v5389_v60, %v4035_v62 }
 0x132   :  { %1170 = vmatpush.bf16.msrb.mxu0 %v4114_v2 }
 0x133   :  { %1188 = vmatpush.bf16.msrb.mxu1 %v4118_v6 }
 0x134   :  { %1135 = vmatpush.bf16.msra.mxu2 %v4090_v14 }
 0x135   :  { %1153 = vmatpush.bf16.msra.mxu3 %v4094_v15 }
 0x136   :  { %1171 = vmatpush.bf16.msrb.mxu0 %v4098_v16 }
 0x137   :  { %1189 = vmatpush.bf16.msrb.mxu1 %v4102_v19  ;;  %874 = vmatmul.bf16.gmra.mxu2 %v6109_v34 }
 0x138   :  { %1136 = vmatpush.bf16.msra.mxu2 %v4074_v25  ;;  %892 = vmatmul.bf16.gmra.mxu3 %v6109_v34 }
 0x139   :  { %1154 = vmatpush.bf16.msra.mxu3 %v4078_v26  ;;  %910 = vmatmul.bf16.gmra.mxu0 %v6109_v34 }
 0x13a   :  { %1172 = vmatpush.bf16.msrb.mxu0 %v4082_v27  ;;  %928 = vmatmul.bf16.gmra.mxu1 %v6109_v34  ;;  %v4030_v34 = vor.u32 %v5388_v53, %v4027_v56  ;;  %v6173_v53 = vperm.slane %v1216_v36, 1 }
 0x13b   :  { %1190 = vmatpush.bf16.msrb.mxu1 %v4086_v31 }
 0x13c   :  { %1137 = vmatpush.bf16.msra.mxu2 %v4058_v39 }
 0x13d   :  { %1155 = vmatpush.bf16.msra.mxu3 %v4062_v40 }
 0x13e   :  { %1173 = vmatpush.bf16.msrb.mxu0 %v4066_v41  ;;  %v1220_v41 = vperm.slane %v1216_v36, 2 }
 0x13f   :  { %1191 = vmatpush.bf16.msrb.mxu1 %v4070_v45 }
 0x140   :  { %1138 = vmatpush.bf16.msra.mxu2 %v4042_v50 }
 0x141   :  { %1156 = vmatpush.bf16.msra.mxu3 %v4046_v51 }
 0x142   :  { %1174 = vmatpush.bf16.msrb.mxu0 %v4050_v52  ;;  %v1218_v52 = vperm.slane %v1216_v36, 0 }
 0x143   :  { %1192 = vmatpush.bf16.msrb.mxu1 %v4054_v55 }
 0x144   :  { %1139 = vmatpush.bf16.msra.mxu2 %v4026_v63 }
 0x145   :  { %1157 = vmatpush.bf16.msra.mxu3 %v4030_v34 }
 0x146   :  { %1175 = vmatpush.bf16.msrb.mxu0 %v4034_v33 }
 0x147   :  { %1193 = vmatpush.bf16.msrb.mxu1 %v4038_v1  ;;  %1140 = vmatmul.bf16.vlgmr.msra.gmra.mxu2 %v6148_v0 }
 0x148   :  { %1158 = vmatmul.bf16.vlgmr.msra.gmra.mxu3 %v6148_v0 }
 0x149   :  { %1176 = vmatmul.bf16.vlgmr.msrb.gmra.mxu0 %v6148_v0 }
 0x14a   :  { %1194 = vmatmul.bf16.vlgmr.msrb.gmra.mxu1 %v6148_v0 }
 0x157   :  { %1145 = vmatmul.bf16.gmra.mxu2 %v6138_v61 }
 0x158   :  { %1163 = vmatmul.bf16.gmra.mxu3 %v6138_v61 }
 0x159   :  { %1181 = vmatmul.bf16.gmra.mxu0 %v6138_v61 }
 0x15a   :  { %1199 = vmatmul.bf16.gmra.mxu1 %v6138_v61 }
 0x186   :  { %v674_v2 = vpop.f32.mrf.mxu0 }
 0x187   :  { %v692_v3 = vpop.f32.mrf.mxu1 }
 0x18a   :  { %v638_v4 = vpop.f32.mrf.mxu2 }
 0x18b   :  { %v656_v5 = vpop.f32.mrf.mxu3 }
 0x18e   :  { %v676_v6 = vpop.f32.mrf.mxu0 }
 0x18f   :  { %v694_v7 = vpop.f32.mrf.mxu1 }
 0x192   :  { %v640_v8 = vpop.f32.mrf.mxu2 }
 0x193   :  { %v658_v11 = vpop.f32.mrf.mxu3 }
 0x196   :  { %v679_v12 = vpop.f32.mrf.mxu0 }
 0x197   :  { %v697_v13 = vpop.f32.mrf.mxu1 }
 0x19a   :  { %v6162_v14 = vpop.f32.mrf.mxu2 }
 0x19b   :  { %v6164_v0 = vpop.f32.mrf.mxu3 }
 0x19e   :  { %v681_v15 = vpop.f32.mrf.mxu0 }
 0x19f   :  { %v699_v16 = vpop.f32.mrf.mxu1 }
 0x1a2   :  { %v645_v17 = vpop.f32.mrf.mxu2 }
 0x1a3   :  { %v663_v18 = vpop.f32.mrf.mxu3 }
 0x1a6   :  { %v906_v47 = vpop.f32.mrf.mxu0 }
 0x1a7   :  { %v924_v61 = vpop.f32.mrf.mxu1  ;;  %v907_v37 = vadd.f32 %v906_v47, %v674_v2 }
 0x1a8   :  { %v925_v39 = vadd.f32 %v924_v61, %v692_v3 }
 0x1aa   :  { %v870_v19 = vpop.f32.mrf.mxu2 }
 0x1ab   :  { %v888_v20 = vpop.f32.mrf.mxu3  ;;  %v871_v45 = vadd.f32 %v870_v19, %v638_v4 }
 0x1ac   :  { %v889_v46 = vadd.f32 %v888_v20, %v656_v5 }
 0x1ae   :  { %v908_v21 = vpop.f32.mrf.mxu0 }
 0x1af   :  { %v926_v22 = vpop.f32.mrf.mxu1  ;;  %v909_v10 = vadd.f32 %v908_v21, %v676_v6 }
 0x1b0   :  { %v927_v49 = vadd.f32 %v926_v22, %v694_v7 }
 0x1b2   :  { %v872_v23 = vpop.f32.mrf.mxu2 }
 0x1b3   :  { %v890_v24 = vpop.f32.mrf.mxu3  ;;  %v873_v62 = vadd.f32 %v872_v23, %v640_v8 }
 0x1b4   :  { %v891_v1 = vadd.f32 %v890_v24, %v658_v11 }
 0x1b6   :  { %v911_v25 = vpop.f32.mrf.mxu0 }
 0x1b7   :  { %v929_v26 = vpop.f32.mrf.mxu1  ;;  %v912_v5 = vadd.f32 %v911_v25, %v679_v12 }
 0x1b8   :  { %v930_v16 = vadd.f32 %v929_v26, %v697_v13 }
 0x1ba   :  { %v6166_v27 = vpop.f32.mrf.mxu2 }
 0x1bb   :  { %v6168_v28 = vpop.f32.mrf.mxu3 }
 0x1be   :  { %v913_v29 = vpop.f32.mrf.mxu0 }
 0x1bf   :  { %v931_v30 = vpop.f32.mrf.mxu1 }
 0x1c2   :  { %v877_v31 = vpop.f32.mrf.mxu2 }
 0x1c3   :  { %v895_v32 = vpop.f32.mrf.mxu3 }
 0x1c6   :  { %v1177_v35 = vpop.f32.mrf.mxu0 }
 0x1c7   :  { %v1195_v38 = vpop.f32.mrf.mxu1  ;;  %v1206_v40 = vadd.f32 %v1177_v35, %v907_v37  ;;  %v876_v35 = vadd.f32 %v6166_v27, %v6162_v14 }
 0x1c8   :  { %v1207_v42 = vadd.f32 %v1195_v38, %v925_v39  ;;  %v894_v39 = vadd.f32 %v6168_v28, %v6164_v0 }
 0x1c9   :  { %v1228_v48 = vadd.f32 %v1220_v41, %v1206_v40 }
 0x1ca   :  { %v1141_v44 = vpop.f32.mrf.mxu2  ;;  %v1229_v50 = vadd.f32 %v1221_v43, %v1207_v42 }
 0x1cb   :  { %v1159_v58 = vpop.f32.mrf.mxu3  ;;  %v1204_v51 = vadd.f32 %v1141_v44, %v871_v45  ;;  %v1240_v59 = vmax.f32 %v1228_v48, 0.0 }
 0x1cc   :  { %v1205_v9 = vadd.f32 %v1159_v58, %v889_v46  ;;  %v1241_v63 = vmax.f32 %v1229_v50, 0.0 }
 0x1cd   :  { %v1226_v34 = vadd.f32 %v1218_v52, %v1204_v51  ;;  %v1269_v17 = vrot.slane %v1240_v59, 2 }
 0x1ce   :  { %v1179_v54 = vpop.f32.mrf.mxu0  ;;  %v1227_v2 = vadd.f32 %v6173_v53, %v1205_v9  ;;  %v1272_v61 = vrot.slane %v1241_v63, 2 }
 0x1cf   :  { %v1210_v55 = vadd.f32 %v1179_v54, %v909_v10  ;;  %v1197_v56 = vpop.f32.mrf.mxu1  ;;  %v1238_v19 = vmax.f32 %v1226_v34, 0.0 }
 0x1d0   :  { %v1211_v57 = vadd.f32 %v1197_v56, %v927_v49  ;;  %v1239_v22 = vmax.f32 %v1227_v2, 0.0 }
 0x1d1   :  { %v1232_v60 = vadd.f32 %v1220_v41, %v1210_v55  ;;  %v1263_v36 = vrot.slane %v1238_v19, 2 }
 0x1d2   :  { %v1233_v33 = vadd.f32 %v1221_v43, %v1211_v57  ;;  %v1143_v4 = vpop.f32.mrf.mxu2  ;;  %v1266_v40 = vrot.slane %v1239_v22, 2 }
 0x1d3   :  { %v1244_v3 = vmax.f32 %v1232_v60, 0.0  ;;  %v1208_v7 = vadd.f32 %v1143_v4, %v873_v62  ;;  %v1161_v15 = vpop.f32.mrf.mxu3 }
 0x1d4   :  { %v1245_v6 = vmax.f32 %v1233_v33, 0.0  ;;  %v1209_v47 = vadd.f32 %v1161_v15, %v891_v1 }
 0x1d5   :  { %v1270_v18 = vrot.slane %v1244_v3, 2  ;;  %v1230_v8 = vadd.f32 %v1218_v52, %v1208_v7 }
 0x1d6   :  { %v1273_v20 = vrot.slane %v1245_v6, 2  ;;  %v1182_v21 = vpop.f32.mrf.mxu0  ;;  %v1231_v23 = vadd.f32 %v6173_v53, %v1209_v47 }
 0x1d7   :  { %v1271_v11 = vsel %vm966_vm11, %v1269_v17, %v1270_v18  ;;  %v1214_v24 = vadd.f32 %v1182_v21, %v912_v5  ;;  %v1200_v29 = vpop.f32.mrf.mxu1  ;;  %v1242_v30 = vmax.f32 %v1230_v8, 0.0 }
 0x1d8   :  { %v1293_v12 = vmax.f32 %v1240_v59, %v1271_v11  ;;  %v1274_v25 = vsel %vm966_vm11, %v1272_v61, %v1273_v20  ;;  %v1215_v13 = vadd.f32 %v1200_v29, %v930_v16  ;;  %v1243_v31 = vmax.f32 %v1231_v23, 0.0 }
 0x1d9   :  { %v1294_v26 = vmax.f32 %v1241_v63, %v1274_v25  ;;  %v1236_v32 = vadd.f32 %v1220_v41, %v1214_v24  ;;  %v1264_v37 = vrot.slane %v1242_v30, 2 }
 0x1da   :  { %v1237_v38 = vadd.f32 %v1221_v43, %v1215_v13  ;;  %v1267_v42 = vrot.slane %v1243_v31, 2  ;;  %v1146_v45 = vpop.f32.mrf.mxu2 }
 0x1db   :  { %v1248_v44 = vmax.f32 %v1236_v32, 0.0  ;;  %v1265_v58 = vsel %vm966_vm11, %v1263_v36, %v1264_v37  ;;  %v1212_v10 = vadd.f32 %v1146_v45, %v876_v35  ;;  %v1164_v48 = vpop.f32.mrf.mxu3 }
 0x1dc   :  { %v1249_v46 = vmax.f32 %v1237_v38, 0.0  ;;  %v1291_v49 = vmax.f32 %v1238_v19, %v1265_v58  ;;  %v1268_v41 = vsel %vm966_vm11, %v1266_v40, %v1267_v42  ;;  %v1213_v14 = vadd.f32 %v1164_v48, %v894_v39 }
 0x1dd   :  { %v1279_v50 = vrot.slane %v1248_v44, 2  ;;  %v1292_v27 = vmax.f32 %v1239_v22, %v1268_v41  ;;  %v1234_v43 = vadd.f32 %v1218_v52, %v1212_v10 }
 0x1de   :  { %v1281_v51 = vrot.slane %v1249_v46, 2  ;;  %v1184_v54 = vpop.f32.mrf.mxu0  ;;  %v1299_v9 = vmax.f32 %v1291_v49, %v1293_v12  ;;  %v1235_v28 = vadd.f32 %v6173_v53, %v1213_v14 }
 0x1df   :  { %v1280_v0 = vsel %vm966_vm11, %v1270_v18, %v1279_v50  ;;  %v1202_v55 = vpop.f32.mrf.mxu1  ;;  %v1300_v56 = vmax.f32 %v1292_v27, %v1294_v26  ;;  %v1246_v60 = vmax.f32 %v1234_v43, 0.0 }
 0x1e0   :  { %v1297_v57 = vmax.f32 %v1244_v3, %v1280_v0  ;;  %v1282_v59 = vsel %vm966_vm11, %v1273_v20, %v1281_v51  ;;  %v1247_v63 = vmax.f32 %v1235_v28, 0.0  ;;  %v1305_v16 = vrot.slane %v1299_v9, 4 }
 0x1e1   :  { %v1298_v62 = vmax.f32 %v1245_v6, %v1282_v59  ;;  %v1275_v34 = vrot.slane %v1246_v60, 2  ;;  %v1306_v18 = vrot.slane %v1300_v56, 4 }
 0x1e2   :  { %v1277_v33 = vrot.slane %v1247_v63, 2  ;;  %v1148_v1 = vpop.f32.mrf.mxu2 }
 0x1e3   :  { %v1276_v2 = vsel %vm966_vm11, %v1264_v37, %v1275_v34  ;;  %v1166_v52 = vpop.f32.mrf.mxu3 }
 0x1e4   :  { %v1295_v4 = vmax.f32 %v1242_v30, %v1276_v2  ;;  %v1278_v5 = vsel %vm966_vm11, %v1267_v42, %v1277_v33 }
 0x1e5   :  { %v1296_v7 = vmax.f32 %v1243_v31, %v1278_v5 }
 0x1e6   :  { %v1301_v15 = vmax.f32 %v1295_v4, %v1297_v57 }
 0x1e7   :  { %v1302_v53 = vmax.f32 %v1296_v7, %v1298_v62 }
 0x1e8   :  { %v1313_v3 = vrot.slane %v1301_v15, 1  ;;  %v4151_v17 = vrot.slane %v1301_v15, 5 }
 0x1e9   :  { %v1314_v47 = vrot.slane %v1302_v53, 1  ;;  %v4152_v6 = vrot.slane %v1302_v53, 5 }
 0x1ea   :  { %v6190_v61 = vsel %vm1321_vm12, %v1299_v9, %v1313_v3  ;;  %v6192_v19 = vsel %vm1321_vm12, %v1305_v16, %v4151_v17 }
 0x1eb   :  { %v6194_v20 = vsel %vm1321_vm12, %v1300_v56, %v1314_v47  ;;  %v6196_v8 = vsel %vm1321_vm12, %v1306_v18, %v4152_v6 }
 0x1ec   :  { %5812 = dma.done.wait [#allocation6 + $0x1], 16384 }
 0x1ed   :  { %5813 = vsyncadd [#allocation6 + $0x1], 4294950912  ;;  %v4267_v21 = vld [vmem:[#allocation3 + $0xe0] sm:$0xf]  ;;  %v5450_v22 = vld [vmem:[#allocation3 + $0xec] sm:$0xf0] }
 0x1ee   :  { %v4395_v11 = vld [vmem:[#allocation3 + $0x1e0] sm:$0xf]  ;;  %v4268_v23 = vor.u32 %v5450_v22, %v4267_v21  ;;  %v5482_v24 = vld [vmem:[#allocation3 + $0x1ec] sm:$0xf0] }
 0x1ef   :  { %v4523_v29 = vld [vmem:[#allocation3 + $0x2e0] sm:$0xf]  ;;  %v5514_v12 = vld [vmem:[#allocation3 + $0x2ec] sm:$0xf0]  ;;  %v4396_v25 = vor.u32 %v5482_v24, %v4395_v11 }
 0x1f0   :  { %v4524_v30 = vor.u32 %v5514_v12, %v4523_v29  ;;  %v4651_v13 = vld [vmem:[#allocation3 + $0x3e0] sm:$0xf]  ;;  %v5546_v26 = vld [vmem:[#allocation3 + $0x3ec] sm:$0xf0]  ;;  %2112 = vmatpush.bf16.msrb.mxu2 %v4268_v23 }
 0x1f1   :  { %v4251_v31 = vld [vmem:[#allocation3 + $0xc0] sm:$0xf]  ;;  %v4652_v32 = vor.u32 %v5546_v26, %v4651_v13  ;;  %v5446_v35 = vld [vmem:[#allocation3 + $0xcc] sm:$0xf0]  ;;  %2125 = vmatpush.bf16.msrb.mxu3 %v4396_v25 }
 0x1f2   :  { %v4379_v36 = vld [vmem:[#allocation3 + $0x1c0] sm:$0xf]  ;;  %v5478_v37 = vld [vmem:[#allocation3 + $0x1cc] sm:$0xf0]  ;;  %2138 = vmatpush.bf16.msra.mxu0 %v4524_v30  ;;  %v4252_v38 = vor.u32 %v5446_v35, %v4251_v31 }
 0x1f3   :  { %v4380_v39 = vor.u32 %v5478_v37, %v4379_v36  ;;  %v4507_v40 = vld [vmem:[#allocation3 + $0x2c0] sm:$0xf]  ;;  %v5510_v42 = vld [vmem:[#allocation3 + $0x2cc] sm:$0xf0]  ;;  %2151 = vmatpush.bf16.msra.mxu1 %v4652_v32 }
 0x1f4   :  { %v4635_v44 = vld [vmem:[#allocation3 + $0x3c0] sm:$0xf]  ;;  %v4508_v45 = vor.u32 %v5510_v42, %v4507_v40  ;;  %v5542_v58 = vld [vmem:[#allocation3 + $0x3cc] sm:$0xf0]  ;;  %2113 = vmatpush.bf16.msrb.mxu2 %v4252_v38 }
 0x1f5   :  { %v4235_v46 = vld [vmem:[#allocation3 + $0xa0] sm:$0xf]  ;;  %v5442_v10 = vld [vmem:[#allocation3 + $0xac] sm:$0xf0]  ;;  %v4636_v48 = vor.u32 %v5542_v58, %v4635_v44  ;;  %2126 = vmatpush.bf16.msrb.mxu3 %v4380_v39 }
 0x1f6   :  { %v4363_v49 = vld [vmem:[#allocation3 + $0x1a0] sm:$0xf]  ;;  %v5474_v41 = vld [vmem:[#allocation3 + $0x1ac] sm:$0xf0]  ;;  %v4236_v14 = vor.u32 %v5442_v10, %v4235_v46  ;;  %2139 = vmatpush.bf16.msra.mxu0 %v4508_v45 }
 0x1f7   :  { %v4491_v50 = vld [vmem:[#allocation3 + $0x2a0] sm:$0xf]  ;;  %v5506_v27 = vld [vmem:[#allocation3 + $0x2ac] sm:$0xf0]  ;;  %v4364_v54 = vor.u32 %v5474_v41, %v4363_v49  ;;  %2152 = vmatpush.bf16.msra.mxu1 %v4636_v48 }
 0x1f8   :  { %v4619_v51 = vld [vmem:[#allocation3 + $0x3a0] sm:$0xf]  ;;  %v5538_v43 = vld [vmem:[#allocation3 + $0x3ac] sm:$0xf0]  ;;  %v4492_v9 = vor.u32 %v5506_v27, %v4491_v50  ;;  %2114 = vmatpush.bf16.msrb.mxu2 %v4236_v14 }
 0x1f9   :  { %v4219_v0 = vld [vmem:[#allocation3 + $0x80] sm:$0xf]  ;;  %v5438_v28 = vld [vmem:[#allocation3 + $0x8c] sm:$0xf0]  ;;  %v4620_v56 = vor.u32 %v5538_v43, %v4619_v51  ;;  %2127 = vmatpush.bf16.msrb.mxu3 %v4364_v54  ;;  %v5448_v43 = vld [vmem:[#allocation3 + $0xe4] sm:$0xf] }
 0x1fa   :  { %v4347_v55 = vld [vmem:[#allocation3 + $0x180] sm:$0xf]  ;;  %v5470_v57 = vld [vmem:[#allocation3 + $0x18c] sm:$0xf0]  ;;  %v4220_v34 = vor.u32 %v5438_v28, %v4219_v0  ;;  %2140 = vmatpush.bf16.msra.mxu0 %v4492_v9  ;;  %v4269_v54 = vld [vmem:[#allocation3 + $0xf0] sm:$0xf0] }
 0x1fb   :  { %v4475_v59 = vld [vmem:[#allocation3 + $0x280] sm:$0xf]  ;;  %v5502_v60 = vld [vmem:[#allocation3 + $0x28c] sm:$0xf0]  ;;  %v4348_v33 = vor.u32 %v5470_v57, %v4347_v55  ;;  %2153 = vmatpush.bf16.msra.mxu1 %v4620_v56  ;;  %v5480_v9 = vld [vmem:[#allocation3 + $0x1e4] sm:$0xf] }
 0x1fc   :  { %v4603_v62 = vld [vmem:[#allocation3 + $0x380] sm:$0xf]  ;;  %v5534_v63 = vld [vmem:[#allocation3 + $0x38c] sm:$0xf0]  ;;  %v4476_v1 = vor.u32 %v5502_v60, %v4475_v59  ;;  %2115 = vmatpush.bf16.msrb.mxu2 %v4220_v34  ;;  %v4397_v28 = vld [vmem:[#allocation3 + $0x1f0] sm:$0xf0]  ;;  %v4272_v34 = vor.u32 %v5448_v43, %v4269_v54 }
 0x1fd   :  { %v4203_v2 = vld [vmem:[#allocation3 + $0x60] sm:$0xf]  ;;  %v5434_v52 = vld [vmem:[#allocation3 + $0x6c] sm:$0xf0]  ;;  %v4604_v5 = vor.u32 %v5534_v63, %v4603_v62  ;;  %2128 = vmatpush.bf16.msrb.mxu3 %v4348_v33  ;;  %v5512_v55 = vld [vmem:[#allocation3 + $0x2e4] sm:$0xf]  ;;  %v4400_v33 = vor.u32 %v5480_v9, %v4397_v28 }
 0x1fe   :  { %v4331_v4 = vld [vmem:[#allocation3 + $0x160] sm:$0xf]  ;;  %v5466_v7 = vld [vmem:[#allocation3 + $0x16c] sm:$0xf0]  ;;  %v4204_v17 = vor.u32 %v5434_v52, %v4203_v2  ;;  %2141 = vmatpush.bf16.msra.mxu0 %v4476_v1  ;;  %v4525_v56 = vld [vmem:[#allocation3 + $0x2f0] sm:$0xf0] }
 0x1ff   :  { %v4459_v15 = vld [vmem:[#allocation3 + $0x260] sm:$0xf]  ;;  %v5498_v53 = vld [vmem:[#allocation3 + $0x26c] sm:$0xf0]  ;;  %v4332_v18 = vor.u32 %v5466_v7, %v4331_v4  ;;  %2154 = vmatpush.bf16.msra.mxu1 %v4604_v5  ;;  %v5544_v60 = vld [vmem:[#allocation3 + $0x3e4] sm:$0xf]  ;;  %v4528_v1 = vor.u32 %v5512_v55, %v4525_v56 }
 0x200   :  { %v4587_v16 = vld [vmem:[#allocation3 + $0x360] sm:$0xf]  ;;  %v5530_v3 = vld [vmem:[#allocation3 + $0x36c] sm:$0xf0]  ;;  %v4460_v47 = vor.u32 %v5498_v53, %v4459_v15  ;;  %2116 = vmatpush.bf16.msrb.mxu2 %v4204_v17  ;;  %v4653_v62 = vld [vmem:[#allocation3 + $0x3f0] sm:$0xf0] }
 0x201   :  { %v4187_v6 = vld [vmem:[#allocation3 + $0x40] sm:$0xf]  ;;  %v5430_v21 = vld [vmem:[#allocation3 + $0x4c] sm:$0xf0]  ;;  %v4588_v11 = vor.u32 %v5530_v3, %v4587_v16  ;;  %2129 = vmatpush.bf16.msrb.mxu3 %v4332_v18  ;;  %v5444_v2 = vld [vmem:[#allocation3 + $0xc4] sm:$0xf]  ;;  %v4656_v5 = vor.u32 %v5544_v60, %v4653_v62  ;;  %v6200_v16 = vpack.c.bf16 %v6190_v61, %v6190_v61  ;;  %v6204_v18 = vpack.c.bf16 %v6194_v20, %v6194_v20 }
 0x202   :  { %v4315_v22 = vld [vmem:[#allocation3 + $0x140] sm:$0xf]  ;;  %v5462_v23 = vld [vmem:[#allocation3 + $0x14c] sm:$0xf0]  ;;  %v4188_v30 = vor.u32 %v5430_v21, %v4187_v6  ;;  %2142 = vmatpush.bf16.msra.mxu0 %v4460_v47  ;;  %v4253_v52 = vld [vmem:[#allocation3 + $0xd0] sm:$0xf0]  ;;  %v6208_v47 = vpack.c.bf16 %v6192_v19, %v6192_v19  ;;  %v6212_v21 = vpack.c.bf16 %v6196_v8, %v6196_v8 }
 0x203   :  { %v4443_v24 = vld [vmem:[#allocation3 + $0x240] sm:$0xf]  ;;  %v5494_v29 = vld [vmem:[#allocation3 + $0x24c] sm:$0xf0]  ;;  %v4316_v13 = vor.u32 %v5462_v23, %v4315_v22  ;;  %2155 = vmatpush.bf16.msra.mxu1 %v4588_v11  ;;  %v5476_v4 = vld [vmem:[#allocation3 + $0x1c4] sm:$0xf]  ;;  %v4256_v6 = vor.u32 %v5444_v2, %v4253_v52 }
 0x204   :  { %v4571_v12 = vld [vmem:[#allocation3 + $0x340] sm:$0xf]  ;;  %v5526_v25 = vld [vmem:[#allocation3 + $0x34c] sm:$0xf0]  ;;  %v4444_v26 = vor.u32 %v5494_v29, %v4443_v24  ;;  %2117 = vmatpush.bf16.msrb.mxu2 %v4188_v30  ;;  %v4381_v7 = vld [vmem:[#allocation3 + $0x1d0] sm:$0xf0] }
 0x205   :  { %v4171_v31 = vld [vmem:[#allocation3 + $0x20] sm:$0xf]  ;;  %v5426_v32 = vld [vmem:[#allocation3 + $0x2c] sm:$0xf0]  ;;  %v4572_v36 = vor.u32 %v5526_v25, %v4571_v12  ;;  %2130 = vmatpush.bf16.msrb.mxu3 %v4316_v13  ;;  %v5508_v15 = vld [vmem:[#allocation3 + $0x2c4] sm:$0xf]  ;;  %v4384_v61 = vor.u32 %v5476_v4, %v4381_v7 }
 0x206   :  { %v4299_v35 = vld [vmem:[#allocation3 + $0x120] sm:$0xf]  ;;  %v5458_v37 = vld [vmem:[#allocation3 + $0x12c] sm:$0xf0]  ;;  %v4172_v44 = vor.u32 %v5426_v32, %v4171_v31  ;;  %2143 = vmatpush.bf16.msra.mxu0 %v4444_v26  ;;  %v4509_v53 = vld [vmem:[#allocation3 + $0x2d0] sm:$0xf0] }
 0x207   :  { %v4427_v38 = vld [vmem:[#allocation3 + $0x220] sm:$0xf]  ;;  %v5490_v39 = vld [vmem:[#allocation3 + $0x22c] sm:$0xf0]  ;;  %v4300_v46 = vor.u32 %v5458_v37, %v4299_v35  ;;  %2156 = vmatpush.bf16.msra.mxu1 %v4572_v36  ;;  %v5540_v3 = vld [vmem:[#allocation3 + $0x3c4] sm:$0xf]  ;;  %v4512_v22 = vor.u32 %v5508_v15, %v4509_v53 }
 0x208   :  { %v4555_v40 = vld [vmem:[#allocation3 + $0x320] sm:$0xf]  ;;  %v5522_v42 = vld [vmem:[#allocation3 + $0x32c] sm:$0xf0]  ;;  %v4428_v10 = vor.u32 %v5490_v39, %v4427_v38  ;;  %2118 = vmatpush.bf16.msrb.mxu2 %v4172_v44  ;;  %v4637_v17 = vld [vmem:[#allocation3 + $0x3d0] sm:$0xf0] }
 0x209   :  { %v4155_v45 = vld [vmem:[#allocation3] sm:$0xf]  ;;  %v5422_v58 = vld [vmem:[#allocation3 + $0xc] sm:$0xf0]  ;;  %v4556_v50 = vor.u32 %v5522_v42, %v4555_v40  ;;  %2131 = vmatpush.bf16.msrb.mxu3 %v4300_v46  ;;  %v5440_v11 = vld [vmem:[#allocation3 + $0xa4] sm:$0xf]  ;;  %v4640_v20 = vor.u32 %v5540_v3, %v4637_v17 }
 0x20a   :  { %v4283_v48 = vld [vmem:[#allocation3 + $0x100] sm:$0xf]  ;;  %v5454_v49 = vld [vmem:[#allocation3 + $0x10c] sm:$0xf0]  ;;  %v4156_v0 = vor.u32 %v5422_v58, %v4155_v45  ;;  %2144 = vmatpush.bf16.msra.mxu0 %v4428_v10  ;;  %v4237_v23 = vld [vmem:[#allocation3 + $0xb0] sm:$0xf0] }
 0x20b   :  { %v4411_v41 = vld [vmem:[#allocation3 + $0x200] sm:$0xf]  ;;  %v5486_v14 = vld [vmem:[#allocation3 + $0x20c] sm:$0xf0]  ;;  %v4284_v57 = vor.u32 %v5454_v49, %v4283_v48  ;;  %2157 = vmatpush.bf16.msra.mxu1 %v4556_v50  ;;  %v5472_v24 = vld [vmem:[#allocation3 + $0x1a4] sm:$0xf]  ;;  %v4240_v8 = vor.u32 %v5440_v11, %v4237_v23 }
 0x20c   :  { %v4539_v27 = vld [vmem:[#allocation3 + $0x300] sm:$0xf]  ;;  %v5518_v51 = vld [vmem:[#allocation3 + $0x30c] sm:$0xf0]  ;;  %v4412_v59 = vor.u32 %v5486_v14, %v4411_v41  ;;  %2119 = vmatpush.bf16.msrb.mxu2 %v4156_v0  ;;  %v4365_v29 = vld [vmem:[#allocation3 + $0x1b0] sm:$0xf0] }
 0x20d   :  { %v4540_v63 = vor.u32 %v5518_v51, %v4539_v27  ;;  %2132 = vmatpush.bf16.msrb.mxu3 %v4284_v57  ;;  %v5504_v12 = vld [vmem:[#allocation3 + $0x2a4] sm:$0xf]  ;;  %v4493_v19 = vld [vmem:[#allocation3 + $0x2b0] sm:$0xf0]  ;;  %v4368_v13 = vor.u32 %v5472_v24, %v4365_v29 }
 0x20e   :  { %2145 = vmatpush.bf16.msra.mxu0 %v4412_v59  ;;  %v5536_v25 = vld [vmem:[#allocation3 + $0x3a4] sm:$0xf]  ;;  %v4621_v30 = vld [vmem:[#allocation3 + $0x3b0] sm:$0xf0]  ;;  %v4496_v26 = vor.u32 %v5504_v12, %v4493_v19 }
 0x20f   :  { %2158 = vmatpush.bf16.msra.mxu1 %v4540_v63  ;;  %2120 = vmatmul.bf16.vlgmr.msrb.gmra.mxu2 %v6200_v16  ;;  %v5436_v31 = vld [vmem:[#allocation3 + $0x84] sm:$0xf]  ;;  %v4221_v32 = vld [vmem:[#allocation3 + $0x90] sm:$0xf0]  ;;  %v4624_v36 = vor.u32 %v5536_v25, %v4621_v30 }
 0x210   :  { %2164 = vmatpush.bf16.msra.mxu2 %v4272_v34  ;;  %2133 = vmatmul.bf16.vlgmr.msrb.gmra.mxu3 %v6204_v18  ;;  %v5468_v35 = vld [vmem:[#allocation3 + $0x184] sm:$0xf]  ;;  %v4349_v37 = vld [vmem:[#allocation3 + $0x190] sm:$0xf0]  ;;  %v4224_v44 = vor.u32 %v5436_v31, %v4221_v32  ;;  %v5483_v32 = vld [vmem:[#allocation3 + $0x1f4] sm:$0xf0] }
 0x211   :  { %2177 = vmatpush.bf16.msra.mxu3 %v4400_v33  ;;  %2146 = vmatmul.bf16.vlgmr.msra.gmra.mxu0 %v6208_v47  ;;  %v5500_v38 = vld [vmem:[#allocation3 + $0x284] sm:$0xf]  ;;  %v4477_v39 = vld [vmem:[#allocation3 + $0x290] sm:$0xf0]  ;;  %v4352_v45 = vor.u32 %v5468_v35, %v4349_v37  ;;  %v4531_v35 = vld [vmem:[#allocation3 + $0x2e8] sm:$0xf] }
 0x212   :  { %2190 = vmatpush.bf16.msrb.mxu0 %v4528_v1  ;;  %2159 = vmatmul.bf16.vlgmr.msra.gmra.mxu1 %v6212_v21  ;;  %v5532_v40 = vld [vmem:[#allocation3 + $0x384] sm:$0xf]  ;;  %v4605_v42 = vld [vmem:[#allocation3 + $0x390] sm:$0xf0]  ;;  %v4480_v58 = vor.u32 %v5500_v38, %v4477_v39  ;;  %v4659_v39 = vld [vmem:[#allocation3 + $0x3e8] sm:$0xf] }
 0x213   :  { %2203 = vmatpush.bf16.msrb.mxu1 %v4656_v5  ;;  %v5432_v46 = vld [vmem:[#allocation3 + $0x64] sm:$0xf]  ;;  %v4205_v10 = vld [vmem:[#allocation3 + $0x70] sm:$0xf0]  ;;  %v4608_v49 = vor.u32 %v5532_v40, %v4605_v42  ;;  %v5547_v40 = vld [vmem:[#allocation3 + $0x3f4] sm:$0xf0] }
 0x214   :  { %2165 = vmatpush.bf16.msra.mxu2 %v4256_v6  ;;  %v5464_v48 = vld [vmem:[#allocation3 + $0x164] sm:$0xf]  ;;  %v4333_v41 = vld [vmem:[#allocation3 + $0x170] sm:$0xf0]  ;;  %v4208_v43 = vor.u32 %v5432_v46, %v4205_v10  ;;  %v4259_v46 = vld [vmem:[#allocation3 + $0xc8] sm:$0xf] }
 0x215   :  { %2178 = vmatpush.bf16.msra.mxu3 %v4384_v61  ;;  %v5496_v50 = vld [vmem:[#allocation3 + $0x264] sm:$0xf]  ;;  %v4461_v14 = vld [vmem:[#allocation3 + $0x270] sm:$0xf0]  ;;  %v4336_v54 = vor.u32 %v5464_v48, %v4333_v41  ;;  %v5447_v10 = vld [vmem:[#allocation3 + $0xd4] sm:$0xf0] }
 0x216   :  { %2191 = vmatpush.bf16.msrb.mxu0 %v4512_v22  ;;  %v5528_v27 = vld [vmem:[#allocation3 + $0x364] sm:$0xf]  ;;  %v4589_v51 = vld [vmem:[#allocation3 + $0x370] sm:$0xf0]  ;;  %v4464_v9 = vor.u32 %v5496_v50, %v4461_v14  ;;  %v4387_v48 = vld [vmem:[#allocation3 + $0x1c8] sm:$0xf] }
 0x217   :  { %2204 = vmatpush.bf16.msrb.mxu1 %v4640_v20  ;;  %v5428_v0 = vld [vmem:[#allocation3 + $0x44] sm:$0xf]  ;;  %v4189_v28 = vld [vmem:[#allocation3 + $0x50] sm:$0xf0]  ;;  %v4592_v56 = vor.u32 %v5528_v27, %v4589_v51  ;;  %v5479_v41 = vld [vmem:[#allocation3 + $0x1d4] sm:$0xf0] }
 0x218   :  { %2166 = vmatpush.bf16.msra.mxu2 %v4240_v8  ;;  %v5460_v55 = vld [vmem:[#allocation3 + $0x144] sm:$0xf]  ;;  %v4317_v57 = vld [vmem:[#allocation3 + $0x150] sm:$0xf0]  ;;  %v4192_v34 = vor.u32 %v5428_v0, %v4189_v28  ;;  %v4275_v8 = vld [vmem:[#allocation3 + $0xe8] sm:$0xf] }
 0x219   :  { %2179 = vmatpush.bf16.msra.mxu3 %v4368_v13  ;;  %v5492_v59 = vld [vmem:[#allocation3 + $0x244] sm:$0xf]  ;;  %v4445_v60 = vld [vmem:[#allocation3 + $0x250] sm:$0xf0]  ;;  %v4320_v33 = vor.u32 %v5460_v55, %v4317_v57  ;;  %v5451_v13 = vld [vmem:[#allocation3 + $0xf4] sm:$0xf0] }
 0x21a   :  { %2192 = vmatpush.bf16.msrb.mxu0 %v4496_v26  ;;  %v5524_v62 = vld [vmem:[#allocation3 + $0x344] sm:$0xf]  ;;  %v4573_v63 = vld [vmem:[#allocation3 + $0x350] sm:$0xf0]  ;;  %v4448_v1 = vor.u32 %v5492_v59, %v4445_v60  ;;  %v4403_v26 = vld [vmem:[#allocation3 + $0x1e8] sm:$0xf] }
 0x21b   :  { %2205 = vmatpush.bf16.msrb.mxu1 %v4624_v36  ;;  %v5424_v2 = vld [vmem:[#allocation3 + $0x24] sm:$0xf]  ;;  %v4173_v52 = vld [vmem:[#allocation3 + $0x30] sm:$0xf0]  ;;  %v4576_v5 = vor.u32 %v5524_v62, %v4573_v63  ;;  %v5515_v36 = vld [vmem:[#allocation3 + $0x2f4] sm:$0xf0] }
 0x21c   :  { %2167 = vmatpush.bf16.msra.mxu2 %v4224_v44  ;;  %v5456_v4 = vld [vmem:[#allocation3 + $0x124] sm:$0xf]  ;;  %v4301_v7 = vld [vmem:[#allocation3 + $0x130] sm:$0xf0]  ;;  %v4176_v6 = vor.u32 %v5424_v2, %v4173_v52  ;;  %v4276_v44 = vor.u32 %v5451_v13, %v4275_v8  ;;  %v4515_v50 = vld [vmem:[#allocation3 + $0x2c8] sm:$0xf] }
 0x21d   :  { %2180 = vmatpush.bf16.msra.mxu3 %v4352_v45  ;;  %v5488_v15 = vld [vmem:[#allocation3 + $0x224] sm:$0xf]  ;;  %v4429_v53 = vld [vmem:[#allocation3 + $0x230] sm:$0xf0]  ;;  %v4304_v11 = vor.u32 %v5456_v4, %v4301_v7  ;;  %v4404_v45 = vor.u32 %v5483_v32, %v4403_v26  ;;  %v5511_v14 = vld [vmem:[#allocation3 + $0x2d4] sm:$0xf0] }
 0x21e   :  { %2193 = vmatpush.bf16.msrb.mxu0 %v4480_v58  ;;  %v5520_v3 = vld [vmem:[#allocation3 + $0x324] sm:$0xf]  ;;  %v4557_v17 = vld [vmem:[#allocation3 + $0x330] sm:$0xf0]  ;;  %v4432_v23 = vor.u32 %v5488_v15, %v4429_v53  ;;  %v4532_v58 = vor.u32 %v5515_v36, %v4531_v35  ;;  %v4643_v27 = vld [vmem:[#allocation3 + $0x3c8] sm:$0xf] }
 0x21f   :  { %2206 = vmatpush.bf16.msrb.mxu1 %v4608_v49  ;;  %v5420_v61 = vld [vmem:[#allocation3 + $0x4] sm:$0xf]  ;;  %v4157_v22 = vld [vmem:[#allocation3 + $0x10] sm:$0xf0]  ;;  %v4560_v12 = vor.u32 %v5520_v3, %v4557_v17  ;;  %v4660_v49 = vor.u32 %v5547_v40, %v4659_v39  ;;  %v5543_v51 = vld [vmem:[#allocation3 + $0x3d4] sm:$0xf0] }
 0x220   :  { %2168 = vmatpush.bf16.msra.mxu2 %v4208_v43  ;;  %v5452_v24 = vld [vmem:[#allocation3 + $0x104] sm:$0xf]  ;;  %v4285_v20 = vld [vmem:[#allocation3 + $0x110] sm:$0xf0]  ;;  %v4160_v31 = vor.u32 %v5420_v61, %v4157_v22  ;;  %v4260_v43 = vor.u32 %v5447_v10, %v4259_v46  ;;  %v4243_v0 = vld [vmem:[#allocation3 + $0xa8] sm:$0xf] }
 0x221   :  { %2181 = vmatpush.bf16.msra.mxu3 %v4336_v54  ;;  %v5484_v29 = vld [vmem:[#allocation3 + $0x204] sm:$0xf]  ;;  %v4413_v19 = vld [vmem:[#allocation3 + $0x210] sm:$0xf0]  ;;  %v4288_v37 = vor.u32 %v5452_v24, %v4285_v20  ;;  %v4388_v54 = vor.u32 %v5479_v41, %v4387_v48  ;;  %v5443_v28 = vld [vmem:[#allocation3 + $0xb4] sm:$0xf0] }
 0x222   :  { %2194 = vmatpush.bf16.msrb.mxu0 %v4464_v9  ;;  %v5516_v25 = vld [vmem:[#allocation3 + $0x304] sm:$0xf]  ;;  %v4541_v30 = vld [vmem:[#allocation3 + $0x310] sm:$0xf0]  ;;  %v4416_v38 = vor.u32 %v5484_v29, %v4413_v19  ;;  %v4516_v9 = vor.u32 %v5511_v14, %v4515_v50  ;;  %v4371_v55 = vld [vmem:[#allocation3 + $0x1a8] sm:$0xf] }
 0x223   :  { %2207 = vmatpush.bf16.msrb.mxu1 %v4592_v56  ;;  %v4544_v42 = vor.u32 %v5516_v25, %v4541_v30  ;;  %v4644_v56 = vor.u32 %v5543_v51, %v4643_v27  ;;  %v5475_v57 = vld [vmem:[#allocation3 + $0x1b4] sm:$0xf0]  ;;  %v4499_v59 = vld [vmem:[#allocation3 + $0x2a8] sm:$0xf] }
 0x224   :  { %2169 = vmatpush.bf16.msra.mxu2 %v4192_v34  ;;  %v5507_v60 = vld [vmem:[#allocation3 + $0x2b4] sm:$0xf0]  ;;  %v4627_v62 = vld [vmem:[#allocation3 + $0x3a8] sm:$0xf]  ;;  %v4244_v34 = vor.u32 %v5443_v28, %v4243_v0 }
 0x225   :  { %2182 = vmatpush.bf16.msra.mxu3 %v4320_v33  ;;  %v5539_v63 = vld [vmem:[#allocation3 + $0x3b4] sm:$0xf0]  ;;  %v4372_v33 = vor.u32 %v5475_v57, %v4371_v55  ;;  %v4227_v2 = vld [vmem:[#allocation3 + $0x88] sm:$0xf] }
 0x226   :  { %2195 = vmatpush.bf16.msrb.mxu0 %v4448_v1  ;;  %v4500_v1 = vor.u32 %v5507_v60, %v4499_v59  ;;  %v5439_v52 = vld [vmem:[#allocation3 + $0x94] sm:$0xf0]  ;;  %v4355_v4 = vld [vmem:[#allocation3 + $0x188] sm:$0xf] }
 0x227   :  { %2208 = vmatpush.bf16.msrb.mxu1 %v4576_v5  ;;  %v4628_v5 = vor.u32 %v5539_v63, %v4627_v62  ;;  %v5471_v7 = vld [vmem:[#allocation3 + $0x194] sm:$0xf0]  ;;  %v4483_v15 = vld [vmem:[#allocation3 + $0x288] sm:$0xf] }
 0x228   :  { %2170 = vmatpush.bf16.msra.mxu2 %v4176_v6  ;;  %v5503_v53 = vld [vmem:[#allocation3 + $0x294] sm:$0xf0]  ;;  %v4611_v3 = vld [vmem:[#allocation3 + $0x388] sm:$0xf]  ;;  %v4228_v6 = vor.u32 %v5439_v52, %v4227_v2  ;;  %v4356_v61 = vor.u32 %v5471_v7, %v4355_v4  ;;  %v4405_v52 = vld [vmem:[#allocation3 + $0x1f8] sm:$0xf0] }
 0x229   :  { %2183 = vmatpush.bf16.msra.mxu3 %v4304_v11  ;;  %v5535_v17 = vld [vmem:[#allocation3 + $0x394] sm:$0xf0]  ;;  %v4484_v22 = vor.u32 %v5503_v53, %v4483_v15  ;;  %v4211_v11 = vld [vmem:[#allocation3 + $0x68] sm:$0xf]  ;;  %v5513_v4 = vld [vmem:[#allocation3 + $0x2ec] sm:$0xf] }
 0x22a   :  { %2196 = vmatpush.bf16.msrb.mxu0 %v4432_v23  ;;  %v5435_v23 = vld [vmem:[#allocation3 + $0x74] sm:$0xf0]  ;;  %v4339_v24 = vld [vmem:[#allocation3 + $0x168] sm:$0xf]  ;;  %v4612_v20 = vor.u32 %v5535_v17, %v4611_v3  ;;  %v5545_v53 = vld [vmem:[#allocation3 + $0x3ec] sm:$0xf] }
 0x22b   :  { %2209 = vmatpush.bf16.msrb.mxu1 %v4560_v12  ;;  %v5467_v29 = vld [vmem:[#allocation3 + $0x174] sm:$0xf0]  ;;  %v4467_v12 = vld [vmem:[#allocation3 + $0x268] sm:$0xf]  ;;  %v4212_v8 = vor.u32 %v5435_v23, %v4211_v11  ;;  %v4661_v3 = vld [vmem:[#allocation3 + $0x3f8] sm:$0xf0] }
 0x22c   :  { %2171 = vmatpush.bf16.msra.mxu2 %v4160_v31  ;;  %v5499_v19 = vld [vmem:[#allocation3 + $0x274] sm:$0xf0]  ;;  %v4595_v25 = vld [vmem:[#allocation3 + $0x368] sm:$0xf]  ;;  %v4340_v13 = vor.u32 %v5467_v29, %v4339_v24  ;;  %v5445_v11 = vld [vmem:[#allocation3 + $0xcc] sm:$0xf] }
 0x22d   :  { %2184 = vmatpush.bf16.msra.mxu3 %v4288_v37  ;;  %v5531_v30 = vld [vmem:[#allocation3 + $0x374] sm:$0xf0]  ;;  %v4468_v26 = vor.u32 %v5499_v19, %v4467_v12  ;;  %v4195_v31 = vld [vmem:[#allocation3 + $0x48] sm:$0xf]  ;;  %v4261_v23 = vld [vmem:[#allocation3 + $0xd8] sm:$0xf0] }
 0x22e   :  { %2197 = vmatpush.bf16.msrb.mxu0 %v4416_v38  ;;  %v5431_v32 = vld [vmem:[#allocation3 + $0x54] sm:$0xf0]  ;;  %v4323_v35 = vld [vmem:[#allocation3 + $0x148] sm:$0xf]  ;;  %v4596_v36 = vor.u32 %v5531_v30, %v4595_v25  ;;  %v5477_v24 = vld [vmem:[#allocation3 + $0x1cc] sm:$0xf] }
 0x22f   :  { %2210 = vmatpush.bf16.msrb.mxu1 %v4544_v42  ;;  %2172 = vmatmul.bf16.vlgmr.msra.gmra.mxu2 %v6200_v16  ;;  %v5463_v37 = vld [vmem:[#allocation3 + $0x154] sm:$0xf0]  ;;  %v4451_v38 = vld [vmem:[#allocation3 + $0x248] sm:$0xf]  ;;  %v4389_v29 = vld [vmem:[#allocation3 + $0x1d8] sm:$0xf0] }
 0x230   :  { %2216 = vmatpush.bf16.msrb.mxu2 %v4276_v44  ;;  %2185 = vmatmul.bf16.vlgmr.msra.gmra.mxu3 %v6204_v18  ;;  %v5495_v39 = vld [vmem:[#allocation3 + $0x254] sm:$0xf0]  ;;  %v4579_v40 = vld [vmem:[#allocation3 + $0x348] sm:$0xf]  ;;  %v4196_v44 = vor.u32 %v5431_v32, %v4195_v31  ;;  %v5509_v12 = vld [vmem:[#allocation3 + $0x2cc] sm:$0xf] }
 0x231   :  { %2229 = vmatpush.bf16.msrb.mxu3 %v4404_v45  ;;  %2198 = vmatmul.bf16.vlgmr.msrb.gmra.mxu0 %v6208_v47  ;;  %v5527_v42 = vld [vmem:[#allocation3 + $0x354] sm:$0xf0]  ;;  %v4324_v45 = vor.u32 %v5463_v37, %v4323_v35  ;;  %v4179_v46 = vld [vmem:[#allocation3 + $0x28] sm:$0xf]  ;;  %v4517_v19 = vld [vmem:[#allocation3 + $0x2d8] sm:$0xf0] }
 0x232   :  { %2242 = vmatpush.bf16.msra.mxu0 %v4532_v58  ;;  %2211 = vmatmul.bf16.vlgmr.msrb.gmra.mxu1 %v6212_v21  ;;  %v4452_v58 = vor.u32 %v5495_v39, %v4451_v38  ;;  %v5427_v10 = vld [vmem:[#allocation3 + $0x34] sm:$0xf0]  ;;  %v4307_v48 = vld [vmem:[#allocation3 + $0x128] sm:$0xf]  ;;  %v5541_v25 = vld [vmem:[#allocation3 + $0x3cc] sm:$0xf] }
 0x233   :  { %2255 = vmatpush.bf16.msra.mxu1 %v4660_v49  ;;  %v4580_v49 = vor.u32 %v5527_v42, %v4579_v40  ;;  %v5459_v41 = vld [vmem:[#allocation3 + $0x134] sm:$0xf0]  ;;  %v4435_v50 = vld [vmem:[#allocation3 + $0x228] sm:$0xf]  ;;  %v4645_v30 = vld [vmem:[#allocation3 + $0x3d8] sm:$0xf0] }
 0x234   :  { %2217 = vmatpush.bf16.msrb.mxu2 %v4260_v43  ;;  %v5491_v14 = vld [vmem:[#allocation3 + $0x234] sm:$0xf0]  ;;  %v4563_v27 = vld [vmem:[#allocation3 + $0x328] sm:$0xf]  ;;  %v4180_v43 = vor.u32 %v5427_v10, %v4179_v46  ;;  %v4308_v0 = vor.u32 %v5459_v41, %v4307_v48  ;;  %v5441_v31 = vld [vmem:[#allocation3 + $0xac] sm:$0xf] }
 0x235   :  { %2230 = vmatpush.bf16.msrb.mxu3 %v4388_v54  ;;  %v5523_v51 = vld [vmem:[#allocation3 + $0x334] sm:$0xf0]  ;;  %v4163_v54 = vld [vmem:[#allocation3 + $0x8] sm:$0xf]  ;;  %v4436_v28 = vor.u32 %v5491_v14, %v4435_v50  ;;  %v4245_v32 = vld [vmem:[#allocation3 + $0xb8] sm:$0xf0] }
 0x236   :  { %2243 = vmatpush.bf16.msra.mxu0 %v4516_v9  ;;  %v5423_v9 = vld [vmem:[#allocation3 + $0x14] sm:$0xf0]  ;;  %v4291_v55 = vld [vmem:[#allocation3 + $0x108] sm:$0xf]  ;;  %v4564_v59 = vor.u32 %v5523_v51, %v4563_v27  ;;  %v5473_v35 = vld [vmem:[#allocation3 + $0x1ac] sm:$0xf] }
 0x237   :  { %2256 = vmatpush.bf16.msra.mxu1 %v4644_v56  ;;  %v5455_v56 = vld [vmem:[#allocation3 + $0x114] sm:$0xf0]  ;;  %v4419_v57 = vld [vmem:[#allocation3 + $0x208] sm:$0xf]  ;;  %v4164_v2 = vor.u32 %v5423_v9, %v4163_v54  ;;  %v4373_v37 = vld [vmem:[#allocation3 + $0x1b8] sm:$0xf0] }
 0x238   :  { %2218 = vmatpush.bf16.msrb.mxu2 %v4244_v34  ;;  %v5487_v60 = vld [vmem:[#allocation3 + $0x214] sm:$0xf0]  ;;  %v4547_v62 = vld [vmem:[#allocation3 + $0x308] sm:$0xf]  ;;  %v5449_v34 = vld [vmem:[#allocation3 + $0xec] sm:$0xf]  ;;  %v4292_v7 = vor.u32 %v5455_v56, %v4291_v55 }
 0x239   :  { %2231 = vmatpush.bf16.msrb.mxu3 %v4372_v33  ;;  %v5519_v63 = vld [vmem:[#allocation3 + $0x314] sm:$0xf0]  ;;  %v4277_v33 = vld [vmem:[#allocation3 + $0xf8] sm:$0xf0]  ;;  %v4420_v15 = vor.u32 %v5487_v60, %v4419_v57  ;;  %v5505_v38 = vld [vmem:[#allocation3 + $0x2ac] sm:$0xf] }
 0x23a   :  { %2244 = vmatpush.bf16.msra.mxu0 %v4500_v1  ;;  %v5481_v1 = vld [vmem:[#allocation3 + $0x1ec] sm:$0xf]  ;;  %v4548_v17 = vor.u32 %v5519_v63, %v4547_v62  ;;  %v4501_v39 = vld [vmem:[#allocation3 + $0x2b8] sm:$0xf0] }
 0x23b   :  { %2257 = vmatpush.bf16.msra.mxu1 %v4628_v5  ;;  %v4533_v5 = vld [vmem:[#allocation3 + $0x2f8] sm:$0xf0]  ;;  %v5537_v40 = vld [vmem:[#allocation3 + $0x3ac] sm:$0xf] }
 0x23c   :  { %2219 = vmatpush.bf16.msrb.mxu2 %v4228_v6  ;;  %v4280_v6 = vor.u32 %v5449_v34, %v4277_v33  ;;  %v4629_v42 = vld [vmem:[#allocation3 + $0x3b8] sm:$0xf0]  ;;  %v5437_v46 = vld [vmem:[#allocation3 + $0x8c] sm:$0xf] }
 0x23d   :  { %2232 = vmatpush.bf16.msrb.mxu3 %v4356_v61  ;;  %v4408_v61 = vor.u32 %v5481_v1, %v4405_v52  ;;  %v4229_v10 = vld [vmem:[#allocation3 + $0x98] sm:$0xf0]  ;;  %v5469_v48 = vld [vmem:[#allocation3 + $0x18c] sm:$0xf] }
 0x23e   :  { %2245 = vmatpush.bf16.msra.mxu0 %v4484_v22  ;;  %v4536_v22 = vor.u32 %v5513_v4, %v4533_v5  ;;  %v4357_v41 = vld [vmem:[#allocation3 + $0x198] sm:$0xf0]  ;;  %v5501_v50 = vld [vmem:[#allocation3 + $0x28c] sm:$0xf] }
 0x23f   :  { %2258 = vmatpush.bf16.msra.mxu1 %v4612_v20  ;;  %v4664_v20 = vor.u32 %v5545_v53, %v4661_v3  ;;  %v4485_v14 = vld [vmem:[#allocation3 + $0x298] sm:$0xf0]  ;;  %v5533_v27 = vld [vmem:[#allocation3 + $0x38c] sm:$0xf]  ;;  %v4360_v54 = vor.u32 %v5469_v48, %v4357_v41 }
 0x240   :  { %2220 = vmatpush.bf16.msrb.mxu2 %v4212_v8  ;;  %v4264_v8 = vor.u32 %v5445_v11, %v4261_v23  ;;  %v4613_v51 = vld [vmem:[#allocation3 + $0x398] sm:$0xf0]  ;;  %v4488_v9 = vor.u32 %v5501_v50, %v4485_v14  ;;  %v5465_v55 = vld [vmem:[#allocation3 + $0x16c] sm:$0xf] }
 0x241   :  { %2233 = vmatpush.bf16.msrb.mxu3 %v4340_v13  ;;  %v4392_v13 = vor.u32 %v5477_v24, %v4389_v29  ;;  %v4616_v56 = vor.u32 %v5533_v27, %v4613_v51  ;;  %v4341_v57 = vld [vmem:[#allocation3 + $0x178] sm:$0xf0]  ;;  %v5529_v62 = vld [vmem:[#allocation3 + $0x36c] sm:$0xf] }
 0x242   :  { %2246 = vmatpush.bf16.msra.mxu0 %v4468_v26  ;;  %v4520_v26 = vor.u32 %v5509_v12, %v4517_v19  ;;  %v4469_v60 = vld [vmem:[#allocation3 + $0x278] sm:$0xf0]  ;;  %v4344_v33 = vor.u32 %v5465_v55, %v4341_v57  ;;  %v5461_v4 = vld [vmem:[#allocation3 + $0x14c] sm:$0xf] }
 0x243   :  { %2259 = vmatpush.bf16.msra.mxu1 %v4596_v36  ;;  %v4648_v36 = vor.u32 %v5541_v25, %v4645_v30  ;;  %v4597_v63 = vld [vmem:[#allocation3 + $0x378] sm:$0xf0]  ;;  %v5525_v3 = vld [vmem:[#allocation3 + $0x34c] sm:$0xf] }
 0x244   :  { %2221 = vmatpush.bf16.msrb.mxu2 %v4196_v44  ;;  %v4248_v44 = vor.u32 %v5441_v31, %v4245_v32  ;;  %v4197_v52 = vld [vmem:[#allocation3 + $0x58] sm:$0xf0]  ;;  %v4600_v5 = vor.u32 %v5529_v62, %v4597_v63  ;;  %v5425_v11 = vld [vmem:[#allocation3 + $0x2c] sm:$0xf] }
 0x245   :  { %2234 = vmatpush.bf16.msrb.mxu3 %v4324_v45  ;;  %v4376_v45 = vor.u32 %v5473_v35, %v4373_v37  ;;  %v4453_v53 = vld [vmem:[#allocation3 + $0x258] sm:$0xf0]  ;;  %v5457_v24 = vld [vmem:[#allocation3 + $0x12c] sm:$0xf] }
 0x246   :  { %2247 = vmatpush.bf16.msra.mxu0 %v4452_v58  ;;  %v4504_v58 = vor.u32 %v5505_v38, %v4501_v39  ;;  %v4181_v23 = vld [vmem:[#allocation3 + $0x38] sm:$0xf0]  ;;  %v5489_v12 = vld [vmem:[#allocation3 + $0x22c] sm:$0xf] }
 0x247   :  { %2260 = vmatpush.bf16.msra.mxu1 %v4580_v49  ;;  %v4632_v49 = vor.u32 %v5537_v40, %v4629_v42  ;;  %v4309_v29 = vld [vmem:[#allocation3 + $0x138] sm:$0xf0]  ;;  %v5521_v25 = vld [vmem:[#allocation3 + $0x32c] sm:$0xf] }
 0x248   :  { %2222 = vmatpush.bf16.msrb.mxu2 %v4180_v43  ;;  %v4232_v43 = vor.u32 %v5437_v46, %v4229_v10  ;;  %v4437_v19 = vld [vmem:[#allocation3 + $0x238] sm:$0xf0]  ;;  %v5421_v31 = vld [vmem:[#allocation3 + $0xc] sm:$0xf]  ;;  %v1462_v10 = vld [vmem:[%s6318_s4] sm:$0xf] }
 0x249   :  { %2235 = vmatpush.bf16.msrb.mxu3 %v4308_v0  ;;  %v5433_v0 = vld [vmem:[#allocation3 + $0x6c] sm:$0xf]  ;;  %v4565_v30 = vld [vmem:[#allocation3 + $0x338] sm:$0xf0]  ;;  %v1464_v41 = vperm.slane %v1462_v10, 0  ;;  %v1465_v55 = vperm.slane %v1462_v10, 1 }
 0x24a   :  { %2248 = vmatpush.bf16.msra.mxu0 %v4436_v28  ;;  %v4213_v28 = vld [vmem:[#allocation3 + $0x78] sm:$0xf0]  ;;  %v5453_v35 = vld [vmem:[#allocation3 + $0x10c] sm:$0xf] }
 0x24b   :  { %2261 = vmatpush.bf16.msra.mxu1 %v4564_v59  ;;  %v5497_v59 = vld [vmem:[#allocation3 + $0x26c] sm:$0xf]  ;;  %v4216_v34 = vor.u32 %v5433_v0, %v4213_v28  ;;  %v4165_v32 = vld [vmem:[#allocation3 + $0x18] sm:$0xf0] }
 0x24c   :  { %2223 = vmatpush.bf16.msrb.mxu2 %v4164_v2  ;;  %v4472_v1 = vor.u32 %v5497_v59, %v4469_v60  ;;  %v5429_v2 = vld [vmem:[#allocation3 + $0x4c] sm:$0xf]  ;;  %v4293_v37 = vld [vmem:[#allocation3 + $0x118] sm:$0xf0] }
 0x24d   :  { %2236 = vmatpush.bf16.msrb.mxu3 %v4292_v7  ;;  %v4325_v7 = vld [vmem:[#allocation3 + $0x158] sm:$0xf0]  ;;  %v5485_v38 = vld [vmem:[#allocation3 + $0x20c] sm:$0xf] }
 0x24e   :  { %2249 = vmatpush.bf16.msra.mxu0 %v4420_v15  ;;  %v5493_v15 = vld [vmem:[#allocation3 + $0x24c] sm:$0xf]  ;;  %v4421_v39 = vld [vmem:[#allocation3 + $0x218] sm:$0xf0] }
 0x24f   :  { %2262 = vmatpush.bf16.msra.mxu1 %v4548_v17  ;;  %2224 = vmatmul.bf16.vlgmr.msrb.gmra.mxu2 %v6200_v16  ;;  %v4581_v17 = vld [vmem:[#allocation3 + $0x358] sm:$0xf0]  ;;  %v5517_v40 = vld [vmem:[#allocation3 + $0x30c] sm:$0xf] }
 0x250   :  { %2268 = vmatpush.bf16.msra.mxu2 %v4280_v6  ;;  %2237 = vmatmul.bf16.vlgmr.msrb.gmra.mxu3 %v6204_v18  ;;  %v4200_v6 = vor.u32 %v5429_v2, %v4197_v52  ;;  %v4549_v42 = vld [vmem:[#allocation3 + $0x318] sm:$0xf0] }
 0x251   :  { %2281 = vmatpush.bf16.msra.mxu3 %v4408_v61  ;;  %2250 = vmatmul.bf16.vlgmr.msra.gmra.mxu0 %v6208_v47  ;;  %v4328_v61 = vor.u32 %v5461_v4, %v4325_v7  ;;  %v4552_v46 = vor.u32 %v5517_v40, %v4549_v42  ;;  %v1466_v7 = vperm.slane %v1462_v10, 2 }
 0x252   :  { %2294 = vmatpush.bf16.msrb.mxu0 %v4536_v22  ;;  %2263 = vmatmul.bf16.vlgmr.msra.gmra.mxu1 %v6212_v21  ;;  %v4456_v22 = vor.u32 %v5493_v15, %v4453_v53 }
 0x253   :  { %2307 = vmatpush.bf16.msrb.mxu1 %v4664_v20  ;;  %v4584_v20 = vor.u32 %v5525_v3, %v4581_v17 }
 0x254   :  { %2269 = vmatpush.bf16.msra.mxu2 %v4264_v8  ;;  %v4184_v8 = vor.u32 %v5425_v11, %v4181_v23 }
 0x255   :  { %2282 = vmatpush.bf16.msra.mxu3 %v4392_v13  ;;  %v4312_v13 = vor.u32 %v5457_v24, %v4309_v29 }
 0x256   :  { %2295 = vmatpush.bf16.msrb.mxu0 %v4520_v26  ;;  %v4440_v26 = vor.u32 %v5489_v12, %v4437_v19  ;;  %v1467_v19 = vperm.slane %v1462_v10, 3 }
 0x257   :  { %2308 = vmatpush.bf16.msrb.mxu1 %v4648_v36  ;;  %v4568_v36 = vor.u32 %v5521_v25, %v4565_v30 }
 0x258   :  { %2270 = vmatpush.bf16.msra.mxu2 %v4248_v44  ;;  %v4168_v44 = vor.u32 %v5421_v31, %v4165_v32 }
 0x259   :  { %2283 = vmatpush.bf16.msra.mxu3 %v4376_v45  ;;  %v4296_v45 = vor.u32 %v5453_v35, %v4293_v37 }
 0x25a   :  { %2296 = vmatpush.bf16.msrb.mxu0 %v4504_v58  ;;  %v4424_v58 = vor.u32 %v5485_v38, %v4421_v39 }
 0x25b   :  { %2309 = vmatpush.bf16.msrb.mxu1 %v4632_v49 }
 0x25c   :  { %2271 = vmatpush.bf16.msra.mxu2 %v4232_v43 }
 0x25d   :  { %2284 = vmatpush.bf16.msra.mxu3 %v4360_v54 }
 0x25e   :  { %2297 = vmatpush.bf16.msrb.mxu0 %v4488_v9 }
 0x25f   :  { %2310 = vmatpush.bf16.msrb.mxu1 %v4616_v56 }
 0x260   :  { %2272 = vmatpush.bf16.msra.mxu2 %v4216_v34 }
 0x261   :  { %2285 = vmatpush.bf16.msra.mxu3 %v4344_v33 }
 0x262   :  { %2298 = vmatpush.bf16.msrb.mxu0 %v4472_v1 }
 0x263   :  { %2311 = vmatpush.bf16.msrb.mxu1 %v4600_v5 }
 0x264   :  { %2273 = vmatpush.bf16.msra.mxu2 %v4200_v6 }
 0x265   :  { %2286 = vmatpush.bf16.msra.mxu3 %v4328_v61 }
 0x266   :  { %2299 = vmatpush.bf16.msrb.mxu0 %v4456_v22 }
 0x267   :  { %2312 = vmatpush.bf16.msrb.mxu1 %v4584_v20 }
 0x268   :  { %2274 = vmatpush.bf16.msra.mxu2 %v4184_v8 }
 0x269   :  { %2287 = vmatpush.bf16.msra.mxu3 %v4312_v13 }
 0x26a   :  { %2300 = vmatpush.bf16.msrb.mxu0 %v4440_v26 }
 0x26b   :  { %2313 = vmatpush.bf16.msrb.mxu1 %v4568_v36 }
 0x26c   :  { %2275 = vmatpush.bf16.msra.mxu2 %v4168_v44 }
 0x26d   :  { %2288 = vmatpush.bf16.msra.mxu3 %v4296_v45 }
 0x26e   :  { %2301 = vmatpush.bf16.msrb.mxu0 %v4424_v58 }
 0x26f   :  { %2314 = vmatpush.bf16.msrb.mxu1 %v4552_v46  ;;  %2276 = vmatmul.bf16.vlgmr.msra.gmra.mxu2 %v6200_v16 }
 0x270   :  { %2289 = vmatmul.bf16.vlgmr.msra.gmra.mxu3 %v6204_v18 }
 0x271   :  { %2302 = vmatmul.bf16.vlgmr.msrb.gmra.mxu0 %v6208_v47 }
 0x272   :  { %2315 = vmatmul.bf16.vlgmr.msrb.gmra.mxu1 %v6212_v21 }
 0x28e   :  { %v2147_v48 = vpop.f32.mrf.mxu0 }
 0x28f   :  { %v2160_v49 = vpop.f32.mrf.mxu1 }
 0x292   :  { %v2121_v50 = vpop.f32.mrf.mxu2 }
 0x293   :  { %v2122_v14 = vadd.f32 %v2121_v50, %v1464_v41  ;;  %v2134_v27 = vpop.f32.mrf.mxu3 }
 0x295   :  { %v2135_v51 = vadd.f32 %v2134_v27, %v2122_v14 }
 0x296   :  { %v2149_v43 = vpop.f32.mrf.mxu0 }
 0x297   :  { %v2162_v54 = vpop.f32.mrf.mxu1  ;;  %v2148_v16 = vadd.f32 %v2147_v48, %v2135_v51 }
 0x299   :  { %v6233_v9 = vadd.f32 %v2160_v49, %v2148_v16 }
 0x29a   :  { %v2123_v18 = vpop.f32.mrf.mxu2 }
 0x29b   :  { %v2320_v47 = vmax.f32 %v6233_v9, 0.0  ;;  %v2136_v21 = vpop.f32.mrf.mxu3 }
 0x2ae   :  { %v2199_v0 = vpop.f32.mrf.mxu0 }
 0x2af   :  { %v2212_v28 = vpop.f32.mrf.mxu1 }
 0x2b2   :  { %v2173_v56 = vpop.f32.mrf.mxu2 }
 0x2b3   :  { %v2174_v57 = vadd.f32 %v2173_v56, %v1465_v55  ;;  %v2186_v59 = vpop.f32.mrf.mxu3 }
 0x2b5   :  { %v2187_v60 = vadd.f32 %v2186_v59, %v2174_v57 }
 0x2b6   :  { %v2201_v62 = vpop.f32.mrf.mxu0 }
 0x2b7   :  { %v2214_v63 = vpop.f32.mrf.mxu1  ;;  %v2200_v34 = vadd.f32 %v2199_v0, %v2187_v60 }
 0x2b9   :  { %v6236_v33 = vadd.f32 %v2212_v28, %v2200_v34 }
 0x2ba   :  { %v2175_v1 = vpop.f32.mrf.mxu2 }
 0x2bb   :  { %v2321_v2 = vmax.f32 %v6236_v33, 0.0  ;;  %v2188_v52 = vpop.f32.mrf.mxu3 }
 0x2ce   :  { %v2251_v4 = vpop.f32.mrf.mxu0 }
 0x2cf   :  { %v2264_v5 = vpop.f32.mrf.mxu1 }
 0x2d2   :  { %v2225_v15 = vpop.f32.mrf.mxu2 }
 0x2d3   :  { %v2226_v53 = vadd.f32 %v2225_v15, %v1466_v7  ;;  %v2238_v3 = vpop.f32.mrf.mxu3 }
 0x2d5   :  { %v2239_v17 = vadd.f32 %v2238_v3, %v2226_v53 }
 0x2d6   :  { %v2253_v6 = vpop.f32.mrf.mxu0 }
 0x2d7   :  { %v2266_v61 = vpop.f32.mrf.mxu1  ;;  %v2252_v22 = vadd.f32 %v2251_v4, %v2239_v17 }
 0x2d9   :  { %v6239_v11 = vadd.f32 %v2264_v5, %v2252_v22 }
 0x2da   :  { %v2227_v23 = vpop.f32.mrf.mxu2 }
 0x2db   :  { %v2322_v24 = vmax.f32 %v6239_v11, 0.0  ;;  %v2240_v20 = vpop.f32.mrf.mxu3 }
 0x2ee   :  { %v2303_v29 = vpop.f32.mrf.mxu0 }
 0x2ef   :  { %v2316_v12 = vpop.f32.mrf.mxu1 }
 0x2f2   :  { %v2277_v25 = vpop.f32.mrf.mxu2 }
 0x2f3   :  { %v2278_v30 = vadd.f32 %v2277_v25, %v1467_v19  ;;  %v2290_v8 = vpop.f32.mrf.mxu3 }
 0x2f5   :  { %v2291_v13 = vadd.f32 %v2290_v8, %v2278_v30 }
 0x2f6   :  { %v2305_v26 = vpop.f32.mrf.mxu0 }
 0x2f7   :  { %v2318_v31 = vpop.f32.mrf.mxu1  ;;  %v2304_v32 = vadd.f32 %v2303_v29, %v2291_v13 }
 0x2f9   :  { %v6242_v35 = vadd.f32 %v2316_v12, %v2304_v32 }
 0x2fa   :  { %v2279_v36 = vpop.f32.mrf.mxu2 }
 0x2fb   :  { %v2323_v37 = vmax.f32 %v6242_v35, 0.0  ;;  %v2292_v38 = vpop.f32.mrf.mxu3 }
 0x2fc   :  { %5814 = dma.done.wait [#allocation6 + $0x2], 16384 }
 0x2fd   :  { %5815 = vsyncadd [#allocation6 + $0x2], 4294950912  ;;  %v4779_v39 = vld [vmem:[#allocation4 + $0xe0] sm:$0xf]  ;;  %v5578_v40 = vld [vmem:[#allocation4 + $0xec] sm:$0xf0] }
 0x2fe   :  { %v4907_v42 = vld [vmem:[#allocation4 + $0x1e0] sm:$0xf]  ;;  %v4780_v44 = vor.u32 %v5578_v40, %v4779_v39  ;;  %v5610_v45 = vld [vmem:[#allocation4 + $0x1ec] sm:$0xf0] }
 0x2ff   :  { %v5035_v58 = vld [vmem:[#allocation4 + $0x2e0] sm:$0xf]  ;;  %v5642_v46 = vld [vmem:[#allocation4 + $0x2ec] sm:$0xf0]  ;;  %v4908_v10 = vor.u32 %v5610_v45, %v4907_v42 }
 0x300   :  { %v5036_v48 = vor.u32 %v5642_v46, %v5035_v58  ;;  %v5163_v49 = vld [vmem:[#allocation4 + $0x3e0] sm:$0xf]  ;;  %v5674_v41 = vld [vmem:[#allocation4 + $0x3ec] sm:$0xf0]  ;;  %3108 = vmatpush.bf16.msrb.mxu2 %v4780_v44 }
 0x301   :  { %v4763_v50 = vld [vmem:[#allocation4 + $0xc0] sm:$0xf]  ;;  %v5164_v14 = vor.u32 %v5674_v41, %v5163_v49  ;;  %v5574_v27 = vld [vmem:[#allocation4 + $0xcc] sm:$0xf0]  ;;  %3121 = vmatpush.bf16.msrb.mxu3 %v4908_v10 }
 0x302   :  { %v4891_v51 = vld [vmem:[#allocation4 + $0x1c0] sm:$0xf]  ;;  %v5606_v43 = vld [vmem:[#allocation4 + $0x1cc] sm:$0xf0]  ;;  %3134 = vmatpush.bf16.msra.mxu0 %v5036_v48  ;;  %v4764_v54 = vor.u32 %v5574_v27, %v4763_v50 }
 0x303   :  { %v4892_v16 = vor.u32 %v5606_v43, %v4891_v51  ;;  %v5019_v18 = vld [vmem:[#allocation4 + $0x2c0] sm:$0xf]  ;;  %v5638_v21 = vld [vmem:[#allocation4 + $0x2cc] sm:$0xf0]  ;;  %3147 = vmatpush.bf16.msra.mxu1 %v5164_v14 }
 0x304   :  { %v5147_v0 = vld [vmem:[#allocation4 + $0x3c0] sm:$0xf]  ;;  %v5020_v28 = vor.u32 %v5638_v21, %v5019_v18  ;;  %v5670_v55 = vld [vmem:[#allocation4 + $0x3cc] sm:$0xf0]  ;;  %3109 = vmatpush.bf16.msrb.mxu2 %v4764_v54 }
 0x305   :  { %v4747_v56 = vld [vmem:[#allocation4 + $0xa0] sm:$0xf]  ;;  %v5570_v57 = vld [vmem:[#allocation4 + $0xac] sm:$0xf0]  ;;  %v5148_v59 = vor.u32 %v5670_v55, %v5147_v0  ;;  %3122 = vmatpush.bf16.msrb.mxu3 %v4892_v16 }
 0x306   :  { %v4875_v60 = vld [vmem:[#allocation4 + $0x1a0] sm:$0xf]  ;;  %v5602_v62 = vld [vmem:[#allocation4 + $0x1ac] sm:$0xf0]  ;;  %v4748_v34 = vor.u32 %v5570_v57, %v4747_v56  ;;  %3135 = vmatpush.bf16.msra.mxu0 %v5020_v28 }
 0x307   :  { %v5003_v63 = vld [vmem:[#allocation4 + $0x2a0] sm:$0xf]  ;;  %v5634_v1 = vld [vmem:[#allocation4 + $0x2ac] sm:$0xf0]  ;;  %v4876_v5 = vor.u32 %v5602_v62, %v4875_v60  ;;  %3148 = vmatpush.bf16.msra.mxu1 %v5148_v59 }
 0x308   :  { %v5131_v52 = vld [vmem:[#allocation4 + $0x3a0] sm:$0xf]  ;;  %v5666_v4 = vld [vmem:[#allocation4 + $0x3ac] sm:$0xf0]  ;;  %v5004_v7 = vor.u32 %v5634_v1, %v5003_v63  ;;  %3110 = vmatpush.bf16.msrb.mxu2 %v4748_v34 }
 0x309   :  { %v4731_v15 = vld [vmem:[#allocation4 + $0x80] sm:$0xf]  ;;  %v5566_v53 = vld [vmem:[#allocation4 + $0x8c] sm:$0xf0]  ;;  %v5132_v17 = vor.u32 %v5666_v4, %v5131_v52  ;;  %3123 = vmatpush.bf16.msrb.mxu3 %v4876_v5 }
 0x30a   :  { %v4859_v3 = vld [vmem:[#allocation4 + $0x180] sm:$0xf]  ;;  %v5598_v6 = vld [vmem:[#allocation4 + $0x18c] sm:$0xf0]  ;;  %v4732_v29 = vor.u32 %v5566_v53, %v4731_v15  ;;  %3136 = vmatpush.bf16.msra.mxu0 %v5004_v7  ;;  %v5576_v53 = vld [vmem:[#allocation4 + $0xe4] sm:$0xf] }
 0x30b   :  { %v4987_v61 = vld [vmem:[#allocation4 + $0x280] sm:$0xf]  ;;  %v5630_v22 = vld [vmem:[#allocation4 + $0x28c] sm:$0xf0]  ;;  %v4860_v12 = vor.u32 %v5598_v6, %v4859_v3  ;;  %3149 = vmatpush.bf16.msra.mxu1 %v5132_v17  ;;  %v4781_v3 = vld [vmem:[#allocation4 + $0xf0] sm:$0xf0] }
 0x30c   :  { %v5115_v23 = vld [vmem:[#allocation4 + $0x380] sm:$0xf]  ;;  %v5662_v20 = vld [vmem:[#allocation4 + $0x38c] sm:$0xf0]  ;;  %v4988_v19 = vor.u32 %v5630_v22, %v4987_v61  ;;  %3111 = vmatpush.bf16.msrb.mxu2 %v4732_v29  ;;  %v5608_v17 = vld [vmem:[#allocation4 + $0x1e4] sm:$0xf] }
 0x30d   :  { %v4715_v25 = vld [vmem:[#allocation4 + $0x60] sm:$0xf]  ;;  %v5562_v30 = vld [vmem:[#allocation4 + $0x6c] sm:$0xf0]  ;;  %v5116_v13 = vor.u32 %v5662_v20, %v5115_v23  ;;  %3124 = vmatpush.bf16.msrb.mxu3 %v4860_v12  ;;  %v4909_v61 = vld [vmem:[#allocation4 + $0x1f0] sm:$0xf0] }
 0x30e   :  { %v4843_v8 = vld [vmem:[#allocation4 + $0x160] sm:$0xf]  ;;  %v5594_v26 = vld [vmem:[#allocation4 + $0x16c] sm:$0xf0]  ;;  %v4716_v39 = vor.u32 %v5562_v30, %v4715_v25  ;;  %3137 = vmatpush.bf16.msra.mxu0 %v4988_v19  ;;  %v5640_v22 = vld [vmem:[#allocation4 + $0x2e4] sm:$0xf]  ;;  %v4784_v30 = vor.u32 %v5576_v53, %v4781_v3 }
 0x30f   :  { %v4971_v31 = vld [vmem:[#allocation4 + $0x260] sm:$0xf]  ;;  %v5626_v32 = vld [vmem:[#allocation4 + $0x26c] sm:$0xf0]  ;;  %v4844_v40 = vor.u32 %v5594_v26, %v4843_v8  ;;  %3150 = vmatpush.bf16.msra.mxu1 %v5116_v13  ;;  %v5037_v23 = vld [vmem:[#allocation4 + $0x2f0] sm:$0xf0]  ;;  %v4912_v8 = vor.u32 %v5608_v17, %v4909_v61 }
 0x310   :  { %v5099_v36 = vld [vmem:[#allocation4 + $0x360] sm:$0xf]  ;;  %v5658_v38 = vld [vmem:[#allocation4 + $0x36c] sm:$0xf0]  ;;  %v4972_v42 = vor.u32 %v5626_v32, %v4971_v31  ;;  %3112 = vmatpush.bf16.msrb.mxu2 %v4716_v39  ;;  %v5672_v12 = vld [vmem:[#allocation4 + $0x3e4] sm:$0xf]  ;;  %v5040_v13 = vor.u32 %v5640_v22, %v5037_v23 }
 0x311   :  { %v4699_v44 = vld [vmem:[#allocation4 + $0x40] sm:$0xf]  ;;  %v5558_v45 = vld [vmem:[#allocation4 + $0x4c] sm:$0xf0]  ;;  %v5100_v46 = vor.u32 %v5658_v38, %v5099_v36  ;;  %3125 = vmatpush.bf16.msrb.mxu3 %v4844_v40  ;;  %v5165_v19 = vld [vmem:[#allocation4 + $0x3f0] sm:$0xf0] }
 0x312   :  { %v4827_v58 = vld [vmem:[#allocation4 + $0x140] sm:$0xf]  ;;  %v5590_v10 = vld [vmem:[#allocation4 + $0x14c] sm:$0xf0]  ;;  %v4700_v14 = vor.u32 %v5558_v45, %v4699_v44  ;;  %3138 = vmatpush.bf16.msra.mxu0 %v4972_v42  ;;  %v5572_v26 = vld [vmem:[#allocation4 + $0xc4] sm:$0xf]  ;;  %v5168_v36 = vor.u32 %v5672_v12, %v5165_v19  ;;  %v6248_v42 = vpack.c.bf16 %v2320_v47, %v2320_v47  ;;  %v6263_v47 = vpack.c.bf16 %v2323_v37, %v2323_v37 }
 0x313   :  { %v4955_v48 = vld [vmem:[#allocation4 + $0x240] sm:$0xf]  ;;  %v5622_v49 = vld [vmem:[#allocation4 + $0x24c] sm:$0xf0]  ;;  %v4828_v27 = vor.u32 %v5590_v10, %v4827_v58  ;;  %3151 = vmatpush.bf16.msra.mxu1 %v5100_v46  ;;  %v4765_v31 = vld [vmem:[#allocation4 + $0xd0] sm:$0xf0]  ;;  %v6253_v58 = vpack.c.bf16 %v2321_v2, %v2321_v2  ;;  %v6258_v46 = vpack.c.bf16 %v2322_v24, %v2322_v24 }
 0x314   :  { %v5083_v41 = vld [vmem:[#allocation4 + $0x340] sm:$0xf]  ;;  %v5654_v50 = vld [vmem:[#allocation4 + $0x34c] sm:$0xf0]  ;;  %v4956_v51 = vor.u32 %v5622_v49, %v4955_v48  ;;  %3113 = vmatpush.bf16.msrb.mxu2 %v4700_v14  ;;  %v5604_v32 = vld [vmem:[#allocation4 + $0x1c4] sm:$0xf]  ;;  %v4768_v9 = vor.u32 %v5572_v26, %v4765_v31 }
 0x315   :  { %v4683_v43 = vld [vmem:[#allocation4 + $0x20] sm:$0xf]  ;;  %v5554_v54 = vld [vmem:[#allocation4 + $0x2c] sm:$0xf0]  ;;  %v5084_v18 = vor.u32 %v5654_v50, %v5083_v41  ;;  %3126 = vmatpush.bf16.msrb.mxu3 %v4828_v27  ;;  %v4893_v38 = vld [vmem:[#allocation4 + $0x1d0] sm:$0xf0] }
 0x316   :  { %v4811_v16 = vld [vmem:[#allocation4 + $0x120] sm:$0xf]  ;;  %v5586_v21 = vld [vmem:[#allocation4 + $0x12c] sm:$0xf0]  ;;  %v4684_v57 = vor.u32 %v5554_v54, %v4683_v43  ;;  %3139 = vmatpush.bf16.msra.mxu0 %v4956_v51  ;;  %v5636_v39 = vld [vmem:[#allocation4 + $0x2c4] sm:$0xf]  ;;  %v4896_v10 = vor.u32 %v5604_v32, %v4893_v38 }
 0x317   :  { %v4939_v0 = vld [vmem:[#allocation4 + $0x220] sm:$0xf]  ;;  %v5618_v28 = vld [vmem:[#allocation4 + $0x22c] sm:$0xf0]  ;;  %v4812_v62 = vor.u32 %v5586_v21, %v4811_v16  ;;  %3152 = vmatpush.bf16.msra.mxu1 %v5084_v18  ;;  %v5021_v40 = vld [vmem:[#allocation4 + $0x2d0] sm:$0xf0] }
 0x318   :  { %v5067_v55 = vld [vmem:[#allocation4 + $0x320] sm:$0xf]  ;;  %v5650_v56 = vld [vmem:[#allocation4 + $0x32c] sm:$0xf0]  ;;  %v4940_v63 = vor.u32 %v5618_v28, %v4939_v0  ;;  %3114 = vmatpush.bf16.msrb.mxu2 %v4684_v57  ;;  %v5668_v44 = vld [vmem:[#allocation4 + $0x3c4] sm:$0xf]  ;;  %v5024_v33 = vor.u32 %v5636_v39, %v5021_v40 }
 0x319   :  { %v4667_v59 = vld [vmem:[#allocation4] sm:$0xf]  ;;  %v5550_v60 = vld [vmem:[#allocation4 + $0xc] sm:$0xf0]  ;;  %v5068_v4 = vor.u32 %v5650_v56, %v5067_v55  ;;  %3127 = vmatpush.bf16.msrb.mxu3 %v4812_v62  ;;  %v5149_v45 = vld [vmem:[#allocation4 + $0x3d0] sm:$0xf0] }
 0x31a   :  { %v4795_v34 = vld [vmem:[#allocation4 + $0x100] sm:$0xf]  ;;  %v5582_v1 = vld [vmem:[#allocation4 + $0x10c] sm:$0xf0]  ;;  %v4668_v6 = vor.u32 %v5550_v60, %v4667_v59  ;;  %3140 = vmatpush.bf16.msra.mxu0 %v4940_v63  ;;  %v5568_v48 = vld [vmem:[#allocation4 + $0xa4] sm:$0xf]  ;;  %v5152_v11 = vor.u32 %v5668_v44, %v5149_v45 }
 0x31b   :  { %v4923_v52 = vld [vmem:[#allocation4 + $0x200] sm:$0xf]  ;;  %v5614_v5 = vld [vmem:[#allocation4 + $0x20c] sm:$0xf0]  ;;  %v4796_v20 = vor.u32 %v5582_v1, %v4795_v34  ;;  %3153 = vmatpush.bf16.msra.mxu1 %v5068_v4  ;;  %v4749_v2 = vld [vmem:[#allocation4 + $0xb0] sm:$0xf0] }
 0x31c   :  { %v5051_v7 = vld [vmem:[#allocation4 + $0x300] sm:$0xf]  ;;  %v5646_v15 = vld [vmem:[#allocation4 + $0x30c] sm:$0xf0]  ;;  %v4924_v29 = vor.u32 %v5614_v5, %v4923_v52  ;;  %3115 = vmatpush.bf16.msrb.mxu2 %v4668_v6  ;;  %v5600_v49 = vld [vmem:[#allocation4 + $0x1a4] sm:$0xf]  ;;  %v4752_v35 = vor.u32 %v5568_v48, %v4749_v2 }
 0x31d   :  { %v5052_v25 = vor.u32 %v5646_v15, %v5051_v7  ;;  %3128 = vmatpush.bf16.msrb.mxu3 %v4796_v20  ;;  %v4877_v41 = vld [vmem:[#allocation4 + $0x1b0] sm:$0xf0]  ;;  %v5632_v24 = vld [vmem:[#allocation4 + $0x2a4] sm:$0xf] }
 0x31e   :  { %3141 = vmatpush.bf16.msra.mxu0 %v4924_v29  ;;  %v5005_v50 = vld [vmem:[#allocation4 + $0x2b0] sm:$0xf0]  ;;  %v5664_v14 = vld [vmem:[#allocation4 + $0x3a4] sm:$0xf]  ;;  %v4880_v37 = vor.u32 %v5600_v49, %v4877_v41 }
 0x31f   :  { %3154 = vmatpush.bf16.msra.mxu1 %v5052_v25  ;;  %3116 = vmatmul.bf16.vlgmr.msrb.gmra.mxu2 %v6248_v42  ;;  %v5133_v27 = vld [vmem:[#allocation4 + $0x3b0] sm:$0xf0]  ;;  %v5008_v51 = vor.u32 %v5632_v24, %v5005_v50  ;;  %v5564_v43 = vld [vmem:[#allocation4 + $0x84] sm:$0xf] }
 0x320   :  { %3160 = vmatpush.bf16.msra.mxu2 %v4784_v30  ;;  %3129 = vmatmul.bf16.vlgmr.msrb.gmra.mxu3 %v6253_v58  ;;  %v4733_v54 = vld [vmem:[#allocation4 + $0x90] sm:$0xf0]  ;;  %v5596_v16 = vld [vmem:[#allocation4 + $0x184] sm:$0xf]  ;;  %v5136_v18 = vor.u32 %v5664_v14, %v5133_v27 }
 0x321   :  { %3173 = vmatpush.bf16.msra.mxu3 %v4912_v8  ;;  %3142 = vmatmul.bf16.vlgmr.msra.gmra.mxu0 %v6258_v46  ;;  %v4861_v21 = vld [vmem:[#allocation4 + $0x190] sm:$0xf0]  ;;  %v5628_v0 = vld [vmem:[#allocation4 + $0x284] sm:$0xf]  ;;  %v4736_v57 = vor.u32 %v5564_v43, %v4733_v54  ;;  %v5611_v54 = vld [vmem:[#allocation4 + $0x1f4] sm:$0xf0] }
 0x322   :  { %3186 = vmatpush.bf16.msrb.mxu0 %v5040_v13  ;;  %3155 = vmatmul.bf16.vlgmr.msra.gmra.mxu1 %v6263_v47  ;;  %v4989_v28 = vld [vmem:[#allocation4 + $0x290] sm:$0xf0]  ;;  %v5660_v55 = vld [vmem:[#allocation4 + $0x384] sm:$0xf]  ;;  %v4864_v59 = vor.u32 %v5596_v16, %v4861_v21  ;;  %v5043_v16 = vld [vmem:[#allocation4 + $0x2e8] sm:$0xf] }
 0x323   :  { %3199 = vmatpush.bf16.msrb.mxu1 %v5168_v36  ;;  %v5117_v56 = vld [vmem:[#allocation4 + $0x390] sm:$0xf0]  ;;  %v4992_v60 = vor.u32 %v5628_v0, %v4989_v28  ;;  %v5560_v62 = vld [vmem:[#allocation4 + $0x64] sm:$0xf]  ;;  %v5171_v28 = vld [vmem:[#allocation4 + $0x3e8] sm:$0xf] }
 0x324   :  { %3161 = vmatpush.bf16.msra.mxu2 %v4768_v9  ;;  %v4717_v63 = vld [vmem:[#allocation4 + $0x70] sm:$0xf0]  ;;  %v5592_v34 = vld [vmem:[#allocation4 + $0x164] sm:$0xf]  ;;  %v5120_v1 = vor.u32 %v5660_v55, %v5117_v56  ;;  %v5675_v55 = vld [vmem:[#allocation4 + $0x3f4] sm:$0xf0] }
 0x325   :  { %3174 = vmatpush.bf16.msra.mxu3 %v4896_v10  ;;  %v4845_v52 = vld [vmem:[#allocation4 + $0x170] sm:$0xf0]  ;;  %v5624_v4 = vld [vmem:[#allocation4 + $0x264] sm:$0xf]  ;;  %v4720_v53 = vor.u32 %v5560_v62, %v4717_v63  ;;  %v4771_v62 = vld [vmem:[#allocation4 + $0xc8] sm:$0xf] }
 0x326   :  { %3187 = vmatpush.bf16.msrb.mxu0 %v5024_v33  ;;  %v4973_v5 = vld [vmem:[#allocation4 + $0x270] sm:$0xf0]  ;;  %v5656_v7 = vld [vmem:[#allocation4 + $0x364] sm:$0xf]  ;;  %v4848_v3 = vor.u32 %v5592_v34, %v4845_v52  ;;  %v5575_v63 = vld [vmem:[#allocation4 + $0xd4] sm:$0xf0] }
 0x327   :  { %3200 = vmatpush.bf16.msrb.mxu1 %v5152_v11  ;;  %v5101_v15 = vld [vmem:[#allocation4 + $0x370] sm:$0xf0]  ;;  %v4976_v17 = vor.u32 %v5624_v4, %v4973_v5  ;;  %v5556_v6 = vld [vmem:[#allocation4 + $0x44] sm:$0xf]  ;;  %v4899_v34 = vld [vmem:[#allocation4 + $0x1c8] sm:$0xf] }
 0x328   :  { %3162 = vmatpush.bf16.msra.mxu2 %v4752_v35  ;;  %v4701_v61 = vld [vmem:[#allocation4 + $0x50] sm:$0xf0]  ;;  %v5588_v22 = vld [vmem:[#allocation4 + $0x144] sm:$0xf]  ;;  %v5104_v23 = vor.u32 %v5656_v7, %v5101_v15  ;;  %v4787_v35 = vld [vmem:[#allocation4 + $0xe8] sm:$0xf] }
 0x329   :  { %3175 = vmatpush.bf16.msra.mxu3 %v4880_v37  ;;  %v4829_v20 = vld [vmem:[#allocation4 + $0x150] sm:$0xf0]  ;;  %v5620_v29 = vld [vmem:[#allocation4 + $0x244] sm:$0xf]  ;;  %v4704_v30 = vor.u32 %v5556_v6, %v4701_v61  ;;  %v5579_v37 = vld [vmem:[#allocation4 + $0xf4] sm:$0xf0] }
 0x32a   :  { %3188 = vmatpush.bf16.msrb.mxu0 %v5008_v51  ;;  %v4957_v12 = vld [vmem:[#allocation4 + $0x250] sm:$0xf0]  ;;  %v5652_v19 = vld [vmem:[#allocation4 + $0x344] sm:$0xf]  ;;  %v4832_v8 = vor.u32 %v5588_v22, %v4829_v20  ;;  %v4915_v51 = vld [vmem:[#allocation4 + $0x1e8] sm:$0xf] }
 0x32b   :  { %3201 = vmatpush.bf16.msrb.mxu1 %v5136_v18  ;;  %v5085_v25 = vld [vmem:[#allocation4 + $0x350] sm:$0xf0]  ;;  %v4960_v13 = vor.u32 %v5620_v29, %v4957_v12  ;;  %v5552_v26 = vld [vmem:[#allocation4 + $0x24] sm:$0xf]  ;;  %v5643_v18 = vld [vmem:[#allocation4 + $0x2f4] sm:$0xf0] }
 0x32c   :  { %3163 = vmatpush.bf16.msra.mxu2 %v4736_v57  ;;  %v4685_v31 = vld [vmem:[#allocation4 + $0x30] sm:$0xf0]  ;;  %v5584_v32 = vld [vmem:[#allocation4 + $0x124] sm:$0xf]  ;;  %v5088_v36 = vor.u32 %v5652_v19, %v5085_v25  ;;  %v4788_v57 = vor.u32 %v5579_v37, %v4787_v35  ;;  %v5607_v52 = vld [vmem:[#allocation4 + $0x1d4] sm:$0xf0] }
 0x32d   :  { %3176 = vmatpush.bf16.msra.mxu3 %v4864_v59  ;;  %v4813_v38 = vld [vmem:[#allocation4 + $0x130] sm:$0xf0]  ;;  %v5616_v39 = vld [vmem:[#allocation4 + $0x224] sm:$0xf]  ;;  %v4688_v9 = vor.u32 %v5552_v26, %v4685_v31  ;;  %v4916_v59 = vor.u32 %v5611_v54, %v4915_v51  ;;  %v5027_v4 = vld [vmem:[#allocation4 + $0x2c8] sm:$0xf] }
 0x32e   :  { %3189 = vmatpush.bf16.msrb.mxu0 %v4992_v60  ;;  %v4941_v40 = vld [vmem:[#allocation4 + $0x230] sm:$0xf0]  ;;  %v5648_v44 = vld [vmem:[#allocation4 + $0x324] sm:$0xf]  ;;  %v4816_v48 = vor.u32 %v5584_v32, %v4813_v38  ;;  %v5044_v60 = vor.u32 %v5643_v18, %v5043_v16  ;;  %v5639_v5 = vld [vmem:[#allocation4 + $0x2d4] sm:$0xf0] }
 0x32f   :  { %3202 = vmatpush.bf16.msrb.mxu1 %v5120_v1  ;;  %v5069_v45 = vld [vmem:[#allocation4 + $0x330] sm:$0xf0]  ;;  %v5548_v10 = vld [vmem:[#allocation4 + $0x4] sm:$0xf]  ;;  %v4944_v2 = vor.u32 %v5616_v39, %v4941_v40  ;;  %v5172_v1 = vor.u32 %v5675_v55, %v5171_v28  ;;  %v5155_v7 = vld [vmem:[#allocation4 + $0x3c8] sm:$0xf] }
 0x330   :  { %3164 = vmatpush.bf16.msra.mxu2 %v4720_v53  ;;  %v4669_v33 = vld [vmem:[#allocation4 + $0x10] sm:$0xf0]  ;;  %v5580_v49 = vld [vmem:[#allocation4 + $0x104] sm:$0xf]  ;;  %v5072_v24 = vor.u32 %v5648_v44, %v5069_v45  ;;  %v5671_v15 = vld [vmem:[#allocation4 + $0x3d4] sm:$0xf0]  ;;  %v4772_v53 = vor.u32 %v5575_v63, %v4771_v62 }
 0x331   :  { %3177 = vmatpush.bf16.msra.mxu3 %v4848_v3  ;;  %v4797_v11 = vld [vmem:[#allocation4 + $0x110] sm:$0xf0]  ;;  %v5612_v41 = vld [vmem:[#allocation4 + $0x204] sm:$0xf]  ;;  %v4672_v43 = vor.u32 %v5548_v10, %v4669_v33  ;;  %v4900_v3 = vor.u32 %v5607_v52, %v4899_v34  ;;  %v4755_v6 = vld [vmem:[#allocation4 + $0xa8] sm:$0xf] }
 0x332   :  { %3190 = vmatpush.bf16.msrb.mxu0 %v4976_v17  ;;  %v4925_v50 = vld [vmem:[#allocation4 + $0x210] sm:$0xf0]  ;;  %v5644_v14 = vld [vmem:[#allocation4 + $0x304] sm:$0xf]  ;;  %v4800_v21 = vor.u32 %v5580_v49, %v4797_v11  ;;  %v5028_v17 = vor.u32 %v5639_v5, %v5027_v4  ;;  %v5571_v61 = vld [vmem:[#allocation4 + $0xb4] sm:$0xf0] }
 0x333   :  { %3203 = vmatpush.bf16.msrb.mxu1 %v5104_v23  ;;  %v5053_v27 = vld [vmem:[#allocation4 + $0x310] sm:$0xf0]  ;;  %v4928_v0 = vor.u32 %v5612_v41, %v4925_v50  ;;  %v4883_v22 = vld [vmem:[#allocation4 + $0x1a8] sm:$0xf]  ;;  %v5156_v23 = vor.u32 %v5671_v15, %v5155_v7  ;;  %v5603_v20 = vld [vmem:[#allocation4 + $0x1b4] sm:$0xf0] }
 0x334   :  { %3165 = vmatpush.bf16.msra.mxu2 %v4704_v30  ;;  %v5056_v56 = vor.u32 %v5644_v14, %v5053_v27  ;;  %v5011_v29 = vld [vmem:[#allocation4 + $0x2a8] sm:$0xf]  ;;  %v5635_v12 = vld [vmem:[#allocation4 + $0x2b4] sm:$0xf0]  ;;  %v4756_v30 = vor.u32 %v5571_v61, %v4755_v6 }
 0x335   :  { %3178 = vmatpush.bf16.msra.mxu3 %v4832_v8  ;;  %v5139_v19 = vld [vmem:[#allocation4 + $0x3a8] sm:$0xf]  ;;  %v5667_v25 = vld [vmem:[#allocation4 + $0x3b4] sm:$0xf0]  ;;  %v4884_v8 = vor.u32 %v5603_v20, %v4883_v22 }
 0x336   :  { %3191 = vmatpush.bf16.msrb.mxu0 %v4960_v13  ;;  %v5012_v13 = vor.u32 %v5635_v12, %v5011_v29  ;;  %v4739_v26 = vld [vmem:[#allocation4 + $0x88] sm:$0xf]  ;;  %v5567_v31 = vld [vmem:[#allocation4 + $0x94] sm:$0xf0] }
 0x337   :  { %3204 = vmatpush.bf16.msrb.mxu1 %v5088_v36  ;;  %v4867_v32 = vld [vmem:[#allocation4 + $0x188] sm:$0xf]  ;;  %v5140_v36 = vor.u32 %v5667_v25, %v5139_v19  ;;  %v5599_v38 = vld [vmem:[#allocation4 + $0x194] sm:$0xf0] }
 0x338   :  { %3166 = vmatpush.bf16.msra.mxu2 %v4688_v9  ;;  %v4995_v39 = vld [vmem:[#allocation4 + $0x288] sm:$0xf]  ;;  %v5631_v40 = vld [vmem:[#allocation4 + $0x294] sm:$0xf0]  ;;  %v4740_v9 = vor.u32 %v5567_v31, %v4739_v26  ;;  %v4868_v10 = vor.u32 %v5599_v38, %v4867_v32  ;;  %v4917_v31 = vld [vmem:[#allocation4 + $0x1f8] sm:$0xf0] }
 0x339   :  { %3179 = vmatpush.bf16.msra.mxu3 %v4816_v48  ;;  %v5123_v44 = vld [vmem:[#allocation4 + $0x388] sm:$0xf]  ;;  %v5663_v45 = vld [vmem:[#allocation4 + $0x394] sm:$0xf0]  ;;  %v4996_v33 = vor.u32 %v5631_v40, %v4995_v39  ;;  %v5641_v32 = vld [vmem:[#allocation4 + $0x2ec] sm:$0xf] }
 0x33a   :  { %3192 = vmatpush.bf16.msrb.mxu0 %v4944_v2  ;;  %v4723_v48 = vld [vmem:[#allocation4 + $0x68] sm:$0xf]  ;;  %v5563_v2 = vld [vmem:[#allocation4 + $0x74] sm:$0xf0]  ;;  %v5124_v11 = vor.u32 %v5663_v45, %v5123_v44  ;;  %v5673_v40 = vld [vmem:[#allocation4 + $0x3ec] sm:$0xf] }
 0x33b   :  { %3205 = vmatpush.bf16.msrb.mxu1 %v5072_v24  ;;  %v4851_v49 = vld [vmem:[#allocation4 + $0x168] sm:$0xf]  ;;  %v5595_v41 = vld [vmem:[#allocation4 + $0x174] sm:$0xf0]  ;;  %v4724_v35 = vor.u32 %v5563_v2, %v4723_v48  ;;  %v5173_v44 = vld [vmem:[#allocation4 + $0x3f8] sm:$0xf0] }
 0x33c   :  { %3167 = vmatpush.bf16.msra.mxu2 %v4672_v43  ;;  %v4979_v24 = vld [vmem:[#allocation4 + $0x268] sm:$0xf]  ;;  %v5627_v50 = vld [vmem:[#allocation4 + $0x274] sm:$0xf0]  ;;  %v4852_v37 = vor.u32 %v5595_v41, %v4851_v49  ;;  %v5573_v48 = vld [vmem:[#allocation4 + $0xcc] sm:$0xf] }
 0x33d   :  { %3180 = vmatpush.bf16.msra.mxu3 %v4800_v21  ;;  %v5107_v14 = vld [vmem:[#allocation4 + $0x368] sm:$0xf]  ;;  %v5659_v27 = vld [vmem:[#allocation4 + $0x374] sm:$0xf0]  ;;  %v4980_v51 = vor.u32 %v5627_v50, %v4979_v24  ;;  %v4773_v2 = vld [vmem:[#allocation4 + $0xd8] sm:$0xf0] }
 0x33e   :  { %3193 = vmatpush.bf16.msrb.mxu0 %v4928_v0  ;;  %v4707_v43 = vld [vmem:[#allocation4 + $0x48] sm:$0xf]  ;;  %v5559_v54 = vld [vmem:[#allocation4 + $0x54] sm:$0xf0]  ;;  %v5108_v18 = vor.u32 %v5659_v27, %v5107_v14  ;;  %v5605_v49 = vld [vmem:[#allocation4 + $0x1cc] sm:$0xf] }
 0x33f   :  { %3206 = vmatpush.bf16.msrb.mxu1 %v5056_v56  ;;  %3168 = vmatmul.bf16.vlgmr.msra.gmra.mxu2 %v6248_v42  ;;  %v4835_v16 = vld [vmem:[#allocation4 + $0x148] sm:$0xf]  ;;  %v5591_v21 = vld [vmem:[#allocation4 + $0x154] sm:$0xf0]  ;;  %v4901_v41 = vld [vmem:[#allocation4 + $0x1d8] sm:$0xf0] }
 0x340   :  { %3212 = vmatpush.bf16.msrb.mxu2 %v4788_v57  ;;  %3181 = vmatmul.bf16.vlgmr.msra.gmra.mxu3 %v6253_v58  ;;  %v4963_v0 = vld [vmem:[#allocation4 + $0x248] sm:$0xf]  ;;  %v5623_v28 = vld [vmem:[#allocation4 + $0x254] sm:$0xf0]  ;;  %v4708_v57 = vor.u32 %v5559_v54, %v4707_v43  ;;  %v5637_v24 = vld [vmem:[#allocation4 + $0x2cc] sm:$0xf] }
 0x341   :  { %3225 = vmatpush.bf16.msrb.mxu3 %v4916_v59  ;;  %3194 = vmatmul.bf16.vlgmr.msrb.gmra.mxu0 %v6258_v46  ;;  %v5091_v55 = vld [vmem:[#allocation4 + $0x348] sm:$0xf]  ;;  %v5655_v56 = vld [vmem:[#allocation4 + $0x354] sm:$0xf0]  ;;  %v4836_v59 = vor.u32 %v5591_v21, %v4835_v16  ;;  %v5029_v50 = vld [vmem:[#allocation4 + $0x2d8] sm:$0xf0] }
 0x342   :  { %3238 = vmatpush.bf16.msra.mxu0 %v5044_v60  ;;  %3207 = vmatmul.bf16.vlgmr.msrb.gmra.mxu1 %v6263_v47  ;;  %v4964_v60 = vor.u32 %v5623_v28, %v4963_v0  ;;  %v4691_v62 = vld [vmem:[#allocation4 + $0x28] sm:$0xf]  ;;  %v5555_v63 = vld [vmem:[#allocation4 + $0x34] sm:$0xf0]  ;;  %v5669_v14 = vld [vmem:[#allocation4 + $0x3cc] sm:$0xf] }
 0x343   :  { %3251 = vmatpush.bf16.msra.mxu1 %v5172_v1  ;;  %v4819_v34 = vld [vmem:[#allocation4 + $0x128] sm:$0xf]  ;;  %v5092_v1 = vor.u32 %v5655_v56, %v5091_v55  ;;  %v5587_v52 = vld [vmem:[#allocation4 + $0x134] sm:$0xf0]  ;;  %v5157_v27 = vld [vmem:[#allocation4 + $0x3d8] sm:$0xf0] }
 0x344   :  { %3213 = vmatpush.bf16.msrb.mxu2 %v4772_v53  ;;  %v4947_v4 = vld [vmem:[#allocation4 + $0x228] sm:$0xf]  ;;  %v5619_v5 = vld [vmem:[#allocation4 + $0x234] sm:$0xf0]  ;;  %v4692_v53 = vor.u32 %v5555_v63, %v4691_v62  ;;  %v4820_v6 = vor.u32 %v5587_v52, %v4819_v34  ;;  %v5569_v43 = vld [vmem:[#allocation4 + $0xac] sm:$0xf] }
 0x345   :  { %3226 = vmatpush.bf16.msrb.mxu3 %v4900_v3  ;;  %v5075_v7 = vld [vmem:[#allocation4 + $0x328] sm:$0xf]  ;;  %v5651_v15 = vld [vmem:[#allocation4 + $0x334] sm:$0xf0]  ;;  %v4948_v61 = vor.u32 %v5619_v5, %v4947_v4  ;;  %v4757_v54 = vld [vmem:[#allocation4 + $0xb8] sm:$0xf0] }
 0x346   :  { %3239 = vmatpush.bf16.msra.mxu0 %v5028_v17  ;;  %v4675_v3 = vld [vmem:[#allocation4 + $0x8] sm:$0xf]  ;;  %v5551_v17 = vld [vmem:[#allocation4 + $0x14] sm:$0xf0]  ;;  %v5076_v29 = vor.u32 %v5651_v15, %v5075_v7  ;;  %v5601_v16 = vld [vmem:[#allocation4 + $0x1ac] sm:$0xf] }
 0x347   :  { %3252 = vmatpush.bf16.msra.mxu1 %v5156_v23  ;;  %v4803_v22 = vld [vmem:[#allocation4 + $0x108] sm:$0xf]  ;;  %v5583_v23 = vld [vmem:[#allocation4 + $0x114] sm:$0xf0]  ;;  %v4676_v26 = vor.u32 %v5551_v17, %v4675_v3  ;;  %v4885_v21 = vld [vmem:[#allocation4 + $0x1b8] sm:$0xf0] }
 0x348   :  { %3214 = vmatpush.bf16.msrb.mxu2 %v4756_v30  ;;  %v4931_v20 = vld [vmem:[#allocation4 + $0x208] sm:$0xf]  ;;  %v5615_v12 = vld [vmem:[#allocation4 + $0x214] sm:$0xf0]  ;;  %v5577_v30 = vld [vmem:[#allocation4 + $0xec] sm:$0xf]  ;;  %v4804_v38 = vor.u32 %v5583_v23, %v4803_v22 }
 0x349   :  { %3227 = vmatpush.bf16.msrb.mxu3 %v4884_v8  ;;  %v5059_v19 = vld [vmem:[#allocation4 + $0x308] sm:$0xf]  ;;  %v5647_v25 = vld [vmem:[#allocation4 + $0x314] sm:$0xf0]  ;;  %v4789_v8 = vld [vmem:[#allocation4 + $0xf8] sm:$0xf0]  ;;  %v4932_v39 = vor.u32 %v5615_v12, %v4931_v20 }
 0x34a   :  { %3240 = vmatpush.bf16.msra.mxu0 %v5012_v13  ;;  %v5609_v13 = vld [vmem:[#allocation4 + $0x1ec] sm:$0xf]  ;;  %v5060_v45 = vor.u32 %v5647_v25, %v5059_v19  ;;  %v5013_v28 = vld [vmem:[#allocation4 + $0x2b8] sm:$0xf0] }
 0x34b   :  { %3253 = vmatpush.bf16.msra.mxu1 %v5140_v36  ;;  %v5045_v36 = vld [vmem:[#allocation4 + $0x2f8] sm:$0xf0]  ;;  %v5633_v0 = vld [vmem:[#allocation4 + $0x2ac] sm:$0xf] }
 0x34c   :  { %3215 = vmatpush.bf16.msrb.mxu2 %v4740_v9  ;;  %v4792_v9 = vor.u32 %v5577_v30, %v4789_v8  ;;  %v5665_v55 = vld [vmem:[#allocation4 + $0x3ac] sm:$0xf]  ;;  %v5141_v56 = vld [vmem:[#allocation4 + $0x3b8] sm:$0xf0] }
 0x34d   :  { %3228 = vmatpush.bf16.msrb.mxu3 %v4868_v10  ;;  %v4920_v10 = vor.u32 %v5609_v13, %v4917_v31  ;;  %v5565_v62 = vld [vmem:[#allocation4 + $0x8c] sm:$0xf]  ;;  %v4741_v63 = vld [vmem:[#allocation4 + $0x98] sm:$0xf0] }
 0x34e   :  { %3241 = vmatpush.bf16.msra.mxu0 %v4996_v33  ;;  %v5048_v33 = vor.u32 %v5641_v32, %v5045_v36  ;;  %v5597_v34 = vld [vmem:[#allocation4 + $0x18c] sm:$0xf]  ;;  %v4869_v52 = vld [vmem:[#allocation4 + $0x198] sm:$0xf0] }
 0x34f   :  { %3254 = vmatpush.bf16.msra.mxu1 %v5124_v11  ;;  %v5176_v11 = vor.u32 %v5673_v40, %v5173_v44  ;;  %v5629_v4 = vld [vmem:[#allocation4 + $0x28c] sm:$0xf]  ;;  %v4997_v5 = vld [vmem:[#allocation4 + $0x298] sm:$0xf0]  ;;  %v4872_v3 = vor.u32 %v5597_v34, %v4869_v52 }
 0x350   :  { %3216 = vmatpush.bf16.msrb.mxu2 %v4724_v35  ;;  %v4776_v35 = vor.u32 %v5573_v48, %v4773_v2  ;;  %v5661_v7 = vld [vmem:[#allocation4 + $0x38c] sm:$0xf]  ;;  %v5125_v15 = vld [vmem:[#allocation4 + $0x398] sm:$0xf0]  ;;  %v5000_v17 = vor.u32 %v5629_v4, %v4997_v5 }
 0x351   :  { %3229 = vmatpush.bf16.msrb.mxu3 %v4852_v37  ;;  %v4904_v37 = vor.u32 %v5605_v49, %v4901_v41  ;;  %v5593_v22 = vld [vmem:[#allocation4 + $0x16c] sm:$0xf]  ;;  %v5128_v23 = vor.u32 %v5661_v7, %v5125_v15  ;;  %v4853_v20 = vld [vmem:[#allocation4 + $0x178] sm:$0xf0] }
 0x352   :  { %3242 = vmatpush.bf16.msra.mxu0 %v4980_v51  ;;  %v5032_v51 = vor.u32 %v5637_v24, %v5029_v50  ;;  %v4981_v12 = vld [vmem:[#allocation4 + $0x278] sm:$0xf0]  ;;  %v5657_v19 = vld [vmem:[#allocation4 + $0x36c] sm:$0xf]  ;;  %v4856_v8 = vor.u32 %v5593_v22, %v4853_v20 }
 0x353   :  { %3255 = vmatpush.bf16.msra.mxu1 %v5108_v18  ;;  %v5160_v18 = vor.u32 %v5669_v14, %v5157_v27  ;;  %v5109_v25 = vld [vmem:[#allocation4 + $0x378] sm:$0xf0]  ;;  %v5589_v32 = vld [vmem:[#allocation4 + $0x14c] sm:$0xf] }
 0x354   :  { %3217 = vmatpush.bf16.msrb.mxu2 %v4708_v57  ;;  %v4760_v57 = vor.u32 %v5569_v43, %v4757_v54  ;;  %v4709_v31 = vld [vmem:[#allocation4 + $0x58] sm:$0xf0]  ;;  %v5112_v36 = vor.u32 %v5657_v19, %v5109_v25  ;;  %v5653_v44 = vld [vmem:[#allocation4 + $0x34c] sm:$0xf] }
 0x355   :  { %3230 = vmatpush.bf16.msrb.mxu3 %v4836_v59  ;;  %v4888_v59 = vor.u32 %v5601_v16, %v4885_v21  ;;  %v4965_v40 = vld [vmem:[#allocation4 + $0x258] sm:$0xf0]  ;;  %v5553_v48 = vld [vmem:[#allocation4 + $0x2c] sm:$0xf] }
 0x356   :  { %3243 = vmatpush.bf16.msra.mxu0 %v4964_v60  ;;  %v5016_v60 = vor.u32 %v5633_v0, %v5013_v28  ;;  %v4693_v2 = vld [vmem:[#allocation4 + $0x38] sm:$0xf0]  ;;  %v5585_v49 = vld [vmem:[#allocation4 + $0x12c] sm:$0xf] }
 0x357   :  { %3256 = vmatpush.bf16.msra.mxu1 %v5092_v1  ;;  %v5144_v1 = vor.u32 %v5665_v55, %v5141_v56  ;;  %v4821_v41 = vld [vmem:[#allocation4 + $0x138] sm:$0xf0]  ;;  %v5617_v24 = vld [vmem:[#allocation4 + $0x22c] sm:$0xf] }
 0x358   :  { %3218 = vmatpush.bf16.msrb.mxu2 %v4692_v53  ;;  %v4744_v53 = vor.u32 %v5565_v62, %v4741_v63  ;;  %v4949_v50 = vld [vmem:[#allocation4 + $0x238] sm:$0xf0]  ;;  %v5649_v14 = vld [vmem:[#allocation4 + $0x32c] sm:$0xf]  ;;  %v2458_v63 = vld [vmem:[%s6319_s5] sm:$0xf] }
 0x359   :  { %3231 = vmatpush.bf16.msrb.mxu3 %v4820_v6  ;;  %v5561_v6 = vld [vmem:[#allocation4 + $0x6c] sm:$0xf]  ;;  %v5077_v27 = vld [vmem:[#allocation4 + $0x338] sm:$0xf0]  ;;  %v2460_v52 = vperm.slane %v2458_v63, 0  ;;  %v2461_v22 = vperm.slane %v2458_v63, 1 }
 0x35a   :  { %3244 = vmatpush.bf16.msra.mxu0 %v4948_v61  ;;  %v4725_v61 = vld [vmem:[#allocation4 + $0x78] sm:$0xf0]  ;;  %v5549_v43 = vld [vmem:[#allocation4 + $0xc] sm:$0xf] }
 0x35b   :  { %3257 = vmatpush.bf16.msra.mxu1 %v5076_v29  ;;  %v5625_v29 = vld [vmem:[#allocation4 + $0x26c] sm:$0xf]  ;;  %v4728_v30 = vor.u32 %v5561_v6, %v4725_v61  ;;  %v4677_v54 = vld [vmem:[#allocation4 + $0x18] sm:$0xf0] }
 0x35c   :  { %3219 = vmatpush.bf16.msrb.mxu2 %v4676_v26  ;;  %v4984_v13 = vor.u32 %v5625_v29, %v4981_v12  ;;  %v5557_v26 = vld [vmem:[#allocation4 + $0x4c] sm:$0xf]  ;;  %v4805_v21 = vld [vmem:[#allocation4 + $0x118] sm:$0xf0] }
 0x35d   :  { %3232 = vmatpush.bf16.msrb.mxu3 %v4804_v38  ;;  %v4837_v38 = vld [vmem:[#allocation4 + $0x158] sm:$0xf0]  ;;  %v5581_v16 = vld [vmem:[#allocation4 + $0x10c] sm:$0xf] }
 0x35e   :  { %3245 = vmatpush.bf16.msra.mxu0 %v4932_v39  ;;  %v5621_v39 = vld [vmem:[#allocation4 + $0x24c] sm:$0xf]  ;;  %v4933_v28 = vld [vmem:[#allocation4 + $0x218] sm:$0xf0] }
 0x35f   :  { %3258 = vmatpush.bf16.msra.mxu1 %v5060_v45  ;;  %3220 = vmatmul.bf16.vlgmr.msrb.gmra.mxu2 %v6248_v42  ;;  %v5093_v45 = vld [vmem:[#allocation4 + $0x358] sm:$0xf0]  ;;  %v5613_v0 = vld [vmem:[#allocation4 + $0x20c] sm:$0xf] }
 0x360   :  { %3264 = vmatpush.bf16.msra.mxu2 %v4792_v9  ;;  %3233 = vmatmul.bf16.vlgmr.msrb.gmra.mxu3 %v6253_v58  ;;  %v4712_v9 = vor.u32 %v5557_v26, %v4709_v31  ;;  %v5645_v55 = vld [vmem:[#allocation4 + $0x30c] sm:$0xf]  ;;  %v5061_v56 = vld [vmem:[#allocation4 + $0x318] sm:$0xf0] }
 0x361   :  { %3277 = vmatpush.bf16.msra.mxu3 %v4920_v10  ;;  %3246 = vmatmul.bf16.vlgmr.msra.gmra.mxu0 %v6258_v46  ;;  %v4840_v10 = vor.u32 %v5589_v32, %v4837_v38  ;;  %v5064_v62 = vor.u32 %v5645_v55, %v5061_v56  ;;  %v2462_v38 = vperm.slane %v2458_v63, 2 }
 0x362   :  { %3290 = vmatpush.bf16.msrb.mxu0 %v5048_v33  ;;  %3259 = vmatmul.bf16.vlgmr.msra.gmra.mxu1 %v6263_v47  ;;  %v4968_v33 = vor.u32 %v5621_v39, %v4965_v40 }
 0x363   :  { %3303 = vmatpush.bf16.msrb.mxu1 %v5176_v11  ;;  %v5096_v11 = vor.u32 %v5653_v44, %v5093_v45 }
 0x364   :  { %3265 = vmatpush.bf16.msra.mxu2 %v4776_v35  ;;  %v4696_v35 = vor.u32 %v5553_v48, %v4693_v2 }
 0x365   :  { %3278 = vmatpush.bf16.msra.mxu3 %v4904_v37  ;;  %v4824_v37 = vor.u32 %v5585_v49, %v4821_v41 }
 0x366   :  { %3291 = vmatpush.bf16.msrb.mxu0 %v5032_v51  ;;  %v4952_v51 = vor.u32 %v5617_v24, %v4949_v50  ;;  %v2463_v50 = vperm.slane %v2458_v63, 3 }
 0x367   :  { %3304 = vmatpush.bf16.msrb.mxu1 %v5160_v18  ;;  %v5080_v18 = vor.u32 %v5649_v14, %v5077_v27 }
 0x368   :  { %3266 = vmatpush.bf16.msra.mxu2 %v4760_v57  ;;  %v4680_v57 = vor.u32 %v5549_v43, %v4677_v54 }
 0x369   :  { %3279 = vmatpush.bf16.msra.mxu3 %v4888_v59  ;;  %v4808_v59 = vor.u32 %v5581_v16, %v4805_v21 }
 0x36a   :  { %3292 = vmatpush.bf16.msrb.mxu0 %v5016_v60  ;;  %v4936_v60 = vor.u32 %v5613_v0, %v4933_v28 }
 0x36b   :  { %3305 = vmatpush.bf16.msrb.mxu1 %v5144_v1 }
 0x36c   :  { %3267 = vmatpush.bf16.msra.mxu2 %v4744_v53 }
 0x36d   :  { %3280 = vmatpush.bf16.msra.mxu3 %v4872_v3 }
 0x36e   :  { %3293 = vmatpush.bf16.msrb.mxu0 %v5000_v17 }
 0x36f   :  { %3306 = vmatpush.bf16.msrb.mxu1 %v5128_v23 }
 0x370   :  { %3268 = vmatpush.bf16.msra.mxu2 %v4728_v30 }
 0x371   :  { %3281 = vmatpush.bf16.msra.mxu3 %v4856_v8 }
 0x372   :  { %3294 = vmatpush.bf16.msrb.mxu0 %v4984_v13 }
 0x373   :  { %3307 = vmatpush.bf16.msrb.mxu1 %v5112_v36 }
 0x374   :  { %3269 = vmatpush.bf16.msra.mxu2 %v4712_v9 }
 0x375   :  { %3282 = vmatpush.bf16.msra.mxu3 %v4840_v10 }
 0x376   :  { %3295 = vmatpush.bf16.msrb.mxu0 %v4968_v33 }
 0x377   :  { %3308 = vmatpush.bf16.msrb.mxu1 %v5096_v11 }
 0x378   :  { %3270 = vmatpush.bf16.msra.mxu2 %v4696_v35 }
 0x379   :  { %3283 = vmatpush.bf16.msra.mxu3 %v4824_v37 }
 0x37a   :  { %3296 = vmatpush.bf16.msrb.mxu0 %v4952_v51 }
 0x37b   :  { %3309 = vmatpush.bf16.msrb.mxu1 %v5080_v18 }
 0x37c   :  { %3271 = vmatpush.bf16.msra.mxu2 %v4680_v57 }
 0x37d   :  { %3284 = vmatpush.bf16.msra.mxu3 %v4808_v59 }
 0x37e   :  { %3297 = vmatpush.bf16.msrb.mxu0 %v4936_v60 }
 0x37f   :  { %3310 = vmatpush.bf16.msrb.mxu1 %v5064_v62  ;;  %3272 = vmatmul.bf16.vlgmr.msra.gmra.mxu2 %v6248_v42 }
 0x380   :  { %3285 = vmatmul.bf16.vlgmr.msra.gmra.mxu3 %v6253_v58 }
 0x381   :  { %3298 = vmatmul.bf16.vlgmr.msrb.gmra.mxu0 %v6258_v46 }
 0x382   :  { %3311 = vmatmul.bf16.vlgmr.msrb.gmra.mxu1 %v6263_v47 }
 0x39e   :  { %v3143_v34 = vpop.f32.mrf.mxu0 }
 0x39f   :  { %v3156_v1 = vpop.f32.mrf.mxu1 }
 0x3a2   :  { %v3117_v4 = vpop.f32.mrf.mxu2 }
 0x3a3   :  { %v3118_v5 = vadd.f32 %v3117_v4, %v2460_v52  ;;  %v3130_v7 = vpop.f32.mrf.mxu3 }
 0x3a5   :  { %v3131_v15 = vadd.f32 %v3130_v7, %v3118_v5 }
 0x3a6   :  { %v3145_v53 = vpop.f32.mrf.mxu0 }
 0x3a7   :  { %v3158_v3 = vpop.f32.mrf.mxu1  ;;  %v3144_v42 = vadd.f32 %v3143_v34, %v3131_v15 }
 0x3a9   :  { %v6284_v17 = vadd.f32 %v3156_v1, %v3144_v42 }
 0x3aa   :  { %v3119_v58 = vpop.f32.mrf.mxu2 }
 0x3ab   :  { %v3316_v46 = vmax.f32 %v6284_v17, 0.0  ;;  %v3132_v47 = vpop.f32.mrf.mxu3 }
 0x3be   :  { %v3195_v6 = vpop.f32.mrf.mxu0 }
 0x3bf   :  { %v3208_v61 = vpop.f32.mrf.mxu1 }
 0x3c2   :  { %v3169_v23 = vpop.f32.mrf.mxu2 }
 0x3c3   :  { %v3170_v20 = vadd.f32 %v3169_v23, %v2461_v22  ;;  %v3182_v29 = vpop.f32.mrf.mxu3 }
 0x3c5   :  { %v3183_v12 = vadd.f32 %v3182_v29, %v3170_v20 }
 0x3c6   :  { %v3197_v19 = vpop.f32.mrf.mxu0 }
 0x3c7   :  { %v3210_v25 = vpop.f32.mrf.mxu1  ;;  %v3196_v30 = vadd.f32 %v3195_v6, %v3183_v12 }
 0x3c9   :  { %v6287_v8 = vadd.f32 %v3208_v61, %v3196_v30 }
 0x3ca   :  { %v3171_v13 = vpop.f32.mrf.mxu2 }
 0x3cb   :  { %v3317_v26 = vmax.f32 %v6287_v8, 0.0  ;;  %v3184_v31 = vpop.f32.mrf.mxu3 }
 0x3de   :  { %v3247_v32 = vpop.f32.mrf.mxu0 }
 0x3df   :  { %v3260_v36 = vpop.f32.mrf.mxu1 }
 0x3e2   :  { %v3221_v39 = vpop.f32.mrf.mxu2 }
 0x3e3   :  { %v3222_v40 = vadd.f32 %v3221_v39, %v2462_v38  ;;  %v3234_v44 = vpop.f32.mrf.mxu3 }
 0x3e5   :  { %v3235_v45 = vadd.f32 %v3234_v44, %v3222_v40 }
 0x3e6   :  { %v3249_v9 = vpop.f32.mrf.mxu0 }
 0x3e7   :  { %v3262_v10 = vpop.f32.mrf.mxu1  ;;  %v3248_v33 = vadd.f32 %v3247_v32, %v3235_v45 }
 0x3e9   :  { %v6290_v48 = vadd.f32 %v3260_v36, %v3248_v33 }
 0x3ea   :  { %v3223_v2 = vpop.f32.mrf.mxu2 }
 0x3eb   :  { %v3318_v49 = vmax.f32 %v6290_v48, 0.0  ;;  %v3236_v11 = vpop.f32.mrf.mxu3 }
 0x3fe   :  { %v3299_v41 = vpop.f32.mrf.mxu0 }
 0x3ff   :  { %v3312_v24 = vpop.f32.mrf.mxu1 }
 0x402   :  { %v3273_v14 = vpop.f32.mrf.mxu2 }
 0x403   :  { %v3274_v27 = vadd.f32 %v3273_v14, %v2463_v50  ;;  %v3286_v35 = vpop.f32.mrf.mxu3 }
 0x405   :  { %v3287_v37 = vadd.f32 %v3286_v35, %v3274_v27 }
 0x406   :  { %v3301_v51 = vpop.f32.mrf.mxu0 }
 0x407   :  { %v3314_v43 = vpop.f32.mrf.mxu1  ;;  %v3300_v54 = vadd.f32 %v3299_v41, %v3287_v37 }
 0x409   :  { %v6293_v16 = vadd.f32 %v3312_v24, %v3300_v54 }
 0x40a   :  { %v3275_v18 = vpop.f32.mrf.mxu2 }
 0x40b   :  { %v3319_v21 = vmax.f32 %v6293_v16, 0.0  ;;  %v3288_v0 = vpop.f32.mrf.mxu3 }
 0x40c   :  { %5816 = dma.done.wait [#allocation6 + $0x3], 4096 }
 0x40d   :  { %5817 = vsyncadd [#allocation6 + $0x3], 4294963200  ;;  %v5683_v28 = vld [vmem:[#allocation5 + $0x48] sm:$0xff]  ;;  %v5691_v55 = vld [vmem:[#allocation5 + $0x78] sm:$0xff]  ;;  %v3323_v32 = vpack.c.bf16 %v3316_v46, %v3316_v46  ;;  %v3324_v36 = vpack.c.bf16 %v3317_v26, %v3317_v26  ;;  %v3325_v38 = vpack.c.bf16 %v3318_v49, %v3318_v49  ;;  %v3326_v39 = vpack.c.bf16 %v3319_v21, %v3319_v21  ;;  %s5824_s28 = smov [#allocation7]   ;;  %s3647_s30 = sshll.u32 %s6325_s11, 4  ;;  %s3648_s30 = int_to_ptr.hbm [resolvable:$true] %s3647_s30 }
 0x40e   :  { %v5699_v56 = vld [vmem:[#allocation5 + $0xc0] sm:$0xff]  ;;  %v5707_v57 = vld [vmem:[#allocation5 + $0x98] sm:$0xff]  ;;  %3587 = vmatpush.bf16.msrb.mxu2 %v5683_v28  ;;  %3600 = vmatpush.bf16.msrb.mxu3 %v5691_v55  ;;  %v5682_v59 = vld [vmem:[#allocation5 + $0x30] sm:$0xff]  ;;  %s3645_s9 = sshll.u32 %s5824_s28, 4  ;;  %s3646_s9 = int_to_ptr.vmem [resolvable:$true] %s3645_s9 }
 0x40f   :  { %v5690_v60 = vld [vmem:[#allocation5 + $0x8] sm:$0xff]  ;;  %3613 = vmatpush.bf16.msra.mxu0 %v5699_v56  ;;  %3626 = vmatpush.bf16.msra.mxu1 %v5707_v57  ;;  %v5698_v62 = vld [vmem:[#allocation5 + $0x70] sm:$0xff]  ;;  %v5706_v63 = vld [vmem:[#allocation5 + $0x20] sm:$0xff] }
 0x410   :  { %v5681_v34 = vld [vmem:[#allocation5 + $0x68] sm:$0xff]  ;;  %v5689_v1 = vld [vmem:[#allocation5 + $0xf0] sm:$0xff]  ;;  %v5705_v4 = vld [vmem:[#allocation5 + $0xf8] sm:$0xff] }
 0x411   :  { %v5697_v52 = vld [vmem:[#allocation5 + $0x90] sm:$0xff]  ;;  %v5688_v7 = vld [vmem:[#allocation5 + $0x60] sm:$0xff]  ;;  %v5679_v3 = vld [vmem:[#allocation5 + $0x18] sm:$0xff] }
 0x412   :  { %3588 = vmatpush.bf16.msrb.mxu2 %v5682_v59  ;;  %3601 = vmatpush.bf16.msrb.mxu3 %v5690_v60  ;;  %v5680_v5 = vld [vmem:[#allocation5 + $0x50] sm:$0xff]  ;;  %v5696_v15 = vld [vmem:[#allocation5 + $0xe0] sm:$0xff]  ;;  %v5687_v42 = vld [vmem:[#allocation5 + $0xb8] sm:$0xff] }
 0x413   :  { %3614 = vmatpush.bf16.msra.mxu0 %v5698_v62  ;;  %3627 = vmatpush.bf16.msra.mxu1 %v5706_v63  ;;  %v5704_v53 = vld [vmem:[#allocation5 + $0xa0] sm:$0xff]  ;;  %v5695_v58 = vld [vmem:[#allocation5 + $0xc8] sm:$0xff]  ;;  %v5678_v6 = vld [vmem:[#allocation5 + $0xd8] sm:$0xff] }
 0x414   :  { %v5703_v47 = vld [vmem:[#allocation5 + $0x28] sm:$0xff]  ;;  %v5694_v22 = vld [vmem:[#allocation5 + $0x40] sm:$0xff]  ;;  %v5702_v23 = vld [vmem:[#allocation5 + $0x10] sm:$0xff] }
 0x415   :  { %v5686_v61 = vld [vmem:[#allocation5 + $0xe8] sm:$0xff]  ;;  %v5677_v20 = vld [vmem:[#allocation5] sm:$0xff]  ;;  %v5693_v12 = vld [vmem:[#allocation5 + $0x58] sm:$0xff] }
 0x416   :  { %3589 = vmatpush.bf16.msrb.mxu2 %v5681_v34  ;;  %3602 = vmatpush.bf16.msrb.mxu3 %v5689_v1  ;;  %v5685_v29 = vld [vmem:[#allocation5 + $0x88] sm:$0xff]  ;;  %v5701_v19 = vld [vmem:[#allocation5 + $0xd0] sm:$0xff]  ;;  %v5684_v30 = vld [vmem:[#allocation5 + $0x80] sm:$0xff] }
 0x417   :  { %3615 = vmatpush.bf16.msra.mxu0 %v5697_v52  ;;  %3628 = vmatpush.bf16.msra.mxu1 %v5705_v4  ;;  %v5676_v25 = vld [vmem:[#allocation5 + $0xb0] sm:$0xff]  ;;  %v5692_v13 = vld [vmem:[#allocation5 + $0x38] sm:$0xff]  ;;  %v5700_v31 = vld [vmem:[#allocation5 + $0xa8] sm:$0xff] }
 0x418   :  { %v5713_v8 = vld [vmem:[%s6320_s6] ss:$0 sm:$0xff] }
 0x41a   :  { %3590 = vmatpush.bf16.msrb.mxu2 %v5680_v5  ;;  %3603 = vmatpush.bf16.msrb.mxu3 %v5688_v7 }
 0x41b   :  { %3616 = vmatpush.bf16.msra.mxu0 %v5696_v15  ;;  %3629 = vmatpush.bf16.msra.mxu1 %v5704_v53 }
 0x41e   :  { %3591 = vmatpush.bf16.msrb.mxu2 %v5679_v3  ;;  %3604 = vmatpush.bf16.msrb.mxu3 %v5687_v42 }
 0x41f   :  { %3617 = vmatpush.bf16.msra.mxu0 %v5695_v58  ;;  %3630 = vmatpush.bf16.msra.mxu1 %v5703_v47 }
 0x422   :  { %3592 = vmatpush.bf16.msrb.mxu2 %v5678_v6  ;;  %3605 = vmatpush.bf16.msrb.mxu3 %v5686_v61 }
 0x423   :  { %3618 = vmatpush.bf16.msra.mxu0 %v5694_v22  ;;  %3631 = vmatpush.bf16.msra.mxu1 %v5702_v23 }
 0x426   :  { %3593 = vmatpush.bf16.msrb.mxu2 %v5677_v20  ;;  %3606 = vmatpush.bf16.msrb.mxu3 %v5685_v29 }
 0x427   :  { %3619 = vmatpush.bf16.msra.mxu0 %v5693_v12  ;;  %3632 = vmatpush.bf16.msra.mxu1 %v5701_v19 }
 0x42a   :  { %3594 = vmatpush.bf16.msrb.mxu2 %v5676_v25  ;;  %3607 = vmatpush.bf16.msrb.mxu3 %v5684_v30 }
 0x42b   :  { %3620 = vmatpush.bf16.msra.mxu0 %v5692_v13  ;;  %3633 = vmatpush.bf16.msra.mxu1 %v5700_v31 }
 0x42d   :  { %3595 = vmatmul.bf16.vlgmr.msrb.gmra.mxu2 %v3323_v32  ;;  %3608 = vmatmul.bf16.vlgmr.msrb.gmra.mxu3 %v3324_v36 }
 0x42e   :  { %3621 = vmatmul.bf16.vlgmr.msra.gmra.mxu0 %v3325_v38  ;;  %3634 = vmatmul.bf16.vlgmr.msra.gmra.mxu1 %v3326_v39 }
 0x4ab   :  { %v3622_v17 = vpop.f32.mrf.mxu0  ;;  %v3635_v46 = vpop.f32.mrf.mxu1 }
 0x4b0   :  { %v3596_v26 = vpop.f32.mrf.mxu2  ;;  %v3609_v40 = vpop.f32.mrf.mxu3 }
 0x4b1   :  { %v3597_v44 = vadd.f32 %v5713_v8, %v3596_v26 }
 0x4b3   :  { %v3610_v45 = vadd.f32 %v3609_v40, %v3597_v44  ;;  %v3624_v9 = vpop.f32.mrf.mxu0  ;;  %v3637_v10 = vpop.f32.mrf.mxu1 }
 0x4b5   :  { %v3623_v33 = vadd.f32 %v3622_v17, %v3610_v45 }
 0x4b7   :  { %v3636_v48 = vadd.f32 %v3635_v46, %v3623_v33 }
 0x4b8   :  { %v3598_v2 = vpop.f32.mrf.mxu2  ;;  %v3611_v49 = vpop.f32.mrf.mxu3 }
 0x4b9   :  { %3639 = vst [vmem:[#allocation7] sm:$0x3] %v3636_v48 }
 0x4ba   :  { %3650 = dma.vmem_to_hbm [thread:$0]  %s3646_s9, 32, %s3648_s30, [#allocation8]  }
 0x4bb   :  { %5818 = dma.done.wait [#allocation8], 32  }
 0x4bc   :  { %5819 = vsyncadd [#allocation8], 4294967264 }
 0x4bd   :  { %3655 = vsyncpa [#allocation8], 1 }
 0x4be   :  { %3656 = vsyncmov [#allocation6] }
 0x4c1   :  { %s3657_s6 = vpop.sfrf %3656 }
 0x4c2   :  { %p5305_p0 = scmp.ne.s32.totalorder %s3657_s6, 0 }
 0x4c4   :  { %3661 = shalt.err (%p5305_p0)  }
 0x4c5   :  { %3663 = vsyncmov [#allocation6 + $0x1] }
 0x4c8   :  { %s3664_s13 = vpop.sfrf %3663 }
 0x4c9   :  { %p5306_p1 = scmp.ne.s32.totalorder %s3664_s13, 0 }
 0x4cb   :  { %3668 = shalt.err (%p5306_p1)  }
 0x4cc   :  { %3670 = vsyncmov [#allocation6 + $0x2] }
 0x4cf   :  { %s3671_s11 = vpop.sfrf %3670 }
 0x4d0   :  { %p5307_p2 = scmp.ne.s32.totalorder %s3671_s11, 0 }
 0x4d2   :  { %3675 = shalt.err (%p5307_p2)  }
 0x4d3   :  { %3677 = vsyncmov [#allocation6 + $0x3] }
 0x4d6   :  { %s3678_s14 = vpop.sfrf %3677 }
 0x4d7   :  { %p5308_p3 = scmp.ne.s32.totalorder %s3678_s14, 0 }
 0x4d9   :  { %3682 = shalt.err (%p5308_p3)  }

</bundles_post_ra>
